<compile_context>
chip_gen: v5e
topology: v5e:2x2
jax: 0.10.0
libtpu: 0.0.40
codegen_flags: <defaults>
</compile_context>

<pallas_src>
import numpy as np
import jax
import jax.numpy as jnp
from jax.experimental import pallas as pl
from jax.experimental.pallas import tpu as pltpu

C1 = 32           # conv1 out-channels (20) padded, per 32-lane group
C2 = 64           # conv2 out-channels (50) padded, per output-parity block
NH = 512          # fc1 hidden units (500) padded
NK1 = 64          # conv1 K: 4 shift offsets x 16 in-block positions
NK2 = 9 * 128     # conv2 K: 9 shifts x (4 pool groups x 32 channels)
NKF = 16 * C2     # fc1  K: 16 spatial positions x 64 channels
NEG = -1e30


# ------------------------------ fused kernel -------------------------------

def _lenet_kernel(xcat_ref, w1_ref, w2_ref, wf1_ref, wf2_ref, bias_ref,
                  o_ref, pp_ref, lhs_ref):
    f32, bf16 = jnp.float32, jnp.bfloat16

    bias = bias_ref[...]                     # (8, 512) f32, single slab
    b1 = bias[0:1, 0:128]                    # conv1 bias tiled over 4 pool groups
    b2 = bias[1:2, 0:C2]                     # conv2 bias
    bf1 = bias[2:3, :]                       # fc1 bias (1, 512)
    bf2 = bias[3:4, 0:128]                   # fc2 bias, pad lanes = -1e30

    # ---- conv1: all 16 mod-4 output planes in ONE (48,64)@(64,512) dot ----
    x = xcat_ref[0]                          # (48, 64) bf16
    q = jnp.dot(x, w1_ref[...], preferred_element_type=f32)          # (48, 512)

    # ---- maxpool1: each pool group's 4 planes sit at the same 32-lane offset
    # of the four 128-lane slabs -> elementwise max of 4 aligned slabs (+bias).
    pp_ref[...] = (jnp.maximum(jnp.maximum(q[:, 0:128], q[:, 128:256]),
                               jnp.maximum(q[:, 256:384], q[:, 384:512])) + b1)

    # ---- conv2 LHS: 9 sublane-shifted copies of the pooled slab along lanes ----
    for o in range(9):
        si, sj = o // 3, o % 3
        lhs_ref[:, o * 128:(o + 1) * 128] = (
            pp_ref[pl.ds(si * 7 + sj, 32), :].astype(bf16))

    # ---- conv2: all 25 taps fused along K, 4 output parities along N ----
    r = jnp.dot(lhs_ref[...], w2_ref[...], preferred_element_type=f32)  # (32, 256)

    # ---- maxpool2 (+bias): max over the 4 parity blocks of 64 lanes ----
    z = (jnp.maximum(jnp.maximum(r[:, 0:C2], r[:, C2:2 * C2]),
                     jnp.maximum(r[:, 2 * C2:3 * C2], r[:, 3 * C2:4 * C2])) + b2)

    # ---- flatten the 16 valid spatial rows into one lane-major (1,1024) row ----
    zrow = jnp.concatenate(
        [z[u * 7 + v:u * 7 + v + 1, :] for u in range(4) for v in range(4)],
        axis=1)                                                       # (1, 1024)

    # ---- fc1 (ONE dot) + ReLU ----
    h = jnp.dot(zrow.astype(bf16), wf1_ref[...], preferred_element_type=f32) + bf1
    h = jnp.maximum(h, 0.0)
    # TODO(synk): nn.Dropout(p=0.5) implemented as identity (inference mode);
    # training-mode stochastic masking is not replicated.

    # ---- fc2 + softmax over 128 lanes (pad lanes biased to -1e30 -> prob ~0) ----
    logits = jnp.dot(h.astype(bf16), wf2_ref[...], preferred_element_type=f32) + bf2
    logits = logits - jnp.max(logits, axis=-1, keepdims=True)
    e = jnp.exp(logits)
    o_ref[0] = e / jnp.sum(e, axis=-1, keepdims=True)                 # exact division


# --------------------- one-time parameter re-layout -------------------------

def prepare_params(params):
    """PyTorch-layout params -> fused kernel layout (bf16 weights), done once."""
    w1, b1, w2, b2, wf1, bf1, wf2, bf2 = [np.asarray(p, np.float32) for p in params]

    # conv1 -> (64, 512): rows = shift o (2x2) x in-block pos (4x4);
    # cols = (pool-window pos slab)*128 + (pool-output parity group)*32 + channel.
    w1big = np.zeros((NK1, 4 * 128), np.float32)
    for o in range(4):
        si, sj = o // 2, o % 2
        for p in range(4):
            for qq in range(4):
                row = o * 16 + p * 4 + qq
                for m in range(4):
                    for n in range(4):
                        ki, kj = si * 4 + p - m, sj * 4 + qq - n
                        if 0 <= ki < 5 and 0 <= kj < 5:
                            col = (((m % 2) * 2 + (n % 2)) * 128
                                   + ((m // 2) * 2 + (n // 2)) * 32)
                            w1big[row, col:col + 20] = w1[:, 0, ki, kj]

    # conv2 -> (1152, 256): rows = shift (si,sj in 0..2) x pool group x channel;
    # cols = output parity e (4) x 64 out-channels.
    w2big = np.zeros((NK2, 4 * C2), np.float32)
    for o in range(9):
        si, sj = o // 3, o % 3
        for g in range(4):
            a, b = g // 2, g % 2
            for e in range(4):
                ei, ej = e // 2, e % 2
                ki, kj = 2 * si + a - ei, 2 * sj + b - ej
                if 0 <= ki < 5 and 0 <= kj < 5:
                    w2big[o * 128 + g * 32:o * 128 + g * 32 + 20,
                          e * C2:e * C2 + 50] = w2[:, :, ki, kj].T

    # fc1 -> (1024, 512): rows = spatial pos (u*4+v)*64 + channel; PyTorch flatten
    # order is (C,H,W), i.e. wf1[j, d*16 + u*4 + v].
    wf1big = np.zeros((NKF, NH), np.float32)
    wf1_4d = wf1.reshape(500, 50, 4, 4)
    for u in range(4):
        for v in range(4):
            pos = u * 4 + v
            wf1big[pos * C2:pos * C2 + 50, :500] = wf1_4d[:, :, u, v].T

    # fc2 -> (512, 128), lane-dense output.
    wf2big = np.zeros((NH, 128), np.float32)
    wf2big[:500, :10] = wf2.T

    # All biases in one (8, 512) f32 slab (one DMA descriptor).
    bias = np.zeros((8, 512), np.float32)
    bias[0, :128] = np.tile(np.pad(b1, (0, 12)), 4)
    bias[1, :50] = b2
    bias[2, :500] = bf1
    bias[3, 10:128] = NEG
    bias[3, :10] = bf2

    bf = jnp.bfloat16
    return (jnp.asarray(w1big, bf), jnp.asarray(w2big, bf),
            jnp.asarray(wf1big, bf), jnp.asarray(wf2big, bf),
            jnp.asarray(bias, jnp.float32))


# ------------------------------ JAX wrapper ---------------------------------

def _prep_input(x):
    """(B,1,28,28) -> (B,48,64) bf16: mod-4 space-to-depth planes in lanes,
    4 shift-offset copies concatenated along lanes (conv1's contraction dim)."""
    B = x.shape[0]
    x2 = x.reshape(B, 28, 28).astype(jnp.float32)
    # xq[b, s*7+t, p*4+q] = x[b, 4s+p, 4t+q]
    xq = x2.reshape(B, 7, 4, 7, 4).transpose(0, 1, 3, 2, 4).reshape(B, 49, 16)
    xs = jnp.pad(xq, ((0, 0), (0, 7), (0, 0)))                        # (B,56,16)
    xcat = jnp.concatenate([xs[:, o:o + 48, :] for o in (0, 1, 7, 8)], axis=2)
    return xcat.astype(jnp.bfloat16)                                  # (B,48,64)


def lenet_forward(x, prep):
    w1big, w2big, wf1big, wf2big, bias = prep
    B = x.shape[0]
    xcat = _prep_input(x)
    const = lambda b: (0, 0)   # weights resident across the batch grid
    out = pl.pallas_call(
        _lenet_kernel,
        out_shape=jax.ShapeDtypeStruct((B, 1, 128), jnp.float32),
        grid=(B,),
        in_specs=[
            pl.BlockSpec((1, 48, 64), lambda b: (b, 0, 0)),   # per-image block
            pl.BlockSpec(w1big.shape, const),
            pl.BlockSpec(w2big.shape, const),
            pl.BlockSpec(wf1big.shape, const),
            pl.BlockSpec(wf2big.shape, const),
            pl.BlockSpec(bias.shape, const),
        ],
        out_specs=pl.BlockSpec((1, 1, 128), lambda b: (b, 0, 0)),
        scratch_shapes=[pltpu.VMEM((48, 128), jnp.float32),     # pooled conv1 map
                        pltpu.VMEM((32, NK2), jnp.bfloat16)],   # conv2 im2col LHS
        compiler_params=pltpu.CompilerParams(
            dimension_semantics=("parallel",)),
    )(xcat, w1big, w2big, wf1big, wf2big, bias)
    return out.reshape(B, 128)[:, :10]


# ------------------------- pure-JAX reference (check) -----------------------

def lenet_reference(x, params):
    w1, b1, w2, b2, wf1, bf1, wf2, bf2 = params
    dn = ('NCHW', 'OIHW', 'NCHW')
    y = jax.lax.conv_general_dilated(x, w1, (1, 1), 'VALID',
                                     dimension_numbers=dn) + b1[None, :, None, None]
    y = jax.lax.reduce_window(y, -jnp.inf, jax.lax.max, (1, 1, 2, 2), (1, 1, 2, 2), 'VALID')
    y = jax.lax.conv_general_dilated(y, w2, (1, 1), 'VALID',
                                     dimension_numbers=dn) + b2[None, :, None, None]
    y = jax.lax.reduce_window(y, -jnp.inf, jax.lax.max, (1, 1, 2, 2), (1, 1, 2, 2), 'VALID')
    f = y.reshape(x.shape[0], -1)                 # per-image (C,H,W) flatten
    h = jnp.maximum(f @ wf1.T + bf1, 0.0)
    return jax.nn.softmax(h @ wf2.T + bf2, axis=1)


def init_params(key):
    ks = jax.random.split(key, 8)

    def u(k, shape, fan_in):
        bound = 1.0 / jnp.sqrt(jnp.float32(fan_in))
        return jax.random.uniform(k, shape, jnp.float32, -bound, bound)

    w1 = u(ks[0], (20, 1, 5, 5), 25)       # conv1.weight
    b1 = u(ks[1], (20,), 25)               # conv1.bias
    w2 = u(ks[2], (50, 20, 5, 5), 500)     # conv2.weight
    b2 = u(ks[3], (50,), 500)              # conv2.bias
    wf1 = u(ks[4], (500, 800), 800)        # fc1.weight
    bf1 = u(ks[5], (500,), 800)            # fc1.bias
    wf2 = u(ks[6], (10, 500), 500)         # fc2.weight
    bf2 = u(ks[7], (10,), 500)             # fc2.bias
    return (w1, b1, w2, b2, wf1, bf1, wf2, bf2)


if __name__ == "__main__":
    key = jax.random.PRNGKey(0)
    pkey, xkey = jax.random.split(key)
    params = init_params(pkey)
    prep = prepare_params(params)          # one-time weight re-layout (not traced)

    B = 8
    x = jax.random.normal(xkey, (B, 1, 28, 28), jnp.float32)

    fwd = jax.jit(lenet_forward)
    out = jax.block_until_ready(fwd(x, prep))

    # Reference 1: same bf16-rounded weights/input, f32 activations (isolates
    # kernel/layout errors from the deliberate bf16 weight quantization).
    rnd = lambda w: jnp.asarray(w, jnp.bfloat16).astype(jnp.float32)
    params_q = (rnd(params[0]), params[1], rnd(params[2]), params[3],
                rnd(params[4]), params[5], rnd(params[6]), params[7])
    ref_q = jax.block_until_ready(lenet_reference(rnd(x), params_q))
    # Reference 2: the true full-f32 module.
    ref_full = jax.block_until_ready(lenet_reference(x, params))

    assert out.shape == (B, 10)
    assert bool(jnp.all(jnp.isfinite(out)))
    assert bool(jnp.all(jnp.abs(jnp.sum(out, axis=1) - 1.0) < 1e-3))
    assert bool(jnp.allclose(out, ref_q, atol=3e-3, rtol=0.0)), (out, ref_q)
    assert bool(jnp.allclose(out, ref_full, atol=1e-2, rtol=0.0)), (out, ref_full)
    print("KERNEL_OK")
</pallas_src>

<mosaic_0001>
module attributes {stable_mosaic.version = 11 : i64} {
  func.func @_lenet_kernel(%arg0: i32, %arg1: memref<1x48x64xbf16, #tpu.memory_space<vmem>>, %arg2: memref<64x512xbf16, #tpu.memory_space<vmem>>, %arg3: memref<1152x256xbf16, #tpu.memory_space<vmem>>, %arg4: memref<1024x512xbf16, #tpu.memory_space<vmem>>, %arg5: memref<512x128xbf16, #tpu.memory_space<vmem>>, %arg6: memref<8x512xf32, #tpu.memory_space<vmem>>, %arg7: memref<1x1x128xf32, #tpu.memory_space<vmem>>, %arg8: memref<48x128xf32, #tpu.memory_space<vmem>>, %arg9: memref<32x1152xbf16, #tpu.memory_space<vmem>>) attributes {dimension_semantics = [#tpu.dimension_semantics<parallel>], iteration_bounds = array<i64: 8>, scalar_prefetch = 0 : i64, scratch_operands = 2 : i64, tpu.core_type = #tpu.core_type<tc>, window_params = [{transform_indices = @transform_0, window_bounds = array<i64: 1, 48, 64>}, {pipeline_mode = #tpu.pipeline_mode<synchronous>, transform_indices = @transform_1, window_bounds = array<i64: 64, 512>}, {pipeline_mode = #tpu.pipeline_mode<synchronous>, transform_indices = @transform_2, window_bounds = array<i64: 1152, 256>}, {pipeline_mode = #tpu.pipeline_mode<synchronous>, transform_indices = @transform_3, window_bounds = array<i64: 1024, 512>}, {pipeline_mode = #tpu.pipeline_mode<synchronous>, transform_indices = @transform_4, window_bounds = array<i64: 512, 128>}, {pipeline_mode = #tpu.pipeline_mode<synchronous>, transform_indices = @transform_5, window_bounds = array<i64: 8, 512>}, {transform_indices = @transform_6, window_bounds = array<i64: 1, 1, 128>}]} {
    %c0 = arith.constant 0 : index
    %c0_0 = arith.constant 0 : index
    %0 = vector.load %arg6[%c0, %c0_0] : memref<8x512xf32, #tpu.memory_space<vmem>>, vector<8x512xf32>
    %1 = vector.extract_strided_slice %0 {offsets = [0, 0], sizes = [1, 128], strides = [1, 1]} : vector<8x512xf32> to vector<1x128xf32>
    %2 = vector.extract_strided_slice %0 {offsets = [1, 0], sizes = [1, 64], strides = [1, 1]} : vector<8x512xf32> to vector<1x64xf32>
    %3 = vector.extract_strided_slice %0 {offsets = [2, 0], sizes = [1, 512], strides = [1, 1]} : vector<8x512xf32> to vector<1x512xf32>
    %4 = vector.extract_strided_slice %0 {offsets = [3, 0], sizes = [1, 128], strides = [1, 1]} : vector<8x512xf32> to vector<1x128xf32>
    %c0_1 = arith.constant 0 : index
    %c0_2 = arith.constant 0 : index
    %c0_3 = arith.constant 0 : index
    %5 = vector.load %arg1[%c0_1, %c0_2, %c0_3] : memref<1x48x64xbf16, #tpu.memory_space<vmem>>, vector<1x48x64xbf16>
    %6 = vector.shape_cast %5 : vector<1x48x64xbf16> to vector<48x64xbf16>
    %c0_4 = arith.constant 0 : index
    %c0_5 = arith.constant 0 : index
    %7 = vector.load %arg2[%c0_4, %c0_5] : memref<64x512xbf16, #tpu.memory_space<vmem>>, vector<64x512xbf16>
    %cst = arith.constant dense<0.000000e+00> : vector<48x512xf32>
    %8 = tpu.matmul %6, %7, %cst {dimension_numbers = #tpu.dot_dimension_numbers<[1], [0], [0], [1], [0, 0, 1, 1], [], []>} : vector<48x64xbf16>, vector<64x512xbf16>, vector<48x512xf32> -> vector<48x512xf32>
    %9 = vector.extract_strided_slice %8 {offsets = [0, 0], sizes = [48, 128], strides = [1, 1]} : vector<48x512xf32> to vector<48x128xf32>
    %10 = vector.extract_strided_slice %8 {offsets = [0, 128], sizes = [48, 128], strides = [1, 1]} : vector<48x512xf32> to vector<48x128xf32>
    %11 = arith.maximumf %9, %10 : vector<48x128xf32>
    %12 = vector.extract_strided_slice %8 {offsets = [0, 256], sizes = [48, 128], strides = [1, 1]} : vector<48x512xf32> to vector<48x128xf32>
    %13 = vector.extract_strided_slice %8 {offsets = [0, 384], sizes = [48, 128], strides = [1, 1]} : vector<48x512xf32> to vector<48x128xf32>
    %14 = arith.maximumf %12, %13 : vector<48x128xf32>
    %15 = arith.maximumf %11, %14 : vector<48x128xf32>
    %16 = vector.broadcast %1 : vector<1x128xf32> to vector<48x128xf32>
    %17 = arith.addf %15, %16 : vector<48x128xf32>
    %c0_6 = arith.constant 0 : index
    %c0_7 = arith.constant 0 : index
    %18 = vector.load %arg8[%c0_6, %c0_7] : memref<48x128xf32, #tpu.memory_space<vmem>>, vector<48x128xf32>
    tpu.vector_store %arg8[%c0_6, %c0_7], %17 {strides = array<i32>} : memref<48x128xf32, #tpu.memory_space<vmem>>, vector<48x128xf32>,
    %c0_8 = arith.constant 0 : index
    %c0_9 = arith.constant 0 : index
    %19 = vector.load %arg8[%c0_8, %c0_9] : memref<48x128xf32, #tpu.memory_space<vmem>>, vector<32x128xf32>
    %20 = arith.truncf %19 : vector<32x128xf32> to vector<32x128xbf16>
    %c0_10 = arith.constant 0 : index
    %c0_11 = arith.constant 0 : index
    %21 = vector.load %arg9[%c0_10, %c0_11] : memref<32x1152xbf16, #tpu.memory_space<vmem>>, vector<32x128xbf16>
    tpu.vector_store %arg9[%c0_10, %c0_11], %20 {strides = array<i32>} : memref<32x1152xbf16, #tpu.memory_space<vmem>>, vector<32x128xbf16>,
    %c1 = arith.constant 1 : index
    %c0_12 = arith.constant 0 : index
    %22 = vector.load %arg8[%c1, %c0_12] : memref<48x128xf32, #tpu.memory_space<vmem>>, vector<32x128xf32>
    %23 = arith.truncf %22 : vector<32x128xf32> to vector<32x128xbf16>
    %c0_13 = arith.constant 0 : index
    %c128 = arith.constant 128 : index
    %24 = vector.load %arg9[%c0_13, %c128] : memref<32x1152xbf16, #tpu.memory_space<vmem>>, vector<32x128xbf16>
    tpu.vector_store %arg9[%c0_13, %c128], %23 {strides = array<i32>} : memref<32x1152xbf16, #tpu.memory_space<vmem>>, vector<32x128xbf16>,
    %c2 = arith.constant 2 : index
    %c0_14 = arith.constant 0 : index
    %25 = vector.load %arg8[%c2, %c0_14] : memref<48x128xf32, #tpu.memory_space<vmem>>, vector<32x128xf32>
    %26 = arith.truncf %25 : vector<32x128xf32> to vector<32x128xbf16>
    %c0_15 = arith.constant 0 : index
    %c256 = arith.constant 256 : index
    %27 = vector.load %arg9[%c0_15, %c256] : memref<32x1152xbf16, #tpu.memory_space<vmem>>, vector<32x128xbf16>
    tpu.vector_store %arg9[%c0_15, %c256], %26 {strides = array<i32>} : memref<32x1152xbf16, #tpu.memory_space<vmem>>, vector<32x128xbf16>,
    %c7 = arith.constant 7 : index
    %c0_16 = arith.constant 0 : index
    %28 = vector.load %arg8[%c7, %c0_16] : memref<48x128xf32, #tpu.memory_space<vmem>>, vector<32x128xf32>
    %29 = arith.truncf %28 : vector<32x128xf32> to vector<32x128xbf16>
    %c0_17 = arith.constant 0 : index
    %c384 = arith.constant 384 : index
    %30 = vector.load %arg9[%c0_17, %c384] : memref<32x1152xbf16, #tpu.memory_space<vmem>>, vector<32x128xbf16>
    tpu.vector_store %arg9[%c0_17, %c384], %29 {strides = array<i32>} : memref<32x1152xbf16, #tpu.memory_space<vmem>>, vector<32x128xbf16>,
    %c8 = arith.constant 8 : index
    %c0_18 = arith.constant 0 : index
    %31 = vector.load %arg8[%c8, %c0_18] : memref<48x128xf32, #tpu.memory_space<vmem>>, vector<32x128xf32>
    %32 = arith.truncf %31 : vector<32x128xf32> to vector<32x128xbf16>
    %c0_19 = arith.constant 0 : index
    %c512 = arith.constant 512 : index
    %33 = vector.load %arg9[%c0_19, %c512] : memref<32x1152xbf16, #tpu.memory_space<vmem>>, vector<32x128xbf16>
    tpu.vector_store %arg9[%c0_19, %c512], %32 {strides = array<i32>} : memref<32x1152xbf16, #tpu.memory_space<vmem>>, vector<32x128xbf16>,
    %c9 = arith.constant 9 : index
    %c0_20 = arith.constant 0 : index
    %34 = vector.load %arg8[%c9, %c0_20] : memref<48x128xf32, #tpu.memory_space<vmem>>, vector<32x128xf32>
    %35 = arith.truncf %34 : vector<32x128xf32> to vector<32x128xbf16>
    %c0_21 = arith.constant 0 : index
    %c640 = arith.constant 640 : index
    %36 = vector.load %arg9[%c0_21, %c640] : memref<32x1152xbf16, #tpu.memory_space<vmem>>, vector<32x128xbf16>
    tpu.vector_store %arg9[%c0_21, %c640], %35 {strides = array<i32>} : memref<32x1152xbf16, #tpu.memory_space<vmem>>, vector<32x128xbf16>,
    %c14 = arith.constant 14 : index
    %c0_22 = arith.constant 0 : index
    %37 = vector.load %arg8[%c14, %c0_22] : memref<48x128xf32, #tpu.memory_space<vmem>>, vector<32x128xf32>
    %38 = arith.truncf %37 : vector<32x128xf32> to vector<32x128xbf16>
    %c0_23 = arith.constant 0 : index
    %c768 = arith.constant 768 : index
    %39 = vector.load %arg9[%c0_23, %c768] : memref<32x1152xbf16, #tpu.memory_space<vmem>>, vector<32x128xbf16>
    tpu.vector_store %arg9[%c0_23, %c768], %38 {strides = array<i32>} : memref<32x1152xbf16, #tpu.memory_space<vmem>>, vector<32x128xbf16>,
    %c15 = arith.constant 15 : index
    %c0_24 = arith.constant 0 : index
    %40 = vector.load %arg8[%c15, %c0_24] : memref<48x128xf32, #tpu.memory_space<vmem>>, vector<32x128xf32>
    %41 = arith.truncf %40 : vector<32x128xf32> to vector<32x128xbf16>
    %c0_25 = arith.constant 0 : index
    %c896 = arith.constant 896 : index
    %42 = vector.load %arg9[%c0_25, %c896] : memref<32x1152xbf16, #tpu.memory_space<vmem>>, vector<32x128xbf16>
    tpu.vector_store %arg9[%c0_25, %c896], %41 {strides = array<i32>} : memref<32x1152xbf16, #tpu.memory_space<vmem>>, vector<32x128xbf16>,
    %c16 = arith.constant 16 : index
    %c0_26 = arith.constant 0 : index
    %43 = vector.load %arg8[%c16, %c0_26] : memref<48x128xf32, #tpu.memory_space<vmem>>, vector<32x128xf32>
    %44 = arith.truncf %43 : vector<32x128xf32> to vector<32x128xbf16>
    %c0_27 = arith.constant 0 : index
    %c1024 = arith.constant 1024 : index
    %45 = vector.load %arg9[%c0_27, %c1024] : memref<32x1152xbf16, #tpu.memory_space<vmem>>, vector<32x128xbf16>
    tpu.vector_store %arg9[%c0_27, %c1024], %44 {strides = array<i32>} : memref<32x1152xbf16, #tpu.memory_space<vmem>>, vector<32x128xbf16>,
    %c0_28 = arith.constant 0 : index
    %c0_29 = arith.constant 0 : index
    %46 = vector.load %arg9[%c0_28, %c0_29] : memref<32x1152xbf16, #tpu.memory_space<vmem>>, vector<32x1152xbf16>
    %c0_30 = arith.constant 0 : index
    %c0_31 = arith.constant 0 : index
    %47 = vector.load %arg3[%c0_30, %c0_31] : memref<1152x256xbf16, #tpu.memory_space<vmem>>, vector<1152x256xbf16>
    %cst_32 = arith.constant dense<0.000000e+00> : vector<32x256xf32>
    %48 = tpu.matmul %46, %47, %cst_32 {dimension_numbers = #tpu.dot_dimension_numbers<[1], [0], [0], [1], [0, 0, 1, 1], [], []>} : vector<32x1152xbf16>, vector<1152x256xbf16>, vector<32x256xf32> -> vector<32x256xf32>
    %49 = vector.extract_strided_slice %48 {offsets = [0, 0], sizes = [32, 64], strides = [1, 1]} : vector<32x256xf32> to vector<32x64xf32>
    %50 = vector.extract_strided_slice %48 {offsets = [0, 64], sizes = [32, 64], strides = [1, 1]} : vector<32x256xf32> to vector<32x64xf32>
    %51 = arith.maximumf %49, %50 : vector<32x64xf32>
    %52 = vector.extract_strided_slice %48 {offsets = [0, 128], sizes = [32, 64], strides = [1, 1]} : vector<32x256xf32> to vector<32x64xf32>
    %53 = vector.extract_strided_slice %48 {offsets = [0, 192], sizes = [32, 64], strides = [1, 1]} : vector<32x256xf32> to vector<32x64xf32>
    %54 = arith.maximumf %52, %53 : vector<32x64xf32>
    %55 = arith.maximumf %51, %54 : vector<32x64xf32>
    %56 = vector.broadcast %2 : vector<1x64xf32> to vector<32x64xf32>
    %57 = arith.addf %55, %56 : vector<32x64xf32>
    %58 = vector.extract_strided_slice %57 {offsets = [0, 0], sizes = [1, 64], strides = [1, 1]} : vector<32x64xf32> to vector<1x64xf32>
    %59 = vector.extract_strided_slice %57 {offsets = [1, 0], sizes = [1, 64], strides = [1, 1]} : vector<32x64xf32> to vector<1x64xf32>
    %60 = vector.extract_strided_slice %57 {offsets = [2, 0], sizes = [1, 64], strides = [1, 1]} : vector<32x64xf32> to vector<1x64xf32>
    %61 = vector.extract_strided_slice %57 {offsets = [3, 0], sizes = [1, 64], strides = [1, 1]} : vector<32x64xf32> to vector<1x64xf32>
    %62 = vector.extract_strided_slice %57 {offsets = [7, 0], sizes = [1, 64], strides = [1, 1]} : vector<32x64xf32> to vector<1x64xf32>
    %63 = vector.extract_strided_slice %57 {offsets = [8, 0], sizes = [1, 64], strides = [1, 1]} : vector<32x64xf32> to vector<1x64xf32>
    %64 = vector.extract_strided_slice %57 {offsets = [9, 0], sizes = [1, 64], strides = [1, 1]} : vector<32x64xf32> to vector<1x64xf32>
    %65 = vector.extract_strided_slice %57 {offsets = [10, 0], sizes = [1, 64], strides = [1, 1]} : vector<32x64xf32> to vector<1x64xf32>
    %66 = vector.extract_strided_slice %57 {offsets = [14, 0], sizes = [1, 64], strides = [1, 1]} : vector<32x64xf32> to vector<1x64xf32>
    %67 = vector.extract_strided_slice %57 {offsets = [15, 0], sizes = [1, 64], strides = [1, 1]} : vector<32x64xf32> to vector<1x64xf32>
    %68 = vector.extract_strided_slice %57 {offsets = [16, 0], sizes = [1, 64], strides = [1, 1]} : vector<32x64xf32> to vector<1x64xf32>
    %69 = vector.extract_strided_slice %57 {offsets = [17, 0], sizes = [1, 64], strides = [1, 1]} : vector<32x64xf32> to vector<1x64xf32>
    %70 = vector.extract_strided_slice %57 {offsets = [21, 0], sizes = [1, 64], strides = [1, 1]} : vector<32x64xf32> to vector<1x64xf32>
    %71 = vector.extract_strided_slice %57 {offsets = [22, 0], sizes = [1, 64], strides = [1, 1]} : vector<32x64xf32> to vector<1x64xf32>
    %72 = vector.extract_strided_slice %57 {offsets = [23, 0], sizes = [1, 64], strides = [1, 1]} : vector<32x64xf32> to vector<1x64xf32>
    %73 = vector.extract_strided_slice %57 {offsets = [24, 0], sizes = [1, 64], strides = [1, 1]} : vector<32x64xf32> to vector<1x64xf32>
    %74 = tpu.concatenate %58, %59, %60, %61, %62, %63, %64, %65, %66, %67, %68, %69, %70, %71, %72, %73 in 1 : vector<1x64xf32>, vector<1x64xf32>, vector<1x64xf32>, vector<1x64xf32>, vector<1x64xf32>, vector<1x64xf32>, vector<1x64xf32>, vector<1x64xf32>, vector<1x64xf32>, vector<1x64xf32>, vector<1x64xf32>, vector<1x64xf32>, vector<1x64xf32>, vector<1x64xf32>, vector<1x64xf32>, vector<1x64xf32> -> vector<1x1024xf32>
    %75 = arith.truncf %74 : vector<1x1024xf32> to vector<1x1024xbf16>
    %c0_33 = arith.constant 0 : index
    %c0_34 = arith.constant 0 : index
    %76 = vector.load %arg4[%c0_33, %c0_34] : memref<1024x512xbf16, #tpu.memory_space<vmem>>, vector<1024x512xbf16>
    %cst_35 = arith.constant dense<0.000000e+00> : vector<1x512xf32>
    %77 = tpu.matmul %75, %76, %cst_35 {dimension_numbers = #tpu.dot_dimension_numbers<[1], [0], [0], [1], [0, 0, 1, 1], [], []>} : vector<1x1024xbf16>, vector<1024x512xbf16>, vector<1x512xf32> -> vector<1x512xf32>
    %78 = arith.addf %77, %3 : vector<1x512xf32>
    %cst_36 = arith.constant 0.000000e+00 : f32
    %79 = vector.broadcast %cst_36 : f32 to vector<1x512xf32>
    %80 = arith.maximumf %78, %79 : vector<1x512xf32>
    %81 = arith.truncf %80 : vector<1x512xf32> to vector<1x512xbf16>
    %c0_37 = arith.constant 0 : index
    %c0_38 = arith.constant 0 : index
    %82 = vector.load %arg5[%c0_37, %c0_38] : memref<512x128xbf16, #tpu.memory_space<vmem>>, vector<512x128xbf16>
    %cst_39 = arith.constant dense<0.000000e+00> : vector<1x128xf32>
    %83 = tpu.matmul %81, %82, %cst_39 {dimension_numbers = #tpu.dot_dimension_numbers<[1], [0], [0], [1], [0, 0, 1, 1], [], []>} : vector<1x512xbf16>, vector<512x128xbf16>, vector<1x128xf32> -> vector<1x128xf32>
    %84 = arith.addf %83, %4 : vector<1x128xf32>
    %cst_40 = arith.constant dense<0xFF800000> : vector<1xf32>
    %85 = vector.multi_reduction <maximumf>, %84, %cst_40 [1] : vector<1x128xf32> to vector<1xf32>
    %86 = vector.shape_cast %85 : vector<1xf32> to vector<1x1xf32>
    %87 = vector.broadcast %86 : vector<1x1xf32> to vector<1x128xf32>
    %88 = arith.subf %84, %87 : vector<1x128xf32>
    %89 = math.exp %88 : vector<1x128xf32>
    %cst_41 = arith.constant dense<0.000000e+00> : vector<1xf32>
    %90 = vector.multi_reduction <add>, %89, %cst_41 [1] : vector<1x128xf32> to vector<1xf32>
    %91 = vector.shape_cast %90 : vector<1xf32> to vector<1x1xf32>
    %92 = vector.broadcast %91 : vector<1x1xf32> to vector<1x128xf32>
    %93 = arith.divf %89, %92 : vector<1x128xf32>
    %c0_42 = arith.constant 0 : index
    %c0_43 = arith.constant 0 : index
    %c0_44 = arith.constant 0 : index
    %94 = vector.load %arg7[%c0_42, %c0_43, %c0_44] : memref<1x1x128xf32, #tpu.memory_space<vmem>>, vector<1x1x128xf32>
    %95 = vector.shape_cast %94 : vector<1x1x128xf32> to vector<1x128xf32>
    %96 = vector.shape_cast %93 : vector<1x128xf32> to vector<1x1x128xf32>
    tpu.vector_store %arg7[%c0_42, %c0_43, %c0_44], %96 {strides = array<i32>} : memref<1x1x128xf32, #tpu.memory_space<vmem>>, vector<1x1x128xf32>,
    return
  }
  func.func @transform_0(%arg0: i32) -> (i32, i32, i32) {
    %c0_i32 = arith.constant 0 : i32
    %c0_i32_0 = arith.constant 0 : i32
    %c0_i32_1 = arith.constant 0 : i32
    return %arg0, %c0_i32, %c0_i32_0 : i32, i32, i32
  }
  func.func @transform_1(%arg0: i32) -> (i32, i32) {
    %c0_i32 = arith.constant 0 : i32
    %c0_i32_0 = arith.constant 0 : i32
    %c0_i32_1 = arith.constant 0 : i32
    return %c0_i32, %c0_i32_0 : i32, i32
  }
  func.func @transform_2(%arg0: i32) -> (i32, i32) {
    %c0_i32 = arith.constant 0 : i32
    %c0_i32_0 = arith.constant 0 : i32
    %c0_i32_1 = arith.constant 0 : i32
    return %c0_i32, %c0_i32_0 : i32, i32
  }
  func.func @transform_3(%arg0: i32) -> (i32, i32) {
    %c0_i32 = arith.constant 0 : i32
    %c0_i32_0 = arith.constant 0 : i32
    %c0_i32_1 = arith.constant 0 : i32
    return %c0_i32, %c0_i32_0 : i32, i32
  }
  func.func @transform_4(%arg0: i32) -> (i32, i32) {
    %c0_i32 = arith.constant 0 : i32
    %c0_i32_0 = arith.constant 0 : i32
    %c0_i32_1 = arith.constant 0 : i32
    return %c0_i32, %c0_i32_0 : i32, i32
  }
  func.func @transform_5(%arg0: i32) -> (i32, i32) {
    %c0_i32 = arith.constant 0 : i32
    %c0_i32_0 = arith.constant 0 : i32
    %c0_i32_1 = arith.constant 0 : i32
    return %c0_i32, %c0_i32_0 : i32, i32
  }
  func.func @transform_6(%arg0: i32) -> (i32, i32, i32) {
    %c0_i32 = arith.constant 0 : i32
    %c0_i32_0 = arith.constant 0 : i32
    %c0_i32_1 = arith.constant 0 : i32
    return %arg0, %c0_i32, %c0_i32_0 : i32, i32, i32
  }
}

</mosaic_0001>

<bundles_post_ra>
// kernel: lenet_forward.1
= control target key start
LH: loop header
LB: loop body
LE: loop exit
PB: predicated region body
PF: predicated region fallthrough
CT: control target
= control target key end

     0   :  { %11 = vsyncpa [#allocation5], 0  ;;  %s9965_s0 = inlined_call_operand.vmem [shape: bf16[8,48,64], index: 0, kind: input, shape index: {}]   ;;  %s9966_s1 = inlined_call_operand.vmem [shape: bf16[64,512], index: 1, kind: input, shape index: {}]   ;;  %s9967_s2 = inlined_call_operand.vmem [shape: bf16[1152,256], index: 2, kind: input, shape index: {}]   ;;  %s9968_s3 = inlined_call_operand.vmem [shape: bf16[1024,512], index: 3, kind: input, shape index: {}]   ;;  %s9969_s4 = inlined_call_operand.vmem [shape: bf16[512,128], index: 4, kind: input, shape index: {}]   ;;  %s9970_s5 = inlined_call_operand.vmem [shape: f32[8,512], index: 5, kind: input, shape index: {}]   ;;  %s9971_s6 = inlined_call_operand.hbm [shape: f32[8,1,128], index: 6, kind: output, shape index: {}]  }
   0x1   :  { %13 = vsyncpa [#allocation5 + $0x1], 0  ;;  %s6960_s21 = smov 0   ;;  %s6962_s22 = smov 0  }
   0x2   :  { %s6964_s23 = smov 0   ;;  %s6966_s24 = smov 0  }
   0x3 LB: > { %s6981_s25 = sadd.s32 4294967295, %s6922_s24   ;;  %s4421_s26 = sadd.s32 4294967294, %s6922_s24   ;;  %s6922_s24 = sphi %s6966_s24, %s9977_s24   ;;  %s6918_s23 = sphi %s6964_s23, %s9976_s23   ;;  %s6914_s22 = sphi %s6962_s22, %s9975_s22   ;;  %s6910_s21 = sphi %s6960_s21, %s9974_s21  }
   0x4   : > { %s6985_s27 = sadd.s32 1, %s6922_s24   ;;  %s157_s28 = sadd.s32 1, %s6918_s23 }
   0x5   : > { %s154_s29 = ssub.s32 %s6922_s24, %s6985_s27  ;;  %p167_p0 = scmp.ne.s32.totalorder %s6918_s23, %s6914_s22 }
   0x6   : > { %p155_p1 = scmp.eq.s32.totalorder %s154_s29, 0  ;;  %p168_p2 = scmp.eq.s32.totalorder %s6981_s25, 7 }
   0x7   : > { %p173_p3 = scmp.ne.s32.totalorder %s6914_s22, %s6910_s21  ;;  %p174_p4 = scmp.eq.s32.totalorder %s4421_s26, 7 }
   0x8   : > { %s6996_s30 = scalar_select %p155_p1, %s6918_s23, %s157_s28  }
   0x9   : > { %p6998_p5 = por %p168_p2, %p167_p0  ;;  %p7002_p6 = por %p174_p4, %p173_p3 }
   0xa   : > { %p4424_p7 = scmp.ge.s32.totalorder %s6922_s24, 1  ;;  %p215_p8 = scmp.lt.s32.totalorder %s6922_s24, 9 }
   0xc   : > { %p216_p9 = pnand %p4424_p7, %p215_p8 }
   0xd   : > { %p244_p10 = scmp.lt.s32.totalorder (!%p216_p9), %s6981_s25, 7  ;;  %s6924_s13 = smov (!%p216_p9), 64  }
   0xe   : > { %219 = sbr.rel (%p216_p9) target bundleno = 1464 (0x5b8), region = 44  ;;  %s4362_s14 = scalar_lea.hbm (!%p216_p9), %s9971_s6, %s6981_s25 }
   0xf   : > { %s4366_s16 = sshll.u32 (!%p216_p9), %s4362_s14, 4  ;;  %s4367_s16 = int_to_ptr.hbm [resolvable:$true] %s4366_s16 }
  0x10   : > { %s6874_s18 = sshra.s32 (!%p216_p9), %s4367_s16, 4  ;;  %s6875_s18 = int_to_ptr.hbm [resolvable:$true] %s6874_s18 }
  0x11   : > { %s6876_s19 = scalar_lea.hbm (!%p216_p9), %s6875_s18, 1  ;;  %p6881_p0 = scmp.lt.s32.totalorder (!%p216_p9), %s6875_s18, %s9971_s6 }
  0x12   : > { %p6877_p11 = scmp.ne.s32.totalorder (!%p216_p9), %s6875_s18, %s6876_s19 }
  0x13   : > { %v4488_v0 = vld [vmem:[%s9966_s1 + $0x60] sm:$0xf]  ;;  %v6333_v1 = vld [vmem:[%s9966_s1 + $0x6c] sm:$0xf0]  ;;  %v6331_v2 = vld [vmem:[%s9966_s1 + $0x64] sm:$0xf] }
  0x14   : > { %v4489_v3 = vor.u32 %v6333_v1, %v4488_v0  ;;  %v4490_v4 = vld [vmem:[%s9966_s1 + $0x70] sm:$0xf0]  ;;  %v4472_v5 = vld [vmem:[%s9966_s1 + $0x40] sm:$0xf]  ;;  %v6329_v6 = vld [vmem:[%s9966_s1 + $0x4c] sm:$0xf0]  ;;  %p6878_p12 = pnand %p6877_p11, %p6998_p5 }
  0x15   : > { %v4493_v7 = vor.u32 %v6331_v2, %v4490_v4  ;;  %v6327_v8 = vld [vmem:[%s9966_s1 + $0x44] sm:$0xf]  ;;  %v4474_v9 = vld [vmem:[%s9966_s1 + $0x50] sm:$0xf0]  ;;  %v4473_v10 = vor.u32 %v6329_v6, %v4472_v5  ;;  %v4456_v12 = vld [vmem:[%s9966_s1 + $0x20] sm:$0xf] }
  0x16   : > { %6785 = vmatpush.bf16.msra.mxu2 %v4489_v3  ;;  %385 = vmatpush.bf16.msra.mxu0 %v4489_v3  ;;  %v4477_v11 = vor.u32 %v6327_v8, %v4474_v9  ;;  %v6325_v13 = vld [vmem:[%s9966_s1 + $0x2c] sm:$0xf0]  ;;  %v6323_v14 = vld [vmem:[%s9966_s1 + $0x24] sm:$0xf]  ;;  %v4458_v15 = vld [vmem:[%s9966_s1 + $0x30] sm:$0xf0]  ;;  %p6879_p13 = pneg %p6878_p12 }
  0x17   : > { %6789 = vmatpush.bf16.msra.mxu3 %v4493_v7  ;;  %409 = vmatpush.bf16.msra.mxu1 %v4493_v7  ;;  %v4457_v16 = vor.u32 %v6325_v13, %v4456_v12  ;;  %v4440_v17 = vld [vmem:[%s9966_s1] sm:$0xf]  ;;  %s245_s20 = scalar_select %p244_p10, %s6981_s25, 7  ;;  %v4461_v18 = vor.u32 %v6323_v14, %v4458_v15  ;;  %v6321_v19 = vld [vmem:[%s9966_s1 + $0xc] sm:$0xf0]  ;;  %vm371_vm0 = vcmask 523264  }
  0x18   : > { %v6319_v20 = vld [vmem:[%s9966_s1 + $0x4] sm:$0xf]  ;;  %v4442_v21 = vld [vmem:[%s9966_s1 + $0x10] sm:$0xf0]  ;;  %v4496_v22 = vld [vmem:[%s9966_s1 + $0x68] sm:$0xf]  ;;  %v4441_v26 = vor.u32 %v6321_v19, %v4440_v17 }
  0x19   : > { %s6793_s12 = smul.u32 24, %s245_s20  ;;  %v6334_v23 = vld [vmem:[%s9966_s1 + $0x74] sm:$0xf0]  ;;  %v6332_v24 = vld [vmem:[%s9966_s1 + $0x6c] sm:$0xf]  ;;  %v4445_v27 = vor.u32 %v6319_v20, %v4442_v21  ;;  %vm4327_vm1 = vcmask 1040384  }
  0x1a   : > { %6786 = vmatpush.bf16.msra.mxu2 %v4473_v10  ;;  %386 = vmatpush.bf16.msra.mxu0 %v4473_v10  ;;  %v4498_v25 = vld [vmem:[%s9966_s1 + $0x78] sm:$0xf0]  ;;  %v4497_v28 = vor.u32 %v6334_v23, %v4496_v22  ;;  %v4480_v30 = vld [vmem:[%s9966_s1 + $0x48] sm:$0xf]  ;;  %v6330_v31 = vld [vmem:[%s9966_s1 + $0x54] sm:$0xf0] }
  0x1b   : > { %6790 = vmatpush.bf16.msra.mxu3 %v4477_v11  ;;  %410 = vmatpush.bf16.msra.mxu1 %v4477_v11  ;;  %s7073_s29 = scalar_lea.vmem %s9965_s0, %s6793_s12  ;;  %v4501_v29 = vor.u32 %v6332_v24, %v4498_v25  ;;  %v6328_v32 = vld [vmem:[%s9966_s1 + $0x4c] sm:$0xf]  ;;  %v4482_v34 = vld [vmem:[%s9966_s1 + $0x58] sm:$0xf0]  ;;  %v4481_v36 = vor.u32 %v6330_v31, %v4480_v30  ;;  %v4464_v38 = vld [vmem:[%s9966_s1 + $0x28] sm:$0xf] }
  0x1c   : > { %v6318_v33 = vld [vmem:[%s7073_s29 + $0x10] sm:$0xff]  ;;  %v6316_v35 = vld [vmem:[%s7073_s29] sm:$0xff]  ;;  %v4485_v37 = vor.u32 %v6328_v32, %v4482_v34  ;;  %v6326_v39 = vld [vmem:[%s9966_s1 + $0x34] sm:$0xf0] }
  0x1d   : > { %v6324_v40 = vld [vmem:[%s9966_s1 + $0x2c] sm:$0xf]  ;;  %v4466_v41 = vld [vmem:[%s9966_s1 + $0x38] sm:$0xf0]  ;;  %v4465_v42 = vor.u32 %v6326_v39, %v4464_v38  ;;  %v4448_v44 = vld [vmem:[%s9966_s1 + $0x8] sm:$0xf] }
  0x1e   : > { %6787 = vmatpush.bf16.msra.mxu2 %v4457_v16  ;;  %387 = vmatpush.bf16.msra.mxu0 %v4457_v16  ;;  %v4469_v43 = vor.u32 %v6324_v40, %v4466_v41  ;;  %v6322_v45 = vld [vmem:[%s9966_s1 + $0x14] sm:$0xf0]  ;;  %v6320_v46 = vld [vmem:[%s9966_s1 + $0xc] sm:$0xf]  ;;  %v4450_v47 = vld [vmem:[%s9966_s1 + $0x18] sm:$0xf0] }
  0x1f   : > { %6791 = vmatpush.bf16.msra.mxu3 %v4461_v18  ;;  %411 = vmatpush.bf16.msra.mxu1 %v4461_v18  ;;  %v4449_v48 = vor.u32 %v6322_v45, %v4448_v44  ;;  %v4453_v49 = vor.u32 %v6320_v46, %v4450_v47  ;;  %v6317_v50 = vld [vmem:[%s7073_s29 + $0x8] sm:$0xff]  ;;  %v4644_v51 = vld [vmem:[%s9967_s2 + $0x70] sm:$0xf]  ;;  %v6368_v52 = vld [vmem:[%s9967_s2 + $0x74] sm:$0xf0]  ;;  %s6880_s29 = scalar_lea.hbm %s9971_s6, 8 }
  0x20   : > { %v4645_v53 = vor.u32 %v6368_v52, %v4644_v51  ;;  %v4636_v54 = vld [vmem:[%s9967_s2 + $0x60] sm:$0xf]  ;;  %v6366_v55 = vld [vmem:[%s9967_s2 + $0x64] sm:$0xf0]  ;;  %v4628_v57 = vld [vmem:[%s9967_s2 + $0x50] sm:$0xf]  ;;  %p6882_p1 = scmp.lt.s32.totalorder %s6880_s29, %s6876_s19 }
  0x21   : > { %v4637_v56 = vor.u32 %v6366_v55, %v4636_v54  ;;  %v6364_v58 = vld [vmem:[%s9967_s2 + $0x54] sm:$0xf0]  ;;  %v4708_v60 = vld [vmem:[%s9967_s2 + $0xf0] sm:$0xf]  ;;  %v4620_v5 = vld [vmem:[%s9967_s2 + $0x40] sm:$0xf] }
  0x22   : > { %6788 = vmatpush.bf16.msra.mxu2 %v4441_v26  ;;  %388 = vmatpush.bf16.msra.mxu0 %v4441_v26  ;;  %v4629_v59 = vor.u32 %v6364_v58, %v4628_v57  ;;  %v6384_v61 = vld [vmem:[%s9967_s2 + $0xf4] sm:$0xf0]  ;;  %v4772_v62 = vld [vmem:[%s9967_s2 + $0x170] sm:$0xf]  ;;  %v6362_v6 = vld [vmem:[%s9967_s2 + $0x44] sm:$0xf0]  ;;  %p6883_p2 = por %p6882_p1, %p6881_p0 }
  0x23   : > { %6792 = vmatpush.bf16.msra.mxu3 %v4445_v27  ;;  %412 = vmatpush.bf16.msra.mxu1 %v4445_v27  ;;  %v4709_v63 = vor.u32 %v6384_v61, %v4708_v60  ;;  %v6400_v0 = vld [vmem:[%s9967_s2 + $0x174] sm:$0xf0]  ;;  %v4836_v1 = vld [vmem:[%s9967_s2 + $0x1f0] sm:$0xf]  ;;  %v4621_v7 = vor.u32 %v6362_v6, %v4620_v5  ;;  %v4700_v13 = vld [vmem:[%s9967_s2 + $0xe0] sm:$0xf] }
  0x24   : > { %v6416_v2 = vld [vmem:[%s9967_s2 + $0x1f4] sm:$0xf0]  ;;  %v4773_v3 = vor.u32 %v6400_v0, %v4772_v62  ;;  %v4612_v8 = vld [vmem:[%s9967_s2 + $0x30] sm:$0xf]  ;;  %v6382_v14 = vld [vmem:[%s9967_s2 + $0xe4] sm:$0xf0]  ;;  %p6884_p3 = pnand %p6883_p2, %p6879_p13 }
  0x25   : > { %4504 = vmatmul.msk.bf16.vlgmr.msra.gmra.mxu2 %vm371_vm0, %v6318_v33  ;;  %4502 = vmatmul.msk.bf16.vlgmr.msra.gmra.mxu0 %vm371_vm0, %v6316_v35  ;;  %v4837_v4 = vor.u32 %v6416_v2, %v4836_v1  ;;  %v6360_v9 = vld [vmem:[%s9967_s2 + $0x34] sm:$0xf0]  ;;  %v4764_v15 = vld [vmem:[%s9967_s2 + $0x160] sm:$0xf]  ;;  %v4701_v16 = vor.u32 %v6382_v14, %v4700_v13  ;;  %v6398_v17 = vld [vmem:[%s9967_s2 + $0x164] sm:$0xf0] }
  0x26   : > { %433 = vmatpush.bf16.msrb.mxu2 %v4497_v28  ;;  %4507 = vmatmul.msk.bf16.vlgmr.msra.gmra.mxu3 %vm371_vm0, %v6318_v33  ;;  %v4613_v11 = vor.u32 %v6360_v9, %v4612_v8  ;;  %v4828_v18 = vld [vmem:[%s9967_s2 + $0x1e0] sm:$0xf]  ;;  %v6414_v19 = vld [vmem:[%s9967_s2 + $0x1e4] sm:$0xf0]  ;;  %v4765_v20 = vor.u32 %v6398_v17, %v4764_v15  ;;  %v4692_v26 = vld [vmem:[%s9967_s2 + $0xd0] sm:$0xf] }
  0x27   : > { %457 = vmatpush.bf16.msrb.mxu3 %v4501_v29  ;;  %4505 = vmatmul.msk.bf16.vlgmr.msra.gmra.mxu1 %vm371_vm0, %v6316_v35  ;;  %v4829_v21 = vor.u32 %v6414_v19, %v4828_v18  ;;  %v4604_v22 = vld [vmem:[%s9967_s2 + $0x20] sm:$0xf]  ;;  %v6358_v23 = vld [vmem:[%s9967_s2 + $0x24] sm:$0xf0]  ;;  %v6380_v27 = vld [vmem:[%s9967_s2 + $0xd4] sm:$0xf0] }
  0x28   : > { %1592 = vmatpush.bf16.msrb.mxu0 %v4645_v53  ;;  %1611 = vmatpush.bf16.msrb.mxu1 %v4709_v63  ;;  %v4605_v24 = vor.u32 %v6358_v23, %v4604_v22  ;;  %v4756_v28 = vld [vmem:[%s9967_s2 + $0x150] sm:$0xf]  ;;  %v4693_v31 = vor.u32 %v6380_v27, %v4692_v26  ;;  %v6396_v32 = vld [vmem:[%s9967_s2 + $0x154] sm:$0xf0]  ;;  %v4684_v41 = vld [vmem:[%s9967_s2 + $0xc0] sm:$0xf] }
  0x29   : > { %v6412_v34 = vld [vmem:[%s9967_s2 + $0x1d4] sm:$0xf0]  ;;  %v4596_v38 = vld [vmem:[%s9967_s2 + $0x10] sm:$0xf]  ;;  %v6394_v45 = vld [vmem:[%s9967_s2 + $0x144] sm:$0xf0] }
  0x2a   : > { %434 = vmatpush.bf16.msrb.mxu2 %v4481_v36  ;;  %v4757_v36 = vor.u32 %v6396_v32, %v4756_v28  ;;  %v6356_v39 = vld [vmem:[%s9967_s2 + $0x14] sm:$0xf0]  ;;  %v4812_v46 = vld [vmem:[%s9967_s2 + $0x1c0] sm:$0xf]  ;;  %v6410_v47 = vld [vmem:[%s9967_s2 + $0x1c4] sm:$0xf0] }
  0x2b   : > { %458 = vmatpush.bf16.msrb.mxu3 %v4485_v37  ;;  %v4597_v40 = vor.u32 %v6356_v39, %v4596_v38  ;;  %v6354_v51 = vld [vmem:[%s9967_s2 + $0x4] sm:$0xf0]  ;;  %v250_v52 = vld [vmem:[%s9970_s5] sm:$0xff]  ;;  %v6376_v57 = vld [vmem:[%s9967_s2 + $0xb4] sm:$0xf0] }
  0x2c   : > { %1593 = vmatpush.bf16.msrb.mxu0 %v4637_v56  ;;  %1612 = vmatpush.bf16.msrb.mxu1 %v4701_v16  ;;  %v4676_v56 = vld [vmem:[%s9967_s2 + $0xb0] sm:$0xf]  ;;  %v6392_v61 = vld [vmem:[%s9967_s2 + $0x134] sm:$0xf0]  ;;  %v6374_v13 = vld [vmem:[%s9967_s2 + $0xa4] sm:$0xf0] }
  0x2d   : > { %v4740_v58 = vld [vmem:[%s9967_s2 + $0x130] sm:$0xf]  ;;  %v4677_v60 = vor.u32 %v6376_v57, %v4676_v56  ;;  %v6408_v63 = vld [vmem:[%s9967_s2 + $0x1b4] sm:$0xf0]  ;;  %v4732_v14 = vld [vmem:[%s9967_s2 + $0x120] sm:$0xf] }
  0x2e   : > { %435 = vmatpush.bf16.msrb.mxu2 %v4465_v42  ;;  %v6378_v42 = vld [vmem:[%s9967_s2 + $0xc4] sm:$0xf0]  ;;  %v4804_v62 = vld [vmem:[%s9967_s2 + $0x1b0] sm:$0xf]  ;;  %v4796_v17 = vld [vmem:[%s9967_s2 + $0x1a0] sm:$0xf] }
  0x2f   : > { %459 = vmatpush.bf16.msrb.mxu3 %v4469_v43  ;;  %v4748_v43 = vld [vmem:[%s9967_s2 + $0x140] sm:$0xf]  ;;  %v4685_v44 = vor.u32 %v6378_v42, %v4684_v41  ;;  %v4805_v5 = vor.u32 %v6408_v63, %v4804_v62  ;;  %v4900_v6 = vld [vmem:[%s9967_s2 + $0x270] sm:$0xf]  ;;  %v6390_v16 = vld [vmem:[%s9967_s2 + $0x124] sm:$0xf0] }
  0x30   : > { %1594 = vmatpush.bf16.msrb.mxu0 %v4629_v59  ;;  %1613 = vmatpush.bf16.msrb.mxu1 %v4693_v31  ;;  %v6406_v18 = vld [vmem:[%s9967_s2 + $0x1a4] sm:$0xf0]  ;;  %v4892_v22 = vld [vmem:[%s9967_s2 + $0x260] sm:$0xf]  ;;  %v4660_v27 = vld [vmem:[%s9967_s2 + $0x90] sm:$0xf] }
  0x31   : > { %v6430_v23 = vld [vmem:[%s9967_s2 + $0x264] sm:$0xf0]  ;;  %v6372_v28 = vld [vmem:[%s9967_s2 + $0x94] sm:$0xf0]  ;;  %v4724_v32 = vld [vmem:[%s9967_s2 + $0x110] sm:$0xf] }
  0x32   : > { %436 = vmatpush.bf16.msrb.mxu2 %v4449_v48  ;;  %v4749_v48 = vor.u32 %v6394_v45, %v4748_v43  ;;  %v4661_v31 = vor.u32 %v6372_v28, %v4660_v27  ;;  %v6404_v39 = vld [vmem:[%s9967_s2 + $0x194] sm:$0xf0]  ;;  %v4876_v57 = vld [vmem:[%s9967_s2 + $0x240] sm:$0xf]  ;;  %v4964_v63 = vld [vmem:[%s9967_s2 + $0x2f0] sm:$0xf] }
  0x33   : > { %460 = vmatpush.bf16.msrb.mxu3 %v4453_v49  ;;  %v4813_v49 = vor.u32 %v6410_v47, %v4812_v46  ;;  %v6428_v42 = vld [vmem:[%s9967_s2 + $0x254] sm:$0xf0]  ;;  %v4652_v46 = vld [vmem:[%s9967_s2 + $0x80] sm:$0xf]  ;;  %v6370_v47 = vld [vmem:[%s9967_s2 + $0x84] sm:$0xf0] }
  0x34   : > { %1595 = vmatpush.bf16.msrb.mxu0 %v4621_v7  ;;  %1614 = vmatpush.bf16.msrb.mxu1 %v4685_v44  ;;  %v6432_v7 = vld [vmem:[%s9967_s2 + $0x274] sm:$0xf0] }
  0x35   : > { %4508 = vmatmul.msk.bf16.vlgmr.msrb.gmra.mxu2 %vm371_vm0, %v6316_v35  ;;  %4503 = vmatmul.msk.bf16.gmra.mxu0 %vm371_vm0, %v6317_v50  ;;  %v4901_v8 = vor.u32 %v6432_v7, %v4900_v6 }
  0x36   : > { %4511 = vmatmul.msk.bf16.vlgmr.msrb.gmra.mxu3 %vm371_vm0, %v6316_v35  ;;  %1630 = vmatpush.bf16.msra.mxu2 %v4773_v3  ;;  %v7275_v3 = vperm.slane %v250_v52, 0  ;;  %v4780_v52 = vld [vmem:[%s9967_s2 + $0x180] sm:$0xf] }
  0x37   : > { %4506 = vmatmul.msk.bf16.gmra.mxu1 %vm371_vm0, %v6317_v50  ;;  %1649 = vmatpush.bf16.msra.mxu3 %v4837_v4  ;;  %v4741_v4 = vor.u32 %v6392_v61, %v4740_v58  ;;  %v6426_v58 = vld [vmem:[%s9967_s2 + $0x244] sm:$0xf0] }
  0x38   : > { %1596 = vmatpush.bf16.msrb.mxu0 %v4613_v11  ;;  %1615 = vmatpush.bf16.msrb.mxu1 %v4677_v60  ;;  %v4668_v11 = vld [vmem:[%s9967_s2 + $0xa0] sm:$0xf] }
  0x39   : > { %v4669_v15 = vor.u32 %v6374_v13, %v4668_v11  ;;  %v4956_v13 = vld [vmem:[%s9967_s2 + $0x2e0] sm:$0xf] }
  0x3a   : > { %1631 = vmatpush.bf16.msra.mxu2 %v4765_v20  ;;  %v4733_v20 = vor.u32 %v6390_v16, %v4732_v14  ;;  %v6446_v14 = vld [vmem:[%s9967_s2 + $0x2e4] sm:$0xf0] }
  0x3b   : > { %1650 = vmatpush.bf16.msra.mxu3 %v4829_v21  ;;  %v4797_v21 = vor.u32 %v6406_v18, %v4796_v17  ;;  %v4957_v16 = vor.u32 %v6446_v14, %v4956_v13  ;;  %v5020_v17 = vld [vmem:[%s9967_s2 + $0x360] sm:$0xf]  ;;  %v6462_v18 = vld [vmem:[%s9967_s2 + $0x364] sm:$0xf0] }
  0x3c   : > { %1597 = vmatpush.bf16.msrb.mxu0 %v4605_v24  ;;  %1616 = vmatpush.bf16.msrb.mxu1 %v4669_v15  ;;  %v4893_v24 = vor.u32 %v6430_v23, %v4892_v22  ;;  %v4868_v22 = vld [vmem:[%s9967_s2 + $0x230] sm:$0xf]  ;;  %v6424_v23 = vld [vmem:[%s9967_s2 + $0x234] sm:$0xf0] }
  0x3d   : > { %v4869_v28 = vor.u32 %v6424_v23, %v4868_v22 }
  0x3e   : > { %1632 = vmatpush.bf16.msra.mxu2 %v4757_v36 }
  0x40   : > { %1598 = vmatpush.bf16.msrb.mxu0 %v4597_v40  ;;  %v4884_v40 = vld [vmem:[%s9967_s2 + $0x250] sm:$0xf]  ;;  %1617 = vmatpush.bf16.msrb.mxu1 %v4661_v31 }
  0x42   : > { %1633 = vmatpush.bf16.msra.mxu2 %v4749_v48  ;;  %v4716_v48 = vld [vmem:[%s9967_s2 + $0x100] sm:$0xf] }
  0x45   : > { %4509 = vmatmul.msk.bf16.gmra.mxu2 %vm371_vm0, %v6317_v50 }
  0x46   : > { %4512 = vmatmul.msk.bf16.gmra.mxu3 %vm371_vm0, %v6317_v50  ;;  %v4588_v50 = vld [vmem:[%s9967_s2] sm:$0xf]  ;;  %1634 = vmatpush.bf16.msra.mxu2 %v4741_v4  ;;  %v5028_v4 = vld [vmem:[%s9967_s2 + $0x370] sm:$0xf] }
  0x47   : > { %v4589_v53 = vor.u32 %v6354_v51, %v4588_v50  ;;  %v4653_v50 = vor.u32 %v6370_v47, %v4652_v46  ;;  %v6386_v51 = vld [vmem:[%s9967_s2 + $0x104] sm:$0xf0]  ;;  %v5076_v46 = vld [vmem:[%s9967_s2 + $0x3d0] sm:$0xf] }
  0x49   : > { %1599 = vmatpush.bf16.msrb.mxu0 %v4589_v53  ;;  %v6402_v53 = vld [vmem:[%s9967_s2 + $0x184] sm:$0xf0]  ;;  %1618 = vmatpush.bf16.msrb.mxu1 %v4653_v50 }
  0x4a   : > { %1635 = vmatpush.bf16.msra.mxu2 %v4733_v20  ;;  %v4781_v56 = vor.u32 %v6402_v53, %v4780_v52  ;;  %v5021_v20 = vor.u32 %v6462_v18, %v5020_v17 }
  0x4d   : > { %1668 = vmatpush.bf16.msra.mxu0 %v4901_v8  ;;  %v5092_v8 = vld [vmem:[%s9967_s2 + $0x3f0] sm:$0xf] }
  0x51   : > { %1669 = vmatpush.bf16.msra.mxu0 %v4893_v24 }
  0x55   : > { %4510 = vmatmul.msk.bf16.gmra.mxu2 %vm371_vm0, %v6318_v33 }
  0x56   : > { %4513 = vmatmul.msk.bf16.gmra.mxu3 %vm371_vm0, %v6318_v33  ;;  %v4820_v33 = vld [vmem:[%s9967_s2 + $0x1d0] sm:$0xf] }
  0x57   : > { %v4821_v37 = vor.u32 %v6412_v34, %v4820_v33  ;;  %v6388_v33 = vld [vmem:[%s9967_s2 + $0x114] sm:$0xf0]  ;;  %v4788_v34 = vld [vmem:[%s9967_s2 + $0x190] sm:$0xf] }
  0x58   : > { %v4725_v38 = vor.u32 %v6388_v33, %v4724_v32  ;;  %v4789_v41 = vor.u32 %v6404_v39, %v4788_v34  ;;  %v4948_v39 = vld [vmem:[%s9967_s2 + $0x2d0] sm:$0xf] }
  0x59   : > { %1651 = vmatpush.bf16.msra.mxu3 %v4821_v37 }
  0x5a   : > { %1636 = vmatpush.bf16.msra.mxu2 %v4725_v38 }
  0x5d   : > { %1652 = vmatpush.bf16.msra.mxu3 %v4813_v49  ;;  %v4885_v49 = vor.u32 %v6428_v42, %v4884_v40  ;;  %v6444_v40 = vld [vmem:[%s9967_s2 + $0x2d4] sm:$0xf0] }
  0x5f   : > { %1670 = vmatpush.bf16.msra.mxu0 %v4885_v49 }
  0x61   : > { %1653 = vmatpush.bf16.msra.mxu3 %v4805_v5  ;;  %v6464_v5 = vld [vmem:[%s9967_s2 + $0x374] sm:$0xf0] }
  0x62   : > { %v5029_v7 = vor.u32 %v6464_v5, %v5028_v4 }
  0x65   : > { %1654 = vmatpush.bf16.msra.mxu3 %v4797_v21  ;;  %v6478_v21 = vld [vmem:[%s9967_s2 + $0x3e4] sm:$0xf0] }
  0x69   : > { %1655 = vmatpush.bf16.msra.mxu3 %v4789_v41 }
  0x6d   : > { %1656 = vmatpush.bf16.msra.mxu3 %v4781_v56 }
  0xa2   : > { %v390_v25 = vpop.f32.mrf.mxu0 }
  0xa4   : > { %v414_v30 = vpop.f32.mrf.mxu1 }
  0xa5   : > { %v477_v54 = vmax.f32 %v390_v25, %v414_v30 }
  0xa8   : > { %v7174_v10 = vpop.f32.mrf.mxu2 }
  0xa9   : > { %v7176_v12 = vpop.f32.mrf.mxu3 }
  0xaa   : > { %v392_v0 = vpop.f32.mrf.mxu0  ;;  %v481_v22 = vmax.f32 %v7174_v10, %v7176_v12 }
  0xac   : > { %v416_v1 = vpop.f32.mrf.mxu1 }
  0xad   : > { %v478_v36 = vmax.f32 %v392_v0, %v416_v1  ;;  %v6448_v0 = vld [vmem:[%s9967_s2 + $0x2f4] sm:$0xf0] }
  0xb0   : > { %v7211_v29 = vpop.f32.mrf.mxu2 }
  0xb1   : > { %v7222_v35 = vpop.f32.mrf.mxu3 }
  0xb2   : > { %v395_v43 = vpop.f32.mrf.mxu0 }
  0xb4   : > { %v419_v44 = vpop.f32.mrf.mxu1 }
  0xb5   : > { %v479_v60 = vmax.f32 %v395_v43, %v419_v44  ;;  %v4949_v43 = vor.u32 %v6444_v40, %v4948_v39  ;;  %v5012_v44 = vld [vmem:[%s9967_s2 + $0x350] sm:$0xf] }
  0xb8   : > { %v438_v55 = vpop.f32.mrf.mxu2 }
  0xb9   : > { %v462_v59 = vpop.f32.mrf.mxu3 }
  0xba   : > { %v483_v2 = vmax.f32 %v438_v55, %v462_v59  ;;  %v4717_v55 = vor.u32 %v6386_v51, %v4716_v48  ;;  %v4877_v59 = vor.u32 %v6426_v58, %v4876_v57  ;;  %v397_v24 = vpop.f32.mrf.mxu0  ;;  %v6476_v51 = vld [vmem:[%s9967_s2 + $0x3d4] sm:$0xf0]  ;;  %v4940_v58 = vld [vmem:[%s9967_s2 + $0x2c0] sm:$0xf] }
  0xbb   : > { %v5077_v53 = vor.u32 %v6476_v51, %v5076_v46 }
  0xbc   : > { %v489_v9 = vmax.f32 %v477_v54, %v483_v2  ;;  %1637 = vmatpush.bf16.msra.mxu2 %v4717_v55  ;;  %v4965_v2 = vor.u32 %v6448_v0, %v4964_v63  ;;  %1671 = vmatpush.bf16.msra.mxu0 %v4877_v59  ;;  %v6422_v55 = vld [vmem:[%s9967_s2 + $0x224] sm:$0xf0] }
  0xbd   : > { %v6442_v59 = vld [vmem:[%s9967_s2 + $0x2c4] sm:$0xf0] }
  0xbe   : > { %v496_v19 = vadd.f32 %v7275_v3, %v489_v9  ;;  %v6480_v9 = vld [vmem:[%s9967_s2 + $0x3f4] sm:$0xf0]  ;;  %1687 = vmatpush.bf16.msra.mxu1 %v4965_v2  ;;  %v6474_v2 = vld [vmem:[%s9967_s2 + $0x3c4] sm:$0xf0] }
  0xbf   : > { %v5093_v11 = vor.u32 %v6480_v9, %v5092_v8 }
  0xc0   : > { %502 = vst [vmem:[#allocation2] sm:$0xff] %v496_v19  ;;  %v512_v25 = vpack.c.bf16 %v496_v19, %v496_v19  ;;  %v440_v26 = vpop.f32.mrf.mxu2  ;;  %1706 = vmatpush.bf16.msrb.mxu2 %v5029_v7  ;;  %v5084_v19 = vld [vmem:[%s9967_s2 + $0x3e0] sm:$0xf]  ;;  %1672 = vmatpush.bf16.msra.mxu0 %v4869_v28 }
  0xc1   : > { %v464_v30 = vpop.f32.mrf.mxu3  ;;  %1725 = vmatpush.bf16.msrb.mxu3 %v5093_v11  ;;  %v5085_v27 = vor.u32 %v6478_v21, %v5084_v19  ;;  %v6440_v21 = vld [vmem:[%s9967_s2 + $0x2b4] sm:$0xf0] }
  0xc2   : > { %516 = vst [vmem:[#allocation3] sm:$0xf] %v512_v25  ;;  %v484_v37 = vmax.f32 %v440_v26, %v464_v30  ;;  %v421_v25 = vpop.f32.mrf.mxu1  ;;  %1688 = vmatpush.bf16.msra.mxu1 %v4957_v16  ;;  %v6420_v16 = vld [vmem:[%s9967_s2 + $0x214] sm:$0xf0] }
  0xc3   : > { %v480_v41 = vmax.f32 %v397_v24, %v421_v25  ;;  %v4996_v25 = vld [vmem:[%s9967_s2 + $0x330] sm:$0xf] }
  0xc4   : > { %v490_v45 = vmax.f32 %v478_v36, %v484_v37  ;;  %1707 = vmatpush.bf16.msrb.mxu2 %v5021_v20  ;;  %v4932_v20 = vld [vmem:[%s9967_s2 + $0x2b0] sm:$0xf] }
  0xc5   : > { %1726 = vmatpush.bf16.msrb.mxu3 %v5085_v27  ;;  %v4933_v24 = vor.u32 %v6440_v21, %v4932_v20  ;;  %v5060_v27 = vld [vmem:[%s9967_s2 + $0x3b0] sm:$0xf] }
  0xc6   : > { %v497_v54 = vadd.f32 %v7275_v3, %v490_v45  ;;  %v6460_v45 = vld [vmem:[%s9967_s2 + $0x354] sm:$0xf0]  ;;  %1689 = vmatpush.bf16.msra.mxu1 %v4949_v43  ;;  %v5156_v20 = vld [vmem:[%s9967_s2 + $0x470] sm:$0xf] }
  0xc7   : > { %v5013_v50 = vor.u32 %v6460_v45, %v5012_v44 }
  0xc8   : > { %503 = vst [vmem:[#allocation2 + $0x8] sm:$0xff] %v497_v54  ;;  %v560_v61 = vpack.c.bf16 %v497_v54, %v497_v54  ;;  %v443_v62 = vpop.f32.mrf.mxu2  ;;  %v4860_v54 = vld [vmem:[%s9967_s2 + $0x220] sm:$0xf] }
  0xc9   : > { %v467_v1 = vpop.f32.mrf.mxu3  ;;  %v4516_v38 = vld [vmem:[#allocation3] sm:$0xf]  ;;  %v4861_v57 = vor.u32 %v6422_v55, %v4860_v54  ;;  %1708 = vmatpush.bf16.msrb.mxu2 %v5013_v50  ;;  %1727 = vmatpush.bf16.msrb.mxu3 %v5077_v53  ;;  %v4988_v53 = vld [vmem:[%s9967_s2 + $0x320] sm:$0xf]  ;;  %v482_v54 = vmax.f32 %v7211_v29, %v7222_v35  ;;  %v6470_v29 = vld [vmem:[%s9967_s2 + $0x3a4] sm:$0xf0] }
  0xca   : > { %564 = vst [vmem:[#allocation3 + $0x10] sm:$0xf] %v560_v61  ;;  %v485_v6 = vmax.f32 %v443_v62, %v467_v1  ;;  %v6458_v62 = vld [vmem:[%s9967_s2 + $0x344] sm:$0xf0]  ;;  %v5068_v1 = vld [vmem:[%s9967_s2 + $0x3c0] sm:$0xf] }
  0xcb   : > { %517 = vst [vmem:[#allocation3 + $0x24] sm:$0xf] %v560_v61  ;;  %v5004_v61 = vld [vmem:[%s9967_s2 + $0x340] sm:$0xf]  ;;  %1673 = vmatpush.bf16.msra.mxu0 %v4861_v57  ;;  %v5069_v7 = vor.u32 %v6474_v2, %v5068_v1  ;;  %v4916_v1 = vld [vmem:[%s9967_s2 + $0x290] sm:$0xf] }
  0xcc   : > { %v491_v15 = vmax.f32 %v479_v60, %v485_v6  ;;  %v4941_v60 = vor.u32 %v6442_v59, %v4940_v58  ;;  %v5005_v0 = vor.u32 %v6458_v62, %v5004_v61  ;;  %v6454_v58 = vld [vmem:[%s9967_s2 + $0x324] sm:$0xf0]  ;;  %v5052_v62 = vld [vmem:[%s9967_s2 + $0x3a0] sm:$0xf]  ;;  %v6436_v2 = vld [vmem:[%s9967_s2 + $0x294] sm:$0xf0] }
  0xcd   : > { %1728 = vmatpush.bf16.msrb.mxu3 %v5069_v7  ;;  %v4989_v61 = vor.u32 %v6454_v58, %v4988_v53  ;;  %v4980_v7 = vld [vmem:[%s9967_s2 + $0x310] sm:$0xf]  ;;  %v6383_v53 = vld [vmem:[%s9967_s2 + $0xf4] sm:$0xf] }
  0xce   : > { %v498_v26 = vadd.f32 %v7275_v3, %v491_v15  ;;  %1690 = vmatpush.bf16.msra.mxu1 %v4941_v60  ;;  %v4852_v15 = vld [vmem:[%s9967_s2 + $0x210] sm:$0xf]  ;;  %1709 = vmatpush.bf16.msrb.mxu2 %v5005_v0  ;;  %v5053_v0 = vor.u32 %v6470_v29, %v5052_v62 }
  0xcf   : > { %v532_v30 = vld [vmem:[#allocation2 + $0x2] sm:$0xff]  ;;  %v4853_v19 = vor.u32 %v6420_v16, %v4852_v15 }
  0xd0   : > { %v544_v31 = vld [vmem:[#allocation2 + $0x7] sm:$0xff]  ;;  %v536_v33 = vpack.c.bf16 %v532_v30, %v532_v30  ;;  %504 = vst [vmem:[#allocation2 + $0x10] sm:$0xff] %v498_v26  ;;  %v561_v36 = vpack.c.bf16 %v498_v26, %v498_v26  ;;  %v445_v37 = vpop.f32.mrf.mxu2  ;;  %v6456_v26 = vld [vmem:[%s9967_s2 + $0x334] sm:$0xf0] }
  0xd1   : > { %v520_v32 = vld [vmem:[#allocation2 + $0x1] sm:$0xff]  ;;  %v548_v34 = vpack.c.bf16 %v544_v31, %v544_v31  ;;  %v469_v42 = vpop.f32.mrf.mxu3  ;;  %1674 = vmatpush.bf16.msra.mxu0 %v4853_v19  ;;  %v4997_v28 = vor.u32 %v6456_v26, %v4996_v25  ;;  %v6472_v30 = vld [vmem:[%s9967_s2 + $0x3b4] sm:$0xf0] }
  0xd2   : > { %540 = vst [vmem:[#allocation3 + $0x8] sm:$0xf] %v536_v33  ;;  %v486_v47 = vmax.f32 %v445_v37, %v469_v42  ;;  %v6339_v48 = vld [vmem:[#allocation3 + $0x20] sm:$0xf0]  ;;  %v524_v49 = vpack.c.bf16 %v520_v32, %v520_v32  ;;  %1691 = vmatpush.bf16.msra.mxu1 %v4933_v24  ;;  %v4844_v31 = vld [vmem:[%s9967_s2 + $0x200] sm:$0xf]  ;;  %v5061_v32 = vor.u32 %v6472_v30, %v5060_v27 }
  0xd3   : > { %552 = vst [vmem:[#allocation3 + $0xc] sm:$0xf] %v548_v34  ;;  %v7418_v52 = vor.u32 %v6339_v48, %v4516_v38  ;;  %v6418_v33 = vld [vmem:[%s9967_s2 + $0x204] sm:$0xf0]  ;;  %1710 = vmatpush.bf16.msrb.mxu2 %v4997_v28  ;;  %v4924_v37 = vld [vmem:[%s9967_s2 + $0x2a0] sm:$0xf] }
  0xd4   : > { %565 = vst [vmem:[#allocation3 + $0x34] sm:$0xf] %v561_v36  ;;  %v492_v56 = vmax.f32 %v480_v41, %v486_v47  ;;  %1729 = vmatpush.bf16.msrb.mxu3 %v5061_v32  ;;  %v6438_v48 = vld [vmem:[%s9967_s2 + $0x2a4] sm:$0xf0]  ;;  %v6468_v19 = vld [vmem:[%s9967_s2 + $0x394] sm:$0xf0] }
  0xd5   : > { %612 = vst [vmem:[#allocation3 + $0x20] sm:$0xf] %v561_v36  ;;  %1600 = vmatmul.bf16.vlgmr.msrb.gmra.mxu0 %v7418_v52  ;;  %v4925_v51 = vor.u32 %v6438_v48, %v4924_v37  ;;  %v4908_v24 = vld [vmem:[%s9967_s2 + $0x280] sm:$0xf]  ;;  %v6434_v25 = vld [vmem:[%s9967_s2 + $0x284] sm:$0xf0] }
  0xd6   : > { %v499_v63 = vadd.f32 %v7275_v3, %v492_v56  ;;  %528 = vst [vmem:[#allocation3 + $0x4] sm:$0xf] %v524_v49  ;;  %v4909_v27 = vor.u32 %v6434_v25, %v4908_v24  ;;  %v6450_v28 = vld [vmem:[%s9967_s2 + $0x304] sm:$0xf0]  ;;  %v5036_v32 = vld [vmem:[%s9967_s2 + $0x380] sm:$0xf] }
  0xd7   : > { %v521_v4 = vld [vmem:[#allocation2 + $0x9] sm:$0xff]  ;;  %518 = vst [vmem:[#allocation3 + $0x48] sm:$0xf] %v561_v36  ;;  %v4845_v36 = vor.u32 %v6418_v33, %v4844_v31  ;;  %1692 = vmatpush.bf16.msra.mxu1 %v4925_v51  ;;  %1711 = vmatpush.bf16.msrb.mxu2 %v4989_v61  ;;  %v6367_v48 = vld [vmem:[%s9967_s2 + $0x74] sm:$0xf] }
  0xd8   : > { %v533_v5 = vld [vmem:[#allocation2 + $0xa] sm:$0xff]  ;;  %v525_v8 = vpack.c.bf16 %v521_v4, %v521_v4  ;;  %505 = vst [vmem:[#allocation2 + $0x18] sm:$0xff] %v499_v63  ;;  %v448_v14 = vpop.f32.mrf.mxu2  ;;  %v7469_v10 = vpack.c.bf16 %v499_v63, %v499_v63  ;;  %1730 = vmatpush.bf16.msrb.mxu3 %v5053_v0  ;;  %v4774_v61 = vld [vmem:[%s9967_s2 + $0x178] sm:$0xf0]  ;;  %v5132_v0 = vld [vmem:[%s9967_s2 + $0x440] sm:$0xf] }
  0xd9   : > { %v545_v6 = vld [vmem:[#allocation2 + $0xf] sm:$0xff]  ;;  %v537_v9 = vpack.c.bf16 %v533_v5, %v533_v5  ;;  %v472_v18 = vpop.f32.mrf.mxu3  ;;  %v4524_v41 = vld [vmem:[#allocation3 + $0x8] sm:$0xf]  ;;  %1675 = vmatpush.bf16.msra.mxu0 %v4845_v36  ;;  %v6466_v36 = vld [vmem:[%s9967_s2 + $0x384] sm:$0xf0] }
  0xda   : > { %v549_v11 = vpack.c.bf16 %v545_v6, %v545_v6  ;;  %v580_v13 = vld [vmem:[#allocation2 + $0xe] sm:$0xff]  ;;  %v487_v23 = vmax.f32 %v448_v14, %v472_v18  ;;  %576 = vst [vmem:[#allocation3 + $0x14] sm:$0xf] %v525_v8  ;;  %v6336_v46 = vld [vmem:[#allocation3 + $0xc] sm:$0xf]  ;;  %v4917_v6 = vor.u32 %v6436_v2, %v4916_v1  ;;  %v5037_v37 = vor.u32 %v6466_v36, %v5036_v32 }
  0xdb   : > { %v584_v17 = vpack.c.bf16 %v580_v13, %v580_v13  ;;  %541 = vst [vmem:[#allocation3 + $0x2c] sm:$0xf] %v537_v9  ;;  %v6452_v9 = vld [vmem:[%s9967_s2 + $0x314] sm:$0xf0]  ;;  %v6490_v1 = vld [vmem:[%s9967_s2 + $0x444] sm:$0xf0] }
  0xdc   : > { %553 = vst [vmem:[#allocation3 + $0x30] sm:$0xf] %v549_v11  ;;  %v493_v12 = vmax.f32 %v481_v22, %v487_v23  ;;  %1693 = vmatpush.bf16.msra.mxu1 %v4917_v6  ;;  %v4981_v15 = vor.u32 %v6452_v9, %v4980_v7  ;;  %v6496_v23 = vld [vmem:[%s9967_s2 + $0x474] sm:$0xf0]  ;;  %v5133_v2 = vor.u32 %v6490_v1, %v5132_v0  ;;  %v6381_v6 = vld [vmem:[%s9967_s2 + $0xe4] sm:$0xf] }
  0xdd   : > { %588 = vst [vmem:[#allocation3 + $0x18] sm:$0xf] %v584_v17  ;;  %v6335_v63 = vld [vmem:[#allocation3 + $0x4] sm:$0xf]  ;;  %v5157_v26 = vor.u32 %v6496_v23, %v5156_v20  ;;  %v4702_v7 = vld [vmem:[%s9967_s2 + $0xe8] sm:$0xf0] }
  0xde   : > { %600 = vst [vmem:[#allocation3 + $0x1c] sm:$0xf] %v549_v11  ;;  %v7481_v34 = vadd.f32 %v7275_v3, %v493_v12  ;;  %v4552_v21 = vld [vmem:[#allocation3 + $0x48] sm:$0xf]  ;;  %1712 = vmatpush.bf16.msrb.mxu2 %v4981_v15  ;;  %v4972_v12 = vld [vmem:[%s9967_s2 + $0x300] sm:$0xf] }
  0xdf   : > { %529 = vst [vmem:[#allocation3 + $0x28] sm:$0xf] %v525_v8  ;;  %v569_v38 = vld [vmem:[#allocation2 + $0x11] sm:$0xff]  ;;  %v4973_v31 = vor.u32 %v6450_v28, %v4972_v12  ;;  %1744 = vmatpush.bf16.msrb.mxu0 %v5157_v26  ;;  %v4532_v23 = vld [vmem:[#allocation3 + $0x10] sm:$0xf] }
  0xe0   : > { %v581_v39 = vld [vmem:[#allocation2 + $0x16] sm:$0xff]  ;;  %v573_v42 = vpack.c.bf16 %v569_v38, %v569_v38  ;;  %613 = vst [vmem:[#allocation3 + $0x44] sm:$0xf] %v7469_v10  ;;  %v450_v45 = vpop.f32.mrf.mxu2  ;;  %1694 = vmatpush.bf16.msra.mxu1 %v4909_v27  ;;  %v5148_v38 = vld [vmem:[%s9967_s2 + $0x460] sm:$0xf]  ;;  %v7604_v62 = vpack.c.bf16 %v7481_v34, %v7481_v34 }
  0xe1   : > { %v593_v40 = vld [vmem:[#allocation2 + $0x17] sm:$0xff]  ;;  %v585_v43 = vpack.c.bf16 %v581_v39, %v581_v39  ;;  %506 = vst [vmem:[#allocation2 + $0x20] sm:$0xff] %v7481_v34  ;;  %v474_v49 = vpop.f32.mrf.mxu3  ;;  %v6494_v39 = vld [vmem:[%s9967_s2 + $0x464] sm:$0xf0]  ;;  %v6365_v34 = vld [vmem:[%s9967_s2 + $0x64] sm:$0xf] }
  0xe2   : > { %v597_v44 = vpack.c.bf16 %v593_v40, %v593_v40  ;;  %v534_v47 = vld [vmem:[#allocation2 + $0x12] sm:$0xff]  ;;  %v6340_v50 = vld [vmem:[#allocation3 + $0x28] sm:$0xf0]  ;;  %577 = vst [vmem:[#allocation3 + $0x38] sm:$0xf] %v573_v42  ;;  %v488_v55 = vmax.f32 %v450_v45, %v474_v49  ;;  %1713 = vmatpush.bf16.msrb.mxu2 %v4973_v31  ;;  %v5149_v40 = vor.u32 %v6494_v39, %v5148_v38 }
  0xe3   : > { %v7496_v56 = vor.u32 %v6340_v50, %v4524_v41  ;;  %v4526_v57 = vld [vmem:[#allocation3 + $0x2c] sm:$0xf0]  ;;  %589 = vst [vmem:[#allocation3 + $0x3c] sm:$0xf] %v585_v43  ;;  %v538_v60 = vpack.c.bf16 %v534_v47, %v534_v47  ;;  %v6492_v43 = vld [vmem:[%s9967_s2 + $0x454] sm:$0xf0] }
  0xe4   : > { %v7501_v59 = vor.u32 %v6336_v46, %v4526_v57  ;;  %601 = vst [vmem:[#allocation3 + $0x40] sm:$0xf] %v597_v44  ;;  %v494_v35 = vmax.f32 %v482_v54, %v488_v55  ;;  %1745 = vmatpush.bf16.msrb.mxu0 %v5149_v40  ;;  %v4646_v49 = vld [vmem:[%s9967_s2 + $0x78] sm:$0xf0]  ;;  %v6395_v26 = vld [vmem:[%s9967_s2 + $0x154] sm:$0xf] }
  0xe5   : > { %1638 = vmatmul.bf16.vlgmr.msra.gmra.mxu2 %v7496_v56  ;;  %519 = vst [vmem:[#allocation3 + $0x6c] sm:$0xf] %v7469_v10  ;;  %v4649_v51 = vor.u32 %v6367_v48, %v4646_v49  ;;  %v4710_v54 = vld [vmem:[%s9967_s2 + $0xf8] sm:$0xf0]  ;;  %v5116_v28 = vld [vmem:[%s9967_s2 + $0x420] sm:$0xf] }
  0xe6   : > { %1657 = vmatmul.bf16.vlgmr.msra.gmra.mxu3 %v7501_v59  ;;  %v7519_v4 = vadd.f32 %v7275_v3, %v494_v35  ;;  %v4518_v5 = vld [vmem:[#allocation3 + $0x24] sm:$0xf0]  ;;  %530 = vst [vmem:[#allocation3 + $0x4c] sm:$0xf] %v573_v42  ;;  %v5044_v3 = vld [vmem:[%s9967_s2 + $0x390] sm:$0xf]  ;;  %v4713_v58 = vor.u32 %v6383_v53, %v4710_v54 }
  0xe7   : > { %v7524_v8 = vor.u32 %v6335_v63, %v4518_v5  ;;  %542 = vst [vmem:[#allocation3 + $0x50] sm:$0xf] %v538_v60  ;;  %v5045_v22 = vor.u32 %v6468_v19, %v5044_v3  ;;  %v5140_v42 = vld [vmem:[%s9967_s2 + $0x450] sm:$0xf]  ;;  %v6399_v60 = vld [vmem:[%s9967_s2 + $0x174] sm:$0xf]  ;;  %v4705_v3 = vor.u32 %v6381_v6, %v4702_v7 }
  0xe8   : > { %507 = vst [vmem:[#allocation2 + $0x28] sm:$0xff] %v7519_v4  ;;  %v523_v11 = vld [vmem:[#allocation2 + $0x19] sm:$0xff]  ;;  %v5141_v47 = vor.u32 %v6492_v43, %v5140_v42  ;;  %v4777_v63 = vor.u32 %v6399_v60, %v4774_v61  ;;  %v4638_v5 = vld [vmem:[%s9967_s2 + $0x68] sm:$0xf0]  ;;  %1782 = vmatpush.bf16.msra.mxu2 %v4713_v58  ;;  %v6361_v31 = vld [vmem:[%s9967_s2 + $0x44] sm:$0xf] }
  0xe9   : > { %v535_v13 = vld [vmem:[#allocation2 + $0x1a] sm:$0xff]  ;;  %1619 = vmatmul.bf16.vlgmr.msrb.gmra.mxu1 %v7524_v8  ;;  %v7534_v16 = vpack.c.bf16 %v523_v11, %v523_v11  ;;  %554 = vst [vmem:[#allocation3 + $0x54] sm:$0xf] %v597_v44  ;;  %1731 = vmatpush.bf16.msrb.mxu3 %v5045_v22  ;;  %v4641_v9 = vor.u32 %v6365_v34, %v4638_v5  ;;  %v6397_v11 = vld [vmem:[%s9967_s2 + $0x164] sm:$0xf] }
  0xea   : > { %v547_v14 = vld [vmem:[#allocation2 + $0x1f] sm:$0xff]  ;;  %v539_v17 = vpack.c.bf16 %v535_v13, %v535_v13  ;;  %1746 = vmatpush.bf16.msrb.mxu0 %v5141_v47  ;;  %1763 = vmatpush.bf16.msrb.mxu1 %v4649_v51  ;;  %v4766_v13 = vld [vmem:[%s9967_s2 + $0x168] sm:$0xf0]  ;;  %566 = vst [vmem:[#allocation3 + $0x58] sm:$0xf] %v7469_v10 }
  0xeb   : > { %v7536_v18 = vpack.c.bf16 %v547_v14, %v547_v14  ;;  %531 = vst [vmem:[#allocation3 + $0x70] sm:$0xf] %v7534_v16  ;;  %v6341_v14 = vld [vmem:[#allocation3 + $0x30] sm:$0xf0]  ;;  %v4769_v15 = vor.u32 %v6397_v11, %v4766_v13  ;;  %v6488_v19 = vld [vmem:[%s9967_s2 + $0x434] sm:$0xf0] }
  0xec   : > { %v6348_v30 = vld [vmem:[#allocation3 + $0x68] sm:$0xf0]  ;;  %543 = vst [vmem:[#allocation3 + $0x74] sm:$0xf] %v539_v17  ;;  %v5124_v17 = vld [vmem:[%s9967_s2 + $0x430] sm:$0xf]  ;;  %1783 = vmatpush.bf16.msra.mxu2 %v4705_v3  ;;  %v7681_v39 = vor.u32 %v6341_v14, %v4532_v23 }
  0xed   : > { %v7563_v33 = vor.u32 %v6348_v30, %v4552_v21  ;;  %555 = vst [vmem:[#allocation3 + $0x78] sm:$0xf] %v7536_v18  ;;  %1732 = vmatpush.bf16.msrb.mxu3 %v5037_v37  ;;  %v6344_v44 = vld [vmem:[#allocation3 + $0x4c] sm:$0xf]  ;;  %v5125_v20 = vor.u32 %v6488_v19, %v5124_v17  ;;  %v6363_v10 = vld [vmem:[%s9967_s2 + $0x54] sm:$0xf] }
  0xee   : > { %v4560_v41 = vld [vmem:[#allocation3 + $0x50] sm:$0xf]  ;;  %567 = vst [vmem:[#allocation3 + $0x7c] sm:$0xf] %v7604_v62  ;;  %1747 = vmatpush.bf16.msrb.mxu0 %v5133_v2  ;;  %v4630_v21 = vld [vmem:[%s9967_s2 + $0x58] sm:$0xf0]  ;;  %1764 = vmatpush.bf16.msrb.mxu1 %v4641_v9 }
  0xef   : > { %1605 = vmatmul.bf16.gmra.mxu0 %v7563_v33  ;;  %v6379_v22 = vld [vmem:[%s9967_s2 + $0xd4] sm:$0xf]  ;;  %v4633_v24 = vor.u32 %v6363_v10, %v4630_v21  ;;  %v4694_v25 = vld [vmem:[%s9967_s2 + $0xd8] sm:$0xf0]  ;;  %v6486_v30 = vld [vmem:[%s9967_s2 + $0x424] sm:$0xf0] }
  0xf0   : > { %v6345_v46 = vld [vmem:[#allocation3 + $0x54] sm:$0xf]  ;;  %v4758_v27 = vld [vmem:[%s9967_s2 + $0x158] sm:$0xf0]  ;;  %v4697_v12 = vor.u32 %v6379_v22, %v4694_v25  ;;  %v4622_v36 = vld [vmem:[%s9967_s2 + $0x48] sm:$0xf0]  ;;  %v5117_v40 = vor.u32 %v6486_v30, %v5116_v28 }
  0xf1   : > { %1801 = vmatpush.bf16.msra.mxu3 %v4777_v63  ;;  %v4761_v32 = vor.u32 %v6395_v26, %v4758_v27  ;;  %v6377_v37 = vld [vmem:[%s9967_s2 + $0xc4] sm:$0xf]  ;;  %v4686_v38 = vld [vmem:[%s9967_s2 + $0xc8] sm:$0xf0]  ;;  %578 = vst [vmem:[#allocation3 + $0x5c] sm:$0xf] %v7534_v16 }
  0xf2   : > { %v4554_v45 = vld [vmem:[#allocation3 + $0x6c] sm:$0xf0]  ;;  %1748 = vmatpush.bf16.msrb.mxu0 %v5125_v20  ;;  %v4750_v42 = vld [vmem:[%s9967_s2 + $0x148] sm:$0xf0]  ;;  %1765 = vmatpush.bf16.msrb.mxu1 %v4633_v24  ;;  %v4689_v49 = vor.u32 %v6377_v37, %v4686_v38  ;;  %602 = vst [vmem:[#allocation3 + $0x64] sm:$0xf] %v7536_v18 }
  0xf3   : > { %v6349_v50 = vld [vmem:[#allocation3 + $0x70] sm:$0xf0]  ;;  %v7606_v29 = vor.u32 %v6344_v44, %v4554_v45  ;;  %v4625_v44 = vor.u32 %v6361_v31, %v4622_v36  ;;  %v6342_v48 = vld [vmem:[#allocation3 + $0x38] sm:$0xf0]  ;;  %1784 = vmatpush.bf16.msra.mxu2 %v4697_v12  ;;  %v4542_v54 = vld [vmem:[#allocation3 + $0x3c] sm:$0xf0] }
  0xf4   : > { %v7594_v55 = vor.u32 %v6349_v50, %v4560_v41  ;;  %v4562_v57 = vld [vmem:[#allocation3 + $0x74] sm:$0xf0]  ;;  %v6393_v41 = vld [vmem:[%s9967_s2 + $0x144] sm:$0xf]  ;;  %v5108_v16 = vld [vmem:[%s9967_s2 + $0x410] sm:$0xf] }
  0xf5   : > { %v7608_v35 = vor.u32 %v6345_v46, %v4562_v57  ;;  %1802 = vmatpush.bf16.msra.mxu3 %v4769_v15  ;;  %v571_v43 = vld [vmem:[#allocation2 + $0x21] sm:$0xff]  ;;  %v4753_v57 = vor.u32 %v6393_v41, %v4750_v42  ;;  %v6484_v60 = vld [vmem:[%s9967_s2 + $0x414] sm:$0xf0]  ;;  %v6359_v18 = vld [vmem:[%s9967_s2 + $0x34] sm:$0xf] }
  0xf6   : > { %1643 = vmatmul.bf16.gmra.mxu2 %v7594_v55  ;;  %v575_v45 = vpack.c.bf16 %v571_v43, %v571_v43  ;;  %v582_v46 = vld [vmem:[#allocation2 + $0x1e] sm:$0xff]  ;;  %v583_v47 = vld [vmem:[#allocation2 + $0x26] sm:$0xff]  ;;  %1749 = vmatpush.bf16.msrb.mxu0 %v5117_v40  ;;  %v5109_v63 = vor.u32 %v6484_v60, %v5108_v16  ;;  %v6375_v5 = vld [vmem:[%s9967_s2 + $0xb4] sm:$0xf]  ;;  %614 = vst [vmem:[#allocation3 + $0x68] sm:$0xf] %v7604_v62 }
  0xf7   : > { %1662 = vmatmul.bf16.gmra.mxu3 %v7608_v35  ;;  %v586_v50 = vpack.c.bf16 %v582_v46, %v582_v46  ;;  %v587_v51 = vpack.c.bf16 %v583_v47, %v583_v47  ;;  %v595_v53 = vld [vmem:[#allocation2 + $0x27] sm:$0xff]  ;;  %v4614_v0 = vld [vmem:[%s9967_s2 + $0x38] sm:$0xf0]  ;;  %1766 = vmatpush.bf16.msrb.mxu1 %v4625_v44  ;;  %v6391_v9 = vld [vmem:[%s9967_s2 + $0x134] sm:$0xf] }
  0xf8   : > { %579 = vst [vmem:[#allocation3 + $0x80] sm:$0xf] %v575_v45  ;;  %v599_v58 = vpack.c.bf16 %v595_v53, %v595_v53  ;;  %v4540_v61 = vld [vmem:[#allocation3 + $0x18] sm:$0xf]  ;;  %v6338_v34 = vld [vmem:[#allocation3 + $0x1c] sm:$0xf]  ;;  %v4617_v2 = vor.u32 %v6359_v18, %v4614_v0  ;;  %1785 = vmatpush.bf16.msra.mxu2 %v4689_v49 }
  0xf9   : > { %1624 = vmatmul.bf16.gmra.mxu1 %v7606_v29  ;;  %1803 = vmatpush.bf16.msra.mxu3 %v4761_v32  ;;  %590 = vst [vmem:[#allocation3 + $0x60] sm:$0xf] %v586_v50  ;;  %v4534_v1 = vld [vmem:[#allocation3 + $0x34] sm:$0xf0]  ;;  %v4678_v6 = vld [vmem:[%s9967_s2 + $0xb8] sm:$0xf0]  ;;  %v7716_v11 = vor.u32 %v6342_v48, %v4540_v61  ;;  %v7727_v19 = vor.u32 %v6338_v34, %v4542_v54 }
  0xfa   : > { %591 = vst [vmem:[#allocation3 + $0x84] sm:$0xf] %v587_v51  ;;  %v4681_v7 = vor.u32 %v6375_v5, %v4678_v6  ;;  %v4742_v3 = vld [vmem:[%s9967_s2 + $0x138] sm:$0xf0]  ;;  %v5100_v14 = vld [vmem:[%s9967_s2 + $0x400] sm:$0xf]  ;;  %1750 = vmatpush.bf16.msrb.mxu0 %v5109_v63 }
  0xfb   : > { %603 = vst [vmem:[#allocation3 + $0x88] sm:$0xf] %v599_v58  ;;  %v4745_v13 = vor.u32 %v6391_v9, %v4742_v3  ;;  %v6482_v15 = vld [vmem:[%s9967_s2 + $0x404] sm:$0xf0]  ;;  %v6357_v17 = vld [vmem:[%s9967_s2 + $0x24] sm:$0xf]  ;;  %1767 = vmatpush.bf16.msrb.mxu1 %v4617_v2 }
  0xfc   : > { %v5101_v20 = vor.u32 %v6482_v15, %v5100_v14  ;;  %v4606_v10 = vld [vmem:[%s9967_s2 + $0x28] sm:$0xf0]  ;;  %v6373_v21 = vld [vmem:[%s9967_s2 + $0xa4] sm:$0xf]  ;;  %1786 = vmatpush.bf16.msra.mxu2 %v4681_v7  ;;  %v6355_v30 = vld [vmem:[%s9967_s2 + $0x14] sm:$0xf] }
  0xfd   : > { %1804 = vmatpush.bf16.msra.mxu3 %v4753_v57  ;;  %v6337_v22 = vld [vmem:[#allocation3 + $0x14] sm:$0xf]  ;;  %v4609_v23 = vor.u32 %v6357_v17, %v4606_v10  ;;  %v4670_v24 = vld [vmem:[%s9967_s2 + $0xa8] sm:$0xf0]  ;;  %v4598_v31 = vld [vmem:[%s9967_s2 + $0x18] sm:$0xf0] }
  0xfe   : > { %v6389_v25 = vld [vmem:[%s9967_s2 + $0x124] sm:$0xf]  ;;  %v7742_v26 = vor.u32 %v6337_v22, %v4534_v1  ;;  %v4673_v27 = vor.u32 %v6373_v21, %v4670_v24  ;;  %v4734_v12 = vld [vmem:[%s9967_s2 + $0x128] sm:$0xf0]  ;;  %1751 = vmatpush.bf16.msrb.mxu0 %v5101_v20  ;;  %v6371_v32 = vld [vmem:[%s9967_s2 + $0x94] sm:$0xf]  ;;  %v4601_v38 = vor.u32 %v6355_v30, %v4598_v31  ;;  %v611_v21 = vpack.c.bf16 %v7519_v4, %v7519_v4 }
  0xff   : > { %1676 = vmatmul.bf16.vlgmr.msra.gmra.mxu0 %v7681_v39  ;;  %v4737_v28 = vor.u32 %v6389_v25, %v4734_v12  ;;  %v4568_v36 = vld [vmem:[#allocation3 + $0x58] sm:$0xf]  ;;  %v6350_v37 = vld [vmem:[#allocation3 + $0x78] sm:$0xf0]  ;;  %1768 = vmatpush.bf16.msrb.mxu1 %v4609_v23  ;;  %v4662_v40 = vld [vmem:[%s9967_s2 + $0x98] sm:$0xf0] }
 0x100   : > { %v6387_v41 = vld [vmem:[%s9967_s2 + $0x114] sm:$0xf]  ;;  %1787 = vmatpush.bf16.msra.mxu2 %v4673_v27  ;;  %v4665_v42 = vor.u32 %v6371_v32, %v4662_v40  ;;  %v4726_v43 = vld [vmem:[%s9967_s2 + $0x118] sm:$0xf0]  ;;  %v6353_v48 = vld [vmem:[%s9967_s2 + $0x4] sm:$0xf]  ;;  %v7782_v51 = vor.u32 %v6350_v37, %v4568_v36 }
 0x101   : > { %1805 = vmatpush.bf16.msra.mxu3 %v4745_v13  ;;  %v6415_v44 = vld [vmem:[%s9967_s2 + $0x1f4] sm:$0xf]  ;;  %v4838_v45 = vld [vmem:[%s9967_s2 + $0x1f8] sm:$0xf0]  ;;  %v4729_v46 = vor.u32 %v6387_v41, %v4726_v43  ;;  %v4590_v49 = vld [vmem:[%s9967_s2 + $0x8] sm:$0xf0] }
 0x102   : > { %v4841_v47 = vor.u32 %v6415_v44, %v4838_v45  ;;  %v6369_v50 = vld [vmem:[%s9967_s2 + $0x84] sm:$0xf]  ;;  %v4654_v53 = vld [vmem:[%s9967_s2 + $0x88] sm:$0xf0]  ;;  %v4593_v58 = vor.u32 %v6353_v48, %v4590_v49  ;;  %v6411_v61 = vld [vmem:[%s9967_s2 + $0x1d4] sm:$0xf] }
 0x103   : > { %v6385_v54 = vld [vmem:[%s9967_s2 + $0x104] sm:$0xf]  ;;  %v4718_v57 = vld [vmem:[%s9967_s2 + $0x108] sm:$0xf0]  ;;  %1769 = vmatpush.bf16.msrb.mxu1 %v4601_v38  ;;  %v6351_v63 = vld [vmem:[#allocation3 + $0x80] sm:$0xf0]  ;;  %v4657_v18 = vor.u32 %v6369_v50, %v4654_v53 }
 0x104   : > { %1820 = vmatpush.bf16.msra.mxu0 %v4841_v47  ;;  %v6413_v16 = vld [vmem:[%s9967_s2 + $0x1e4] sm:$0xf]  ;;  %v4830_v60 = vld [vmem:[%s9967_s2 + $0x1e8] sm:$0xf0]  ;;  %1788 = vmatpush.bf16.msra.mxu2 %v4665_v42  ;;  %v4822_v1 = vld [vmem:[%s9967_s2 + $0x1d8] sm:$0xf0]  ;;  %v4721_v6 = vor.u32 %v6385_v54, %v4718_v57 }
 0x105   : > { %1806 = vmatpush.bf16.msra.mxu3 %v4737_v28  ;;  %v4833_v0 = vor.u32 %v6413_v16, %v4830_v60  ;;  %v6431_v34 = vld [vmem:[%s9967_s2 + $0x274] sm:$0xf]  ;;  %v4902_v2 = vld [vmem:[%s9967_s2 + $0x278] sm:$0xf0]  ;;  %v4578_v5 = vld [vmem:[#allocation3 + $0x84] sm:$0xf0]  ;;  %v4825_v22 = vor.u32 %v6411_v61, %v4822_v1 }
 0x106   : > { %1714 = vmatmul.bf16.vlgmr.msrb.gmra.mxu2 %v7716_v11  ;;  %v4905_v7 = vor.u32 %v6431_v34, %v4902_v2  ;;  %v6447_v9 = vld [vmem:[%s9967_s2 + $0x2f4] sm:$0xf]  ;;  %v4966_v3 = vld [vmem:[%s9967_s2 + $0x2f8] sm:$0xf0]  ;;  %v4576_v14 = vld [vmem:[#allocation3 + $0x60] sm:$0xf] }
 0x107   : > { %1733 = vmatmul.bf16.vlgmr.msrb.gmra.mxu3 %v7727_v19  ;;  %v6463_v13 = vld [vmem:[%s9967_s2 + $0x374] sm:$0xf]  ;;  %v4969_v15 = vor.u32 %v6447_v9, %v4966_v3  ;;  %v5030_v17 = vld [vmem:[%s9967_s2 + $0x378] sm:$0xf0]  ;;  %v6409_v20 = vld [vmem:[%s9967_s2 + $0x1c4] sm:$0xf]  ;;  %1770 = vmatpush.bf16.msrb.mxu1 %v4593_v58  ;;  %v7850_v36 = vor.u32 %v6351_v63, %v4576_v14 }
 0x108   : > { %v4814_v10 = vld [vmem:[%s9967_s2 + $0x1c8] sm:$0xf0]  ;;  %1821 = vmatpush.bf16.msra.mxu0 %v4833_v0  ;;  %v5033_v23 = vor.u32 %v6463_v13, %v5030_v17  ;;  %v6429_v24 = vld [vmem:[%s9967_s2 + $0x264] sm:$0xf]  ;;  %1789 = vmatpush.bf16.msra.mxu2 %v4657_v18  ;;  %v4570_v32 = vld [vmem:[#allocation3 + $0x7c] sm:$0xf0] }
 0x109   : > { %1695 = vmatmul.bf16.vlgmr.msra.gmra.mxu1 %v7742_v26  ;;  %1807 = vmatpush.bf16.msra.mxu3 %v4729_v46  ;;  %v4894_v25 = vld [vmem:[%s9967_s2 + $0x268] sm:$0xf0]  ;;  %v6445_v27 = vld [vmem:[%s9967_s2 + $0x2e4] sm:$0xf]  ;;  %v6347_v37 = vld [vmem:[#allocation3 + $0x64] sm:$0xf]  ;;  %v4817_v44 = vor.u32 %v6409_v20, %v4814_v10 }
 0x10a   : > { %v4897_v12 = vor.u32 %v6429_v24, %v4894_v25  ;;  %v4958_v4 = vld [vmem:[%s9967_s2 + $0x2e8] sm:$0xf0]  ;;  %v6461_v28 = vld [vmem:[%s9967_s2 + $0x364] sm:$0xf]  ;;  %v7853_v40 = vor.u32 %v6347_v37, %v4578_v5  ;;  %615 = vst [vmem:[#allocation3 + $0x8c] sm:$0xf] %v611_v21 }
 0x10b   : > { %1839 = vmatpush.bf16.msra.mxu1 %v4905_v7  ;;  %v5022_v30 = vld [vmem:[%s9967_s2 + $0x368] sm:$0xf0]  ;;  %v4961_v38 = vor.u32 %v6445_v27, %v4958_v4  ;;  %v6427_v42 = vld [vmem:[%s9967_s2 + $0x254] sm:$0xf]  ;;  %v4886_v43 = vld [vmem:[%s9967_s2 + $0x258] sm:$0xf0] }
 0x10c   : > { %v6346_v31 = vld [vmem:[#allocation3 + $0x5c] sm:$0xf]  ;;  %1858 = vmatpush.bf16.msrb.mxu2 %v4969_v15  ;;  %v5025_v41 = vor.u32 %v6461_v28, %v5022_v30  ;;  %1822 = vmatpush.bf16.msra.mxu0 %v4825_v22  ;;  %v6443_v62 = vld [vmem:[%s9967_s2 + $0x2d4] sm:$0xf]  ;;  %v4950_v45 = vld [vmem:[%s9967_s2 + $0x2d8] sm:$0xf0]  ;;  %v4889_v50 = vor.u32 %v6427_v42, %v4886_v43 }
 0x10d   : > { %1808 = vmatpush.bf16.msra.mxu3 %v4721_v6  ;;  %v6459_v46 = vld [vmem:[%s9967_s2 + $0x354] sm:$0xf]  ;;  %v7871_v47 = vor.u32 %v6346_v31, %v4570_v32  ;;  %v4806_v49 = vld [vmem:[%s9967_s2 + $0x1b8] sm:$0xf0]  ;;  %v4953_v54 = vor.u32 %v6443_v62, %v4950_v45  ;;  %v6425_v57 = vld [vmem:[%s9967_s2 + $0x244] sm:$0xf] }
 0x10e   : > { %v6407_v48 = vld [vmem:[%s9967_s2 + $0x1b4] sm:$0xf]  ;;  %v5014_v53 = vld [vmem:[%s9967_s2 + $0x358] sm:$0xf0]  ;;  %v4878_v58 = vld [vmem:[%s9967_s2 + $0x248] sm:$0xf0] }
 0x10f   : > { %1681 = vmatmul.bf16.gmra.mxu0 %v7782_v51  ;;  %1840 = vmatpush.bf16.msra.mxu1 %v4897_v12  ;;  %v5017_v16 = vor.u32 %v6459_v46, %v5014_v53  ;;  %v6441_v60 = vld [vmem:[%s9967_s2 + $0x2c4] sm:$0xf]  ;;  %v4942_v61 = vld [vmem:[%s9967_s2 + $0x2c8] sm:$0xf0]  ;;  %v6343_v63 = vld [vmem:[#allocation3 + $0x40] sm:$0xf0]  ;;  %v4809_v18 = vor.u32 %v6407_v48, %v4806_v49  ;;  %v4881_v5 = vor.u32 %v6425_v57, %v4878_v58 }
 0x110   : > { %1859 = vmatpush.bf16.msrb.mxu2 %v4961_v38  ;;  %1823 = vmatpush.bf16.msra.mxu0 %v4817_v44  ;;  %v6457_v0 = vld [vmem:[%s9967_s2 + $0x344] sm:$0xf]  ;;  %v5006_v1 = vld [vmem:[%s9967_s2 + $0x348] sm:$0xf0]  ;;  %v4548_v6 = vld [vmem:[#allocation3 + $0x20] sm:$0xf]  ;;  %v4945_v7 = vor.u32 %v6441_v60, %v4942_v61 }
 0x111   : > { %1877 = vmatpush.bf16.msrb.mxu3 %v5033_v23  ;;  %v6405_v34 = vld [vmem:[%s9967_s2 + $0x1a4] sm:$0xf]  ;;  %v4798_v2 = vld [vmem:[%s9967_s2 + $0x1a8] sm:$0xf0]  ;;  %v6423_v9 = vld [vmem:[%s9967_s2 + $0x234] sm:$0xf]  ;;  %v7914_v13 = vor.u32 %v6343_v63, %v4548_v6  ;;  %v5009_v14 = vor.u32 %v6457_v0, %v5006_v1 }
 0x112   : > { %v4870_v3 = vld [vmem:[%s9967_s2 + $0x238] sm:$0xf0]  ;;  %v6439_v15 = vld [vmem:[%s9967_s2 + $0x2b4] sm:$0xf]  ;;  %v4801_v20 = vor.u32 %v6405_v34, %v4798_v2  ;;  %v6421_v27 = vld [vmem:[%s9967_s2 + $0x224] sm:$0xf] }
 0x113   : > { %1841 = vmatpush.bf16.msra.mxu1 %v4889_v50  ;;  %v4934_v17 = vld [vmem:[%s9967_s2 + $0x2b8] sm:$0xf0]  ;;  %v6455_v10 = vld [vmem:[%s9967_s2 + $0x334] sm:$0xf]  ;;  %v4873_v24 = vor.u32 %v6423_v9, %v4870_v3  ;;  %v4862_v12 = vld [vmem:[%s9967_s2 + $0x228] sm:$0xf0] }
 0x114   : > { %1860 = vmatpush.bf16.msrb.mxu2 %v4953_v54  ;;  %1824 = vmatpush.bf16.msra.mxu0 %v4809_v18  ;;  %v4998_v21 = vld [vmem:[%s9967_s2 + $0x338] sm:$0xf0]  ;;  %v6403_v22 = vld [vmem:[%s9967_s2 + $0x194] sm:$0xf]  ;;  %v4937_v25 = vor.u32 %v6439_v15, %v4934_v17  ;;  %v6437_v28 = vld [vmem:[%s9967_s2 + $0x2a4] sm:$0xf]  ;;  %v4865_v42 = vor.u32 %v6421_v27, %v4862_v12 }
 0x115   : > { %1878 = vmatpush.bf16.msrb.mxu3 %v5025_v41  ;;  %v4790_v23 = vld [vmem:[%s9967_s2 + $0x198] sm:$0xf0]  ;;  %v5001_v4 = vor.u32 %v6455_v10, %v4998_v21  ;;  %v4926_v30 = vld [vmem:[%s9967_s2 + $0x2a8] sm:$0xf0]  ;;  %v6453_v32 = vld [vmem:[%s9967_s2 + $0x324] sm:$0xf] }
 0x116   : > { %1719 = vmatmul.bf16.gmra.mxu2 %v7850_v36  ;;  %v4793_v31 = vor.u32 %v6403_v22, %v4790_v23  ;;  %v4990_v37 = vld [vmem:[%s9967_s2 + $0x328] sm:$0xf0]  ;;  %v6401_v38 = vld [vmem:[%s9967_s2 + $0x184] sm:$0xf]  ;;  %v6419_v43 = vld [vmem:[%s9967_s2 + $0x214] sm:$0xf]  ;;  %v4929_v44 = vor.u32 %v6437_v28, %v4926_v30 }
 0x117   : > { %1738 = vmatmul.bf16.gmra.mxu3 %v7853_v40  ;;  %1842 = vmatpush.bf16.msra.mxu1 %v4881_v5  ;;  %v4782_v41 = vld [vmem:[%s9967_s2 + $0x188] sm:$0xf0]  ;;  %v4854_v62 = vld [vmem:[%s9967_s2 + $0x218] sm:$0xf0]  ;;  %v6479_v45 = vld [vmem:[%s9967_s2 + $0x3f4] sm:$0xf]  ;;  %v4993_v48 = vor.u32 %v6453_v32, %v4990_v37 }
 0x118   : > { %1861 = vmatpush.bf16.msrb.mxu2 %v4945_v7  ;;  %1825 = vmatpush.bf16.msra.mxu0 %v4801_v20  ;;  %v5094_v46 = vld [vmem:[%s9967_s2 + $0x3f8] sm:$0xf0]  ;;  %v6435_v49 = vld [vmem:[%s9967_s2 + $0x294] sm:$0xf]  ;;  %v4785_v53 = vor.u32 %v6401_v38, %v4782_v41  ;;  %v4857_v58 = vor.u32 %v6419_v43, %v4854_v62  ;;  %v6417_v60 = vld [vmem:[%s9967_s2 + $0x204] sm:$0xf] }
 0x119   : > { %1700 = vmatmul.bf16.gmra.mxu1 %v7871_v47  ;;  %1879 = vmatpush.bf16.msrb.mxu3 %v5017_v16  ;;  %v4918_v50 = vld [vmem:[%s9967_s2 + $0x298] sm:$0xf0]  ;;  %v6451_v54 = vld [vmem:[%s9967_s2 + $0x314] sm:$0xf]  ;;  %v5097_v16 = vor.u32 %v6479_v45, %v5094_v46  ;;  %v4846_v63 = vld [vmem:[%s9967_s2 + $0x208] sm:$0xf0] }
 0x11a   : > { %v4982_v57 = vld [vmem:[%s9967_s2 + $0x318] sm:$0xf0]  ;;  %v4921_v61 = vor.u32 %v6435_v49, %v4918_v50  ;;  %v6433_v18 = vld [vmem:[%s9967_s2 + $0x284] sm:$0xf]  ;;  %v5086_v2 = vld [vmem:[%s9967_s2 + $0x3e8] sm:$0xf0]  ;;  %v4849_v7 = vor.u32 %v6417_v60, %v4846_v63 }
 0x11b   : > { %1843 = vmatpush.bf16.msra.mxu1 %v4873_v24  ;;  %v4985_v0 = vor.u32 %v6451_v54, %v4982_v57  ;;  %v6449_v1 = vld [vmem:[%s9967_s2 + $0x304] sm:$0xf]  ;;  %v4974_v5 = vld [vmem:[%s9967_s2 + $0x308] sm:$0xf0]  ;;  %v5158_v6 = vld [vmem:[%s9967_s2 + $0x478] sm:$0xf0] }
 0x11c   : > { %1862 = vmatpush.bf16.msrb.mxu2 %v4937_v25  ;;  %1826 = vmatpush.bf16.msra.mxu0 %v4793_v31  ;;  %v6477_v34 = vld [vmem:[%s9967_s2 + $0x3e4] sm:$0xf]  ;;  %v4584_v9 = vld [vmem:[#allocation3 + $0x68] sm:$0xf]  ;;  %v4977_v17 = vor.u32 %v6449_v1, %v4974_v5  ;;  %v6475_v20 = vld [vmem:[%s9967_s2 + $0x3d4] sm:$0xf] }
 0x11d   : > { %1880 = vmatpush.bf16.msrb.mxu3 %v5009_v14  ;;  %v5089_v14 = vor.u32 %v6477_v34, %v5086_v2  ;;  %v5078_v10 = vld [vmem:[%s9967_s2 + $0x3d8] sm:$0xf0]  ;;  %v6493_v22 = vld [vmem:[%s9967_s2 + $0x464] sm:$0xf]  ;;  %v5150_v23 = vld [vmem:[%s9967_s2 + $0x468] sm:$0xf0] }
 0x11e   : > { %v5081_v24 = vor.u32 %v6475_v20, %v5078_v10  ;;  %v6473_v25 = vld [vmem:[%s9967_s2 + $0x3c4] sm:$0xf]  ;;  %v5070_v27 = vld [vmem:[%s9967_s2 + $0x3c8] sm:$0xf0]  ;;  %v5153_v12 = vor.u32 %v6493_v22, %v5150_v23  ;;  %v5142_v28 = vld [vmem:[%s9967_s2 + $0x458] sm:$0xf0] }
 0x11f   : > { %1752 = vmatmul.bf16.vlgmr.msrb.gmra.mxu0 %v7914_v13  ;;  %1844 = vmatpush.bf16.msra.mxu1 %v4865_v42  ;;  %v5073_v30 = vor.u32 %v6473_v25, %v5070_v27  ;;  %v6471_v31 = vld [vmem:[%s9967_s2 + $0x3b4] sm:$0xf]  ;;  %v5062_v32 = vld [vmem:[%s9967_s2 + $0x3b8] sm:$0xf0]  ;;  %v6489_v38 = vld [vmem:[%s9967_s2 + $0x444] sm:$0xf] }
 0x120   : > { %1863 = vmatpush.bf16.msrb.mxu2 %v4929_v44  ;;  %1827 = vmatpush.bf16.msra.mxu0 %v4785_v53  ;;  %v5134_v41 = vld [vmem:[%s9967_s2 + $0x448] sm:$0xf0]  ;;  %v5065_v42 = vor.u32 %v6471_v31, %v5062_v32  ;;  %v6469_v43 = vld [vmem:[%s9967_s2 + $0x3a4] sm:$0xf]  ;;  %v6487_v44 = vld [vmem:[%s9967_s2 + $0x434] sm:$0xf] }
 0x121   : > { %1881 = vmatpush.bf16.msrb.mxu3 %v5001_v4  ;;  %v6491_v4 = vld [vmem:[%s9967_s2 + $0x454] sm:$0xf]  ;;  %v5126_v62 = vld [vmem:[%s9967_s2 + $0x438] sm:$0xf0]  ;;  %v6485_v49 = vld [vmem:[%s9967_s2 + $0x424] sm:$0xf] }
 0x122   : > { %v5145_v37 = vor.u32 %v6491_v4, %v5142_v28  ;;  %v6467_v45 = vld [vmem:[%s9967_s2 + $0x394] sm:$0xf]  ;;  %v5046_v46 = vld [vmem:[%s9967_s2 + $0x398] sm:$0xf0]  ;;  %v5118_v50 = vld [vmem:[%s9967_s2 + $0x428] sm:$0xf0] }
 0x123   : > { %1845 = vmatpush.bf16.msra.mxu1 %v4857_v58  ;;  %v5049_v53 = vor.u32 %v6467_v45, %v5046_v46  ;;  %v6465_v54 = vld [vmem:[%s9967_s2 + $0x384] sm:$0xf]  ;;  %v5038_v57 = vld [vmem:[%s9967_s2 + $0x388] sm:$0xf0]  ;;  %v6483_v58 = vld [vmem:[%s9967_s2 + $0x414] sm:$0xf] }
 0x124   : > { %1896 = vmatpush.bf16.msrb.mxu0 %v5097_v16  ;;  %1864 = vmatpush.bf16.msrb.mxu2 %v4921_v61  ;;  %v5110_v16 = vld [vmem:[%s9967_s2 + $0x418] sm:$0xf0]  ;;  %v5041_v60 = vor.u32 %v6465_v54, %v5038_v57  ;;  %v6481_v61 = vld [vmem:[%s9967_s2 + $0x404] sm:$0xf]  ;;  %v5102_v63 = vld [vmem:[%s9967_s2 + $0x408] sm:$0xf0] }
 0x125   : > { %1882 = vmatpush.bf16.msrb.mxu3 %v4993_v48  ;;  %v5129_v48 = vor.u32 %v6487_v44, %v5126_v62 }
 0x126   : > { %1790 = vmatmul.bf16.vlgmr.msra.gmra.mxu2 %v7524_v8  ;;  %v6352_v8 = vld [vmem:[#allocation3 + $0x88] sm:$0xf0] }
 0x127   : > { %1809 = vmatmul.bf16.vlgmr.msra.gmra.mxu3 %v7496_v56  ;;  %v4910_v56 = vld [vmem:[%s9967_s2 + $0x288] sm:$0xf0]  ;;  %v8016_v15 = vor.u32 %v6352_v8, %v4584_v9  ;;  %1846 = vmatpush.bf16.msra.mxu1 %v4849_v7  ;;  %v5113_v8 = vor.u32 %v6483_v58, %v5110_v16 }
 0x128   : > { %v4913_v3 = vor.u32 %v6433_v18, %v4910_v56  ;;  %1897 = vmatpush.bf16.msrb.mxu0 %v5089_v14  ;;  %v5105_v18 = vor.u32 %v6481_v61, %v5102_v63 }
 0x129   : > { %1771 = vmatmul.bf16.vlgmr.msrb.gmra.mxu1 %v7418_v52  ;;  %v6495_v52 = vld [vmem:[%s9967_s2 + $0x474] sm:$0xf]  ;;  %1883 = vmatpush.bf16.msrb.mxu3 %v4985_v0 }
 0x12a   : > { %v5161_v21 = vor.u32 %v6495_v52, %v5158_v6  ;;  %1865 = vmatpush.bf16.msrb.mxu2 %v4913_v3 }
 0x12c   : > { %1915 = vmatpush.bf16.msrb.mxu1 %v5161_v21  ;;  %1898 = vmatpush.bf16.msrb.mxu0 %v5081_v24 }
 0x12d   : > { %1884 = vmatpush.bf16.msrb.mxu3 %v4977_v17 }
 0x12f   : > { %1757 = vmatmul.bf16.gmra.mxu0 %v8016_v15 }
 0x130   : > { %1916 = vmatpush.bf16.msrb.mxu1 %v5153_v12  ;;  %1899 = vmatpush.bf16.msrb.mxu0 %v5073_v30 }
 0x134   : > { %1917 = vmatpush.bf16.msrb.mxu1 %v5145_v37  ;;  %1900 = vmatpush.bf16.msrb.mxu0 %v5065_v42 }
 0x136   : > { %1795 = vmatmul.bf16.gmra.mxu2 %v7606_v29  ;;  %v5137_v29 = vor.u32 %v6489_v38, %v5134_v41 }
 0x137   : > { %1814 = vmatmul.bf16.gmra.mxu3 %v7594_v55  ;;  %v5054_v55 = vld [vmem:[%s9967_s2 + $0x3a8] sm:$0xf0] }
 0x138   : > { %1918 = vmatpush.bf16.msrb.mxu1 %v5137_v29 }
 0x139   : > { %1776 = vmatmul.bf16.gmra.mxu1 %v7563_v33  ;;  %v5057_v33 = vor.u32 %v6469_v43, %v5054_v55 }
 0x13b   : > { %1901 = vmatpush.bf16.msrb.mxu0 %v5057_v33 }
 0x13c   : > { %1919 = vmatpush.bf16.msrb.mxu1 %v5129_v48 }
 0x13f   : > { %1828 = vmatmul.bf16.vlgmr.msra.gmra.mxu0 %v7501_v59  ;;  %v5121_v59 = vor.u32 %v6485_v49, %v5118_v50 }
 0x140   : > { %1902 = vmatpush.bf16.msrb.mxu0 %v5049_v53 }
 0x141   : > { %1920 = vmatpush.bf16.msrb.mxu1 %v5121_v59 }
 0x144   : > { %1903 = vmatpush.bf16.msrb.mxu0 %v5041_v60 }
 0x145   : > { %1921 = vmatpush.bf16.msrb.mxu1 %v5113_v8 }
 0x146   : > { %1866 = vmatmul.bf16.vlgmr.msrb.gmra.mxu2 %v7742_v26 }
 0x147   : > { %1885 = vmatmul.bf16.vlgmr.msrb.gmra.mxu3 %v7716_v11 }
 0x149   : > { %1847 = vmatmul.bf16.vlgmr.msra.gmra.mxu1 %v7681_v39 }
 0x14a   : > { %1922 = vmatpush.bf16.msrb.mxu1 %v5105_v18 }
 0x14f   : > { %1833 = vmatmul.bf16.gmra.mxu0 %v7608_v35 }
 0x152   : > { %v1601_v11 = vpop.f32.mrf.mxu0 }
 0x156   : > { %1871 = vmatmul.bf16.gmra.mxu2 %v7871_v47 }
 0x157   : > { %1890 = vmatmul.bf16.gmra.mxu3 %v7850_v36 }
 0x159   : > { %1852 = vmatmul.bf16.gmra.mxu1 %v7782_v51 }
 0x15a   : > { %v1603_v26 = vpop.f32.mrf.mxu0 }
 0x15f   : > { %1904 = vmatmul.bf16.vlgmr.msrb.gmra.mxu0 %v7727_v19 }
 0x166   : > { %v1620_v56 = vpop.f32.mrf.mxu1 }
 0x168   : > { %v1639_v0 = vpop.f32.mrf.mxu2 }
 0x169   : > { %v1658_v1 = vpop.f32.mrf.mxu3  ;;  %1923 = vmatmul.bf16.vlgmr.msrb.gmra.mxu1 %v7914_v13 }
 0x16c   : > { %v1606_v39 = vpop.f32.mrf.mxu0 }
 0x16e   : > { %v1622_v34 = vpop.f32.mrf.mxu1 }
 0x16f   : > { %1909 = vmatmul.bf16.gmra.mxu0 %v7853_v40  ;;  %v1621_v40 = vadd.f32 %v1620_v56, %v1601_v11 }
 0x170   : > { %v1641_v35 = vpop.f32.mrf.mxu2 }
 0x171   : > { %v1660_v2 = vpop.f32.mrf.mxu3  ;;  %v1640_v20 = vadd.f32 %v1639_v0, %v1621_v40 }
 0x173   : > { %v1659_v21 = vadd.f32 %v1658_v1, %v1640_v20 }
 0x174   : > { %v8111_v47 = vpop.f32.mrf.mxu0 }
 0x176   : > { %v1625_v36 = vpop.f32.mrf.mxu1 }
 0x177   : > { %v1626_v32 = vadd.f32 %v1625_v36, %v1606_v39 }
 0x179   : > { %1928 = vmatmul.bf16.gmra.mxu1 %v8016_v15  ;;  %v1644_v51 = vpop.f32.mrf.mxu2  ;;  %v1623_v15 = vadd.f32 %v1622_v34, %v1603_v26 }
 0x17a   : > { %v1663_v5 = vpop.f32.mrf.mxu3  ;;  %v1645_v42 = vadd.f32 %v1644_v51, %v1626_v32 }
 0x17b   : > { %v1642_v25 = vadd.f32 %v1641_v35, %v1623_v15 }
 0x17c   : > { %v1677_v19 = vpop.f32.mrf.mxu0  ;;  %v1664_v33 = vadd.f32 %v1663_v5, %v1645_v42 }
 0x17d   : > { %v1678_v23 = vadd.f32 %v1677_v19, %v1659_v21  ;;  %v1661_v30 = vadd.f32 %v1660_v2, %v1642_v25 }
 0x17e   : > { %v8114_v52 = vpop.f32.mrf.mxu1 }
 0x17f   : > { %v1628_v21 = vadd.f32 %v8114_v52, %v8111_v47 }
 0x181   : > { %v8116_v6 = vpop.f32.mrf.mxu2 }
 0x182   : > { %v8118_v7 = vpop.f32.mrf.mxu3  ;;  %v1647_v25 = vadd.f32 %v8116_v6, %v1628_v21  ;;  %v6527_v21 = vld [vmem:[%s9968_s3 + $0xec] sm:$0xf0] }
 0x184   : > { %v1679_v13 = vpop.f32.mrf.mxu0 }
 0x185   : > { %v1680_v37 = vadd.f32 %v1679_v13, %v1661_v30 }
 0x186   : > { %v1696_v9 = vpop.f32.mrf.mxu1 }
 0x187   : > { %v1697_v27 = vadd.f32 %v1696_v9, %v1678_v23 }
 0x189   : > { %v1715_v3 = vpop.f32.mrf.mxu2 }
 0x18a   : > { %v1734_v14 = vpop.f32.mrf.mxu3  ;;  %v1716_v28 = vadd.f32 %v1715_v3, %v1697_v27 }
 0x18c   : > { %v1682_v17 = vpop.f32.mrf.mxu0  ;;  %v1735_v38 = vadd.f32 %v1734_v14, %v1716_v28  ;;  %v1666_v28 = vadd.f32 %v8118_v7, %v1647_v25  ;;  %v6858_v25 = vld [vmem:[%s9970_s5] sm:$0xff] }
 0x18d   : > { %v1683_v45 = vadd.f32 %v1682_v17, %v1664_v33 }
 0x18e   : > { %v1698_v10 = vpop.f32.mrf.mxu1 }
 0x18f   : > { %v1699_v43 = vadd.f32 %v1698_v10, %v1680_v37 }
 0x191   : > { %v1717_v22 = vpop.f32.mrf.mxu2 }
 0x192   : > { %v1736_v12 = vpop.f32.mrf.mxu3  ;;  %v1718_v44 = vadd.f32 %v1717_v22, %v1699_v43 }
 0x194   : > { %v8120_v24 = vpop.f32.mrf.mxu0  ;;  %v1737_v46 = vadd.f32 %v1736_v12, %v1718_v44 }
 0x195   : > { %v1685_v32 = vadd.f32 %v8120_v24, %v1666_v28 }
 0x196   : > { %v1701_v4 = vpop.f32.mrf.mxu1 }
 0x197   : > { %v1702_v50 = vadd.f32 %v1701_v4, %v1683_v45 }
 0x199   : > { %v1720_v31 = vpop.f32.mrf.mxu2 }
 0x19a   : > { %v1739_v62 = vpop.f32.mrf.mxu3  ;;  %v1721_v57 = vadd.f32 %v1720_v31, %v1702_v50 }
 0x19c   : > { %v1753_v41 = vpop.f32.mrf.mxu0  ;;  %v1740_v58 = vadd.f32 %v1739_v62, %v1721_v57 }
 0x19d   : > { %v8122_v55 = vadd.f32 %v1753_v41, %v1735_v38 }
 0x19e   : > { %v8124_v29 = vpop.f32.mrf.mxu1 }
 0x19f   : > { %1938 = vrot.lane.b32.xlu0 %v8122_v55, %s6924_s13  ;;  %v1704_v52 = vadd.f32 %v8124_v29, %v1685_v32 }
 0x1a1   : > { %v1722_v48 = vpop.f32.mrf.mxu2 }
 0x1a2   : > { %v1741_v59 = vpop.f32.mrf.mxu3  ;;  %v1723_v6 = vadd.f32 %v1722_v48, %v1704_v52 }
 0x1a4   : > { %v1755_v49 = vpop.f32.mrf.mxu0 }
 0x1a5   : > { %v8128_v53 = vadd.f32 %v1755_v49, %v1737_v46  ;;  %v1742_v49 = vadd.f32 %v1741_v59, %v1723_v6 }
 0x1a6   : > { %v1772_v54 = vpop.f32.mrf.mxu1 }
 0x1a7   : > { %1940 = vrot.lane.b32.xlu1 %v8128_v53, %s6924_s13 }
 0x1a9   : > { %v1791_v8 = vpop.f32.mrf.mxu2 }
 0x1aa   : > { %v1810_v63 = vpop.f32.mrf.mxu3  ;;  %v1792_v9 = vadd.f32 %v1791_v8, %v1772_v54 }
 0x1ac   : > { %v1758_v16 = vpop.f32.mrf.mxu0  ;;  %v1811_v14 = vadd.f32 %v1810_v63, %v1792_v9 }
 0x1ad   : > { %v8132_v60 = vadd.f32 %v1758_v16, %v1740_v58 }
 0x1ae   : > { %v1774_v61 = vpop.f32.mrf.mxu1 }
 0x1af   : > { %1942 = vrot.lane.b32.xlu2 %v8132_v60, %s6924_s13 }
 0x1b1   : > { %v1793_v26 = vpop.f32.mrf.mxu2 }
 0x1b2   : > { %v1812_v0 = vpop.f32.mrf.mxu3  ;;  %v1794_v22 = vadd.f32 %v1793_v26, %v1774_v61 }
 0x1b4   : > { %v1760_v18 = vpop.f32.mrf.mxu0  ;;  %v1813_v4 = vadd.f32 %v1812_v0, %v1794_v22  ;;  %v5404_v22 = vld [vmem:[%s9968_s3 + $0x1e0] sm:$0xf] }
 0x1b5   : > { %v8143_v58 = vadd.f32 %v1760_v18, %v1742_v49 }
 0x1b6   : > { %v1777_v11 = vpop.f32.mrf.mxu1 }
 0x1b9   : > { %v1796_v39 = vpop.f32.mrf.mxu2 }
 0x1ba   : > { %v1815_v2 = vpop.f32.mrf.mxu3  ;;  %v1797_v37 = vadd.f32 %v1796_v39, %v1777_v11 }
 0x1bc   : > { %v1829_v56 = vpop.f32.mrf.mxu0  ;;  %v1816_v33 = vadd.f32 %v1815_v2, %v1797_v37 }
 0x1bd   : > { %v1830_v17 = vadd.f32 %v1829_v56, %v1811_v14 }
 0x1be   : > { %v1779_v1 = vpop.f32.mrf.mxu1 }
 0x1c1   : > { %v1798_v36 = vpop.f32.mrf.mxu2 }
 0x1c2   : > { %v1817_v19 = vpop.f32.mrf.mxu3  ;;  %v1799_v50 = vadd.f32 %v1798_v36, %v1779_v1 }
 0x1c4   : > { %v1831_v34 = vpop.f32.mrf.mxu0  ;;  %v1818_v63 = vadd.f32 %v1817_v19, %v1799_v50  ;;  %v5228_v50 = vld [vmem:[%s9968_s3 + $0x80] sm:$0xf] }
 0x1c5   : > { %v1832_v30 = vadd.f32 %v1831_v34, %v1813_v4 }
 0x1c6   : > { %v1848_v35 = vpop.f32.mrf.mxu1 }
 0x1c7   : > { %v1849_v15 = vadd.f32 %v1848_v35, %v1830_v17 }
 0x1c9   : > { %v1867_v3 = vpop.f32.mrf.mxu2 }
 0x1ca   : > { %v1886_v20 = vpop.f32.mrf.mxu3  ;;  %v1868_v27 = vadd.f32 %v1867_v3, %v1849_v15 }
 0x1cc   : > { %v1834_v51 = vpop.f32.mrf.mxu0  ;;  %v1887_v31 = vadd.f32 %v1886_v20, %v1868_v27  ;;  %v8179_v27 = vperm.slane %v6858_v25, 1 }
 0x1cd   : > { %v1835_v7 = vadd.f32 %v1834_v51, %v1816_v33 }
 0x1ce   : > { %v1850_v5 = vpop.f32.mrf.mxu1 }
 0x1cf   : > { %v1851_v38 = vadd.f32 %v1850_v5, %v1832_v30  ;;  %v5388_v30 = vld [vmem:[%s9968_s3 + $0x1c0] sm:$0xf] }
 0x1d1   : > { %v1869_v12 = vpop.f32.mrf.mxu2 }
 0x1d2   : > { %v1888_v41 = vpop.f32.mrf.mxu3  ;;  %v1870_v44 = vadd.f32 %v1869_v12, %v1851_v38 }
 0x1d4   : > { %v1836_v13 = vpop.f32.mrf.mxu0  ;;  %v1889_v46 = vadd.f32 %v1888_v41, %v1870_v44  ;;  %v5244_v41 = vld [vmem:[%s9968_s3 + $0xa0] sm:$0xf] }
 0x1d5   : > { %v1837_v48 = vadd.f32 %v1836_v13, %v1818_v63  ;;  %v5660_v63 = vld [vmem:[%s9968_s3 + $0x3e0] sm:$0xf] }
 0x1d6   : > { %v1853_v40 = vpop.f32.mrf.mxu1 }
 0x1d7   : > { %v1854_v24 = vadd.f32 %v1853_v40, %v1835_v7 }
 0x1d9   : > { %v1872_v45 = vpop.f32.mrf.mxu2 }
 0x1da   : > { %v1873_v16 = vadd.f32 %v1872_v45, %v1854_v24  ;;  %v1891_v29 = vpop.f32.mrf.mxu3  ;;  %v6515_v24 = vld [vmem:[%s9968_s3 + $0x8c] sm:$0xf0] }
 0x1dc   : > { %v1905_v10 = vpop.f32.mrf.mxu0  ;;  %v1892_v59 = vadd.f32 %v1891_v29, %v1873_v16  ;;  %v5532_v29 = vld [vmem:[%s9968_s3 + $0x2e0] sm:$0xf] }
 0x1dd   : > { %v1906_v42 = vadd.f32 %v1905_v10, %v1887_v31  ;;  %v5276_v10 = vld [vmem:[%s9968_s3 + $0xe0] sm:$0xf]  ;;  %v6555_v31 = vld [vmem:[%s9968_s3 + $0x1cc] sm:$0xf0] }
 0x1de   : > { %v1855_v23 = vpop.f32.mrf.mxu1  ;;  %v5277_v15 = vor.u32 %v6527_v21, %v5276_v10  ;;  %v5389_v38 = vor.u32 %v6555_v31, %v5388_v30  ;;  %v5324_v10 = vld [vmem:[%s9968_s3 + $0x140] sm:$0xf]  ;;  %v6539_v21 = vld [vmem:[%s9968_s3 + $0x14c] sm:$0xf0] }
 0x1df   : > { %v1856_v26 = vadd.f32 %v1855_v23, %v1837_v48  ;;  %v6523_v23 = vld [vmem:[%s9968_s3 + $0xcc] sm:$0xf0]  ;;  %v5325_v31 = vor.u32 %v6539_v21, %v5324_v10  ;;  %v5884_v21 = vld [vmem:[%s9968_s3 + $0x5a0] sm:$0xf] }
 0x1e0   : > { %3593 = vmatpush.bf16.msra.mxu2 %v5277_v15  ;;  %v5500_v15 = vld [vmem:[%s9968_s3 + $0x2a0] sm:$0xf]  ;;  %v6647_v10 = vld [vmem:[%s9968_s3 + $0x4ac] sm:$0xf0] }
 0x1e1   : > { %v1874_v11 = vpop.f32.mrf.mxu2 }
 0x1e2   : > { %v1875_v18 = vadd.f32 %v1874_v11, %v1856_v26  ;;  %v1893_v39 = vpop.f32.mrf.mxu3  ;;  %v5212_v11 = vld [vmem:[%s9968_s3 + $0x60] sm:$0xf]  ;;  %v6511_v26 = vld [vmem:[%s9968_s3 + $0x6c] sm:$0xf0] }
 0x1e4   : > { %v1907_v43 = vpop.f32.mrf.mxu0  ;;  %v1894_v35 = vadd.f32 %v1893_v39, %v1875_v18  ;;  %v5340_v18 = vld [vmem:[%s9968_s3 + $0x160] sm:$0xf] }
 0x1e5   : > { %v1908_v54 = vadd.f32 %v1907_v43, %v1889_v46  ;;  %v5372_v43 = vld [vmem:[%s9968_s3 + $0x1a0] sm:$0xf] }
 0x1e6   : > { %v1924_v47 = vpop.f32.mrf.mxu1 }
 0x1e7   : > { %v1925_v62 = vadd.f32 %v1924_v47, %v1906_v42  ;;  %v6519_v42 = vld [vmem:[%s9968_s3 + $0xac] sm:$0xf0] }
 0x1e8   : > { %v6551_v47 = vld [vmem:[%s9968_s3 + $0x1ac] sm:$0xf0]  ;;  %v5245_v33 = vor.u32 %v6519_v42, %v5244_v41  ;;  %v5484_v41 = vld [vmem:[%s9968_s3 + $0x280] sm:$0xf] }
 0x1e9   : > { %1958 = vrot.lane.b32.xlu0 %v1925_v62, %s6924_s13  ;;  %v5373_v49 = vor.u32 %v6551_v47, %v5372_v43  ;;  %v6579_v42 = vld [vmem:[%s9968_s3 + $0x28c] sm:$0xf0]  ;;  %v5612_v47 = vld [vmem:[%s9968_s3 + $0x380] sm:$0xf] }
 0x1ea   : > { %v6535_v43 = vld [vmem:[%s9968_s3 + $0x12c] sm:$0xf0] }
 0x1ec   : > { %v1910_v61 = vpop.f32.mrf.mxu0 }
 0x1ed   : > { %v1911_v56 = vadd.f32 %v1910_v61, %v1892_v59  ;;  %v6591_v61 = vld [vmem:[%s9968_s3 + $0x2ec] sm:$0xf0] }
 0x1ee   : > { %v1926_v57 = vpop.f32.mrf.mxu1 }
 0x1ef   : > { %v8145_v8 = vadd.f32 %v1926_v57, %v1908_v54  ;;  %v5356_v54 = vld [vmem:[%s9968_s3 + $0x180] sm:$0xf] }
 0x1f1   : > { %1960 = vrot.lane.b32.xlu1 %v8145_v8, %s6924_s13  ;;  %1944 = vrot.lane.b32.xlu0 %v8143_v58, %s6924_s13 }
 0x1f4   : > { %v1912_v34 = vpop.f32.mrf.mxu0 }
 0x1f5   : > { %v1913_v2 = vadd.f32 %v1912_v34, %v1894_v35  ;;  %v5516_v34 = vld [vmem:[%s9968_s3 + $0x2c0] sm:$0xf] }
 0x1f6   : > { %v1929_v0 = vpop.f32.mrf.mxu1 }
 0x1f7   : > { %v1930_v1 = vadd.f32 %v1929_v0, %v1911_v56  ;;  %v5533_v56 = vor.u32 %v6591_v61, %v5532_v29  ;;  %v6623_v0 = vld [vmem:[%s9968_s3 + $0x3ec] sm:$0xf0]  ;;  %v5916_v29 = vld [vmem:[%s9968_s3 + $0x5e0] sm:$0xf] }
 0x1f8   : > { %v5661_v39 = vor.u32 %v6623_v0, %v5660_v63  ;;  %v6687_v61 = vld [vmem:[%s9968_s3 + $0x5ec] sm:$0xf0] }
 0x1f9   : > { %1962 = vrot.lane.b32.xlu2 %v1930_v1, %s6924_s13  ;;  %3619 = vmatpush.bf16.msra.mxu0 %v5533_v56 }
 0x1fa   : > { %3632 = vmatpush.bf16.msra.mxu1 %v5661_v39  ;;  %v6571_v39 = vld [vmem:[%s9968_s3 + $0x24c] sm:$0xf0] }
 0x1fe   : > { %v1931_v36 = vpop.f32.mrf.mxu1 }
 0x1ff   : > { %v8152_v51 = vadd.f32 %v1931_v36, %v1913_v2  ;;  %v6587_v36 = vld [vmem:[%s9968_s3 + $0x2cc] sm:$0xf0] }
 0x201   : > { %1964 = vrot.lane.b32.xlu1 %v8152_v51, %s6924_s13 }
 0x209   : > { %v1943_v5 = vpop.permute.xlu2 %1942 }
 0x20a   : > { %v1952_v14 = vmax.f32 %v8132_v60, %v1943_v5  ;;  %v6559_v60 = vld [vmem:[%s9968_s3 + $0x1ec] sm:$0xf0]  ;;  %v5644_v5 = vld [vmem:[%s9968_s3 + $0x3c0] sm:$0xf] }
 0x20b   : > { %v5405_v28 = vor.u32 %v6559_v60, %v5404_v22  ;;  %v6583_v60 = vld [vmem:[%s9968_s3 + $0x2ac] sm:$0xf0] }
 0x20d   : > { %3606 = vmatpush.bf16.msra.mxu3 %v5405_v28  ;;  %v5501_v28 = vor.u32 %v6583_v60, %v5500_v15 }
 0x211   : > { %v1939_v19 = vpop.permute.xlu0 %1938  ;;  %3607 = vmatpush.bf16.msra.mxu3 %v5389_v38 }
 0x212   : > { %v1950_v17 = vmax.f32 %v8122_v55, %v1939_v19  ;;  %v5260_v55 = vld [vmem:[%s9968_s3 + $0xc0] sm:$0xf]  ;;  %v5213_v19 = vor.u32 %v6511_v26, %v5212_v11  ;;  %v6607_v26 = vld [vmem:[%s9968_s3 + $0x36c] sm:$0xf0] }
 0x213   : > { %v5261_v32 = vor.u32 %v6523_v23, %v5260_v55  ;;  %v5628_v55 = vld [vmem:[%s9968_s3 + $0x3a0] sm:$0xf]  ;;  %v6615_v23 = vld [vmem:[%s9968_s3 + $0x3ac] sm:$0xf0] }
 0x214   : > { %v5629_v38 = vor.u32 %v6615_v23, %v5628_v55  ;;  %v5596_v11 = vld [vmem:[%s9968_s3 + $0x360] sm:$0xf] }
 0x215   : > { %3594 = vmatpush.bf16.msra.mxu2 %v5261_v32  ;;  %3608 = vmatpush.bf16.msra.mxu3 %v5373_v49  ;;  %v5308_v32 = vld [vmem:[%s9968_s3 + $0x120] sm:$0xf] }
 0x216   : > { %v5309_v49 = vor.u32 %v6535_v43, %v5308_v32  ;;  %v5740_v23 = vld [vmem:[%s9968_s3 + $0x480] sm:$0xf]  ;;  %v6639_v32 = vld [vmem:[%s9968_s3 + $0x46c] sm:$0xf0] }
 0x219   : > { %v1941_v3 = vpop.permute.xlu1 %1940  ;;  %3595 = vmatpush.bf16.msra.mxu2 %v5245_v33 }
 0x21a   : > { %v1951_v45 = vmax.f32 %v8128_v53, %v1941_v3  ;;  %v6547_v53 = vld [vmem:[%s9968_s3 + $0x18c] sm:$0xf0]  ;;  %v5517_v3 = vor.u32 %v6587_v36, %v5516_v34 }
 0x21b   : > { %v5357_v59 = vor.u32 %v6547_v53, %v5356_v54  ;;  %v6575_v54 = vld [vmem:[%s9968_s3 + $0x26c] sm:$0xf0] }
 0x21c   : > { %3620 = vmatpush.bf16.msra.mxu0 %v5517_v3  ;;  %v6531_v53 = vld [vmem:[%s9968_s3 + $0x10c] sm:$0xf0]  ;;  %v5580_v3 = vld [vmem:[%s9968_s3 + $0x340] sm:$0xf] }
 0x21d   : > { %3609 = vmatpush.bf16.msra.mxu3 %v5357_v59  ;;  %v6651_v36 = vld [vmem:[%s9968_s3 + $0x4cc] sm:$0xf0] }
 0x220   : > { %3621 = vmatpush.bf16.msra.mxu0 %v5501_v28 }
 0x253   : > { %v1963_v13 = vpop.permute.xlu2 %1962 }
 0x254   : > { %v1972_v9 = vmax.f32 %v1930_v1, %v1963_v13  ;;  %v6543_v1 = vld [vmem:[%s9968_s3 + $0x16c] sm:$0xf0]  ;;  %v5196_v13 = vld [vmem:[%s9968_s3 + $0x40] sm:$0xf] }
 0x256   : > { %v1976_v12 = vmax.f32 %v1952_v14, %v1972_v9  ;;  %v6507_v9 = vld [vmem:[%s9968_s3 + $0x4c] sm:$0xf0] }
 0x257   : > { %v5197_v25 = vor.u32 %v6507_v9, %v5196_v13  ;;  %v5597_v13 = vor.u32 %v6607_v26, %v5596_v11 }
 0x258   : > { %v8203_v52 = vadd.f32 %v8179_v27, %v1976_v12  ;;  %v5180_v12 = vld [vmem:[%s9968_s3 + $0x20] sm:$0xf] }
 0x25a   : > { %v2013_v16 = vrot.slane %v8203_v52, 1  ;;  %v2019_v0 = vrot.slane %v8203_v52, 6 }
 0x25b   : > { %v1959_v40 = vpop.permute.xlu0 %1958 }
 0x25c   : > { %v1970_v20 = vmax.f32 %v1925_v62, %v1959_v40  ;;  %v6619_v40 = vld [vmem:[%s9968_s3 + $0x3cc] sm:$0xf0] }
 0x25d   : > { %v5645_v22 = vor.u32 %v6619_v40, %v5644_v5  ;;  %v5900_v5 = vld [vmem:[%s9968_s3 + $0x5c0] sm:$0xf]  ;;  %v6603_v40 = vld [vmem:[%s9968_s3 + $0x34c] sm:$0xf0] }
 0x25e   : > { %v1974_v4 = vmax.f32 %v1950_v17, %v1970_v20  ;;  %v5341_v20 = vor.u32 %v6543_v1, %v5340_v18  ;;  %v5452_v1 = vld [vmem:[%s9968_s3 + $0x240] sm:$0xf]  ;;  %v5581_v15 = vor.u32 %v6603_v40, %v5580_v3 }
 0x25f   : > { %3633 = vmatpush.bf16.msra.mxu1 %v5645_v22  ;;  %v5453_v9 = vor.u32 %v6571_v39, %v5452_v1  ;;  %v6679_v22 = vld [vmem:[%s9968_s3 + $0x5ac] sm:$0xf0]  ;;  %v6156_v3 = vld [vmem:[%s9968_s3 + $0x7c0] sm:$0xf] }
 0x260   : > { %v8188_v37 = vadd.f32 %v8179_v27, %v1974_v4  ;;  %v6503_v4 = vld [vmem:[%s9968_s3 + $0x2c] sm:$0xf0]  ;;  %3610 = vmatpush.bf16.msra.mxu3 %v5341_v20  ;;  %v5756_v20 = vld [vmem:[%s9968_s3 + $0x4a0] sm:$0xf]  ;;  %v5885_v55 = vor.u32 %v6679_v22, %v5884_v21 }
 0x261   : > { %v5181_v33 = vor.u32 %v6503_v4, %v5180_v12  ;;  %v5757_v60 = vor.u32 %v6647_v10, %v5756_v20  ;;  %v5868_v12 = vld [vmem:[%s9968_s3 + $0x580] sm:$0xf]  ;;  %v6675_v4 = vld [vmem:[%s9968_s3 + $0x58c] sm:$0xf0] }
 0x262   : > { %v1984_v44 = vrot.slane %v8188_v37, 1  ;;  %v1990_v62 = vrot.slane %v8188_v37, 3  ;;  %v6659_v39 = vld [vmem:[%s9968_s3 + $0x50c] sm:$0xf0]  ;;  %v6012_v20 = vld [vmem:[%s9968_s3 + $0x6a0] sm:$0xf] }
 0x263   : > { %v1961_v6 = vpop.permute.xlu1 %1960  ;;  %v1945_v30 = vpop.permute.xlu0 %1944  ;;  %3634 = vmatpush.bf16.msra.mxu1 %v5629_v38  ;;  %v5852_v38 = vld [vmem:[%s9968_s3 + $0x560] sm:$0xf]  ;;  %v6711_v10 = vld [vmem:[%s9968_s3 + $0x6ac] sm:$0xf0] }
 0x264   : > { %v1971_v7 = vmax.f32 %v8145_v8, %v1961_v6  ;;  %v6834_v46 = vpack.i.bf16 %v1990_v62, %v1984_v44  ;;  %v5229_v8 = vor.u32 %v6515_v24, %v5228_v50  ;;  %v6611_v44 = vld [vmem:[%s9968_s3 + $0x38c] sm:$0xf0]  ;;  %v1953_v62 = vmax.f32 %v8143_v58, %v1945_v30  ;;  %3611 = vmatpush.bf16.msra.mxu3 %v5325_v31  ;;  %v5468_v58 = vld [vmem:[%s9968_s3 + $0x260] sm:$0xf] }
 0x265   : > { %v6499_v50 = vld [vmem:[%s9968_s3 + $0xc] sm:$0xf0]  ;;  %v5613_v24 = vor.u32 %v6611_v44, %v5612_v47  ;;  %v5469_v59 = vor.u32 %v6575_v54, %v5468_v58  ;;  %v5869_v30 = vor.u32 %v6675_v4, %v5868_v12  ;;  %v5724_v31 = vld [vmem:[%s9968_s3 + $0x460] sm:$0xf] }
 0x266   : > { %v1975_v57 = vmax.f32 %v1951_v45, %v1971_v7  ;;  %6835 = vrot.lane.b32.xlu2 %v6834_v46, %s6924_s13  ;;  %3596 = vmatpush.bf16.msra.mxu2 %v5229_v8  ;;  %v5164_v45 = vld [vmem:[%s9968_s3] sm:$0xf]  ;;  %v5485_v7 = vor.u32 %v6579_v42, %v5484_v41  ;;  %v6655_v8 = vld [vmem:[%s9968_s3 + $0x4ec] sm:$0xf0]  ;;  %v5725_v42 = vor.u32 %v6639_v32, %v5724_v31 }
 0x267   : > { %v5165_v63 = vor.u32 %v6499_v50, %v5164_v45  ;;  %3635 = vmatpush.bf16.msra.mxu1 %v5613_v24  ;;  %v6671_v41 = vld [vmem:[%s9968_s3 + $0x56c] sm:$0xf0]  ;;  %v5708_v47 = vld [vmem:[%s9968_s3 + $0x440] sm:$0xf] }
 0x268   : > { %v8233_v48 = vadd.f32 %v8179_v27, %v1975_v57  ;;  %v5788_v57 = vld [vmem:[%s9968_s3 + $0x4e0] sm:$0xf]  ;;  %3622 = vmatpush.bf16.msra.mxu0 %v5485_v7  ;;  %3612 = vmatpush.bf16.msra.mxu3 %v5309_v49  ;;  %v5853_v43 = vor.u32 %v6671_v41, %v5852_v38  ;;  %v6635_v44 = vld [vmem:[%s9968_s3 + $0x44c] sm:$0xf0] }
 0x269   : > { %v5789_v34 = vor.u32 %v6655_v8, %v5788_v57  ;;  %v5436_v7 = vld [vmem:[%s9968_s3 + $0x220] sm:$0xf]  ;;  %v6599_v24 = vld [vmem:[%s9968_s3 + $0x32c] sm:$0xf0] }
 0x26a   : > { %v2008_v35 = vrot.slane %v8233_v48, 7  ;;  %v2002_v2 = vrot.slane %v8233_v48, 2  ;;  %3597 = vmatpush.bf16.msra.mxu2 %v5213_v19  ;;  %v6683_v19 = vld [vmem:[%s9968_s3 + $0x5cc] sm:$0xf0]  ;;  %v5564_v49 = vld [vmem:[%s9968_s3 + $0x320] sm:$0xf] }
 0x26b   : > { %3636 = vmatpush.bf16.msra.mxu1 %v5597_v13  ;;  %v5692_v58 = vld [vmem:[%s9968_s3 + $0x420] sm:$0xf]  ;;  %v6631_v54 = vld [vmem:[%s9968_s3 + $0x42c] sm:$0xf0] }
 0x26c   : > { %v6844_v14 = vpack.i.bf16 %v2013_v16, %v2008_v35  ;;  %v6839_v17 = vpack.i.bf16 %v2002_v2, %v8233_v48  ;;  %v5917_v35 = vor.u32 %v6687_v61, %v5916_v29  ;;  %v5772_v2 = vld [vmem:[%s9968_s3 + $0x4c0] sm:$0xf]  ;;  %3623 = vmatpush.bf16.msra.mxu0 %v5469_v59  ;;  %v6563_v61 = vld [vmem:[%s9968_s3 + $0x20c] sm:$0xf0] }
 0x26d   : > { %v5820_v57 = vld [vmem:[%s9968_s3 + $0x520] sm:$0xf]  ;;  %v6595_v59 = vld [vmem:[%s9968_s3 + $0x30c] sm:$0xf0] }
 0x26e   : > { %6845 = vrot.lane.b32.xlu1 %v6844_v14, %s6924_s13  ;;  %6840 = vrot.lane.b32.xlu0 %v6839_v17, %s6924_s13  ;;  %v5773_v14 = vor.u32 %v6651_v36, %v5772_v2  ;;  %v5901_v17 = vor.u32 %v6683_v19, %v5900_v5  ;;  %v5420_v8 = vld [vmem:[%s9968_s3 + $0x200] sm:$0xf]  ;;  %v6751_v5 = vld [vmem:[%s9968_s3 + $0x7ec] sm:$0xf0] }
 0x26f   : > { %3598 = vmatpush.bf16.msra.mxu2 %v5197_v25  ;;  %v6643_v25 = vld [vmem:[%s9968_s3 + $0x48c] sm:$0xf0]  ;;  %3637 = vmatpush.bf16.msra.mxu1 %v5581_v15  ;;  %v5421_v11 = vor.u32 %v6563_v61, %v5420_v8  ;;  %v6172_v36 = vld [vmem:[%s9968_s3 + $0x7e0] sm:$0xf]  ;;  %v6013_v15 = vor.u32 %v6711_v10, %v6012_v20  ;;  %v6553_v61 = vld [vmem:[%s9968_s3 + $0x1c4] sm:$0xf] }
 0x270   : > { %3624 = vmatpush.bf16.msra.mxu0 %v5453_v9  ;;  %v5741_v28 = vor.u32 %v6643_v25, %v5740_v23  ;;  %v6173_v19 = vor.u32 %v6751_v5, %v6172_v36  ;;  %v6028_v13 = vld [vmem:[%s9968_s3 + $0x6c0] sm:$0xf]  ;;  %v6715_v9 = vld [vmem:[%s9968_s3 + $0x6cc] sm:$0xf0]  ;;  %v6513_v10 = vld [vmem:[%s9968_s3 + $0x84] sm:$0xf] }
 0x271   : > { %v6029_v40 = vor.u32 %v6715_v9, %v6028_v13  ;;  %v6140_v21 = vld [vmem:[%s9968_s3 + $0x7a0] sm:$0xf]  ;;  %v6743_v22 = vld [vmem:[%s9968_s3 + $0x7ac] sm:$0xf0]  ;;  %v5246_v13 = vld [vmem:[%s9968_s3 + $0xb0] sm:$0xf0] }
 0x272   : > { %v6707_v23 = vld [vmem:[%s9968_s3 + $0x68c] sm:$0xf0]  ;;  %v6124_v25 = vld [vmem:[%s9968_s3 + $0x780] sm:$0xf]  ;;  %v6549_v9 = vld [vmem:[%s9968_s3 + $0x1a4] sm:$0xf] }
 0x273   : > { %v1965_v6 = vpop.permute.xlu1 %1964  ;;  %3599 = vmatpush.bf16.msra.mxu2 %v5181_v33  ;;  %v5709_v33 = vor.u32 %v6635_v44, %v5708_v47  ;;  %v6739_v12 = vld [vmem:[%s9968_s3 + $0x78c] sm:$0xf0]  ;;  %v6108_v32 = vld [vmem:[%s9968_s3 + $0x760] sm:$0xf] }
 0x274   : > { %v1973_v46 = vmax.f32 %v8152_v51, %v1965_v6  ;;  %v5292_v51 = vld [vmem:[%s9968_s3 + $0x100] sm:$0xf]  ;;  %v6667_v6 = vld [vmem:[%s9968_s3 + $0x54c] sm:$0xf0] }
 0x275   : > { %v5293_v18 = vor.u32 %v6531_v53, %v5292_v51  ;;  %v5565_v51 = vor.u32 %v6599_v24, %v5564_v49  ;;  %v5693_v53 = vor.u32 %v6631_v54, %v5692_v58  ;;  %v6703_v31 = vld [vmem:[%s9968_s3 + $0x66c] sm:$0xf0]  ;;  %v6092_v44 = vld [vmem:[%s9968_s3 + $0x740] sm:$0xf]  ;;  %v6557_v49 = vld [vmem:[%s9968_s3 + $0x1e4] sm:$0xf] }
 0x276   : > { %v1977_v16 = vmax.f32 %v1953_v62, %v1973_v46  ;;  %v5836_v62 = vld [vmem:[%s9968_s3 + $0x540] sm:$0xf]  ;;  %v6567_v46 = vld [vmem:[%s9968_s3 + $0x22c] sm:$0xf0]  ;;  %v1988_v24 = vrot.slane %v8188_v37, 2 }
 0x277   : > { %3600 = vmatpush.bf16.msra.mxu2 %v5165_v63  ;;  %3613 = vmatpush.bf16.msra.mxu3 %v5293_v18  ;;  %v5837_v45 = vor.u32 %v6667_v6, %v5836_v62  ;;  %v5437_v50 = vor.u32 %v6567_v46, %v5436_v7  ;;  %v5548_v63 = vld [vmem:[%s9968_s3 + $0x300] sm:$0xf]  ;;  %v6735_v41 = vld [vmem:[%s9968_s3 + $0x76c] sm:$0xf0]  ;;  %v5278_v46 = vld [vmem:[%s9968_s3 + $0xf0] sm:$0xf0] }
 0x278   : > { %v1982_v56 = vadd.f32 %v8179_v27, %v1977_v16  ;;  %v6663_v16 = vld [vmem:[%s9968_s3 + $0x52c] sm:$0xf0]  ;;  %3638 = vmatpush.bf16.msra.mxu1 %v5565_v51  ;;  %v5549_v26 = vor.u32 %v6595_v59, %v5548_v63  ;;  %v5804_v18 = vld [vmem:[%s9968_s3 + $0x500] sm:$0xf]  ;;  %v6521_v51 = vld [vmem:[%s9968_s3 + $0xc4] sm:$0xf] }
 0x279   : > { %3625 = vmatpush.bf16.msra.mxu0 %v5437_v50  ;;  %v5821_v29 = vor.u32 %v6663_v16, %v5820_v57  ;;  %v5805_v2 = vor.u32 %v6659_v39, %v5804_v18  ;;  %v6699_v47 = vld [vmem:[%s9968_s3 + $0x64c] sm:$0xf0]  ;;  %v5406_v50 = vld [vmem:[%s9968_s3 + $0x1f0] sm:$0xf0]  ;;  %v6517_v39 = vld [vmem:[%s9968_s3 + $0xa4] sm:$0xf] }
 0x27a   : > { %v6849_v27 = vpack.i.bf16 %v1982_v56, %v2019_v0  ;;  %v5676_v56 = vld [vmem:[%s9968_s3 + $0x400] sm:$0xf]  ;;  %v6627_v0 = vld [vmem:[%s9968_s3 + $0x40c] sm:$0xf0]  ;;  %v5409_v8 = vor.u32 %v6557_v49, %v5406_v50  ;;  %v5390_v63 = vld [vmem:[%s9968_s3 + $0x1d0] sm:$0xf0] }
 0x27b   : > { %3645 = vmatpush.bf16.msrb.mxu2 %v5789_v34  ;;  %3658 = vmatpush.bf16.msrb.mxu3 %v5917_v35  ;;  %v5677_v1 = vor.u32 %v6627_v0, %v5676_v56  ;;  %v6044_v34 = vld [vmem:[%s9968_s3 + $0x6e0] sm:$0xf]  ;;  %v6719_v35 = vld [vmem:[%s9968_s3 + $0x6ec] sm:$0xf0]  ;;  %v6529_v49 = vld [vmem:[%s9968_s3 + $0x104] sm:$0xf] }
 0x27c   : > { %6850 = vrot.lane.b32.xlu2 %v6849_v27, %s6924_s13  ;;  %v6045_v27 = vor.u32 %v6719_v35, %v6044_v34  ;;  %3639 = vmatpush.bf16.msra.mxu1 %v5549_v26  ;;  %v6731_v62 = vld [vmem:[%s9968_s3 + $0x74c] sm:$0xf0]  ;;  %v5948_v26 = vld [vmem:[%s9968_s3 + $0x620] sm:$0xf]  ;;  %v5294_v50 = vld [vmem:[%s9968_s3 + $0x110] sm:$0xf0] }
 0x27d   : > { %3626 = vmatpush.bf16.msra.mxu0 %v5421_v11  ;;  %v6695_v56 = vld [vmem:[%s9968_s3 + $0x62c] sm:$0xf0]  ;;  %v6076_v0 = vld [vmem:[%s9968_s3 + $0x720] sm:$0xf]  ;;  %s242_s13 = sand.u32 1, %s6914_s22  }
 0x27e   : > { %v5949_v18 = vor.u32 %v6695_v56, %v5948_v26  ;;  %v5932_v35 = vld [vmem:[%s9968_s3 + $0x600] sm:$0xf]  ;;  %v6691_v36 = vld [vmem:[%s9968_s3 + $0x60c] sm:$0xf0]  ;;  %s243_s15 = scalar_lea.vmem [#allocation4], %s242_s13  ;;  %s4354_s17 = scalar_lea.sflag [#allocation5], %s242_s13 }
 0x27f   : > { %3646 = vmatpush.bf16.msrb.mxu2 %v5773_v14  ;;  %3659 = vmatpush.bf16.msrb.mxu3 %v5901_v17  ;;  %v6747_v14 = vld [vmem:[%s9968_s3 + $0x7cc] sm:$0xf0]  ;;  %v6060_v5 = vld [vmem:[%s9968_s3 + $0x700] sm:$0xf]  ;;  %s4364_s12 = sshll.u32 %s243_s15, 4  ;;  %s4365_s12 = int_to_ptr.vmem [resolvable:$true] %s4364_s12 }
 0x280   : > { %3684 = vmatpush.bf16.msrb.mxu1 %v6173_v19  ;;  %v6157_v17 = vor.u32 %v6747_v14, %v6156_v3  ;;  %v6723_v19 = vld [vmem:[%s9968_s3 + $0x70c] sm:$0xf0]  ;;  %v5374_v3 = vld [vmem:[%s9968_s3 + $0x1b0] sm:$0xf0] }
 0x281   : > { %3671 = vmatpush.bf16.msrb.mxu0 %v6045_v27  ;;  %v5393_v27 = vor.u32 %v6553_v61, %v5390_v63  ;;  %v6061_v14 = vor.u32 %v6723_v19, %v6060_v5  ;;  %v5377_v20 = vor.u32 %v6549_v9, %v5374_v3  ;;  %v5297_v63 = vor.u32 %v6529_v49, %v5294_v50 }
 0x283   : > { %3647 = vmatpush.bf16.msrb.mxu2 %v5757_v60  ;;  %3660 = vmatpush.bf16.msrb.mxu3 %v5885_v55  ;;  %v6141_v60 = vor.u32 %v6743_v22, %v6140_v21  ;;  %v5996_v55 = vld [vmem:[%s9968_s3 + $0x680] sm:$0xf]  ;;  %v5230_v21 = vld [vmem:[%s9968_s3 + $0x90] sm:$0xf0]  ;;  %v6545_v22 = vld [vmem:[%s9968_s3 + $0x184] sm:$0xf] }
 0x284   : > { %3685 = vmatpush.bf16.msrb.mxu1 %v6157_v17  ;;  %v5997_v4 = vor.u32 %v6707_v23, %v5996_v55  ;;  %v5249_v17 = vor.u32 %v6517_v39, %v5246_v13  ;;  %v6509_v23 = vld [vmem:[%s9968_s3 + $0x64] sm:$0xf] }
 0x285   : > { %3672 = vmatpush.bf16.msrb.mxu0 %v6029_v40  ;;  %v5933_v40 = vor.u32 %v6691_v36, %v5932_v35  ;;  %v5790_v35 = vld [vmem:[%s9968_s3 + $0x4f0] sm:$0xf0] }
 0x287   : > { %3648 = vmatpush.bf16.msrb.mxu2 %v5741_v28  ;;  %3661 = vmatpush.bf16.msrb.mxu3 %v5869_v30  ;;  %v6125_v28 = vor.u32 %v6739_v12, %v6124_v25  ;;  %v5980_v30 = vld [vmem:[%s9968_s3 + $0x660] sm:$0xf]  ;;  %v5214_v25 = vld [vmem:[%s9968_s3 + $0x70] sm:$0xf0]  ;;  %v6541_v12 = vld [vmem:[%s9968_s3 + $0x164] sm:$0xf] }
 0x288   : > { %3686 = vmatpush.bf16.msrb.mxu1 %v6141_v60  ;;  %v5981_v38 = vor.u32 %v6703_v31, %v5980_v30  ;;  %v5233_v60 = vor.u32 %v6513_v10, %v5230_v21  ;;  %v6505_v31 = vld [vmem:[%s9968_s3 + $0x44] sm:$0xf]  ;;  %v5646_v21 = vld [vmem:[%s9968_s3 + $0x3d0] sm:$0xf0] }
 0x289   : > { %3673 = vmatpush.bf16.msrb.mxu0 %v6013_v15  ;;  %v5358_v15 = vld [vmem:[%s9968_s3 + $0x190] sm:$0xf0]  ;;  %v6617_v10 = vld [vmem:[%s9968_s3 + $0x3c4] sm:$0xf] }
 0x28a   : > { %v5361_v55 = vor.u32 %v6545_v22, %v5358_v15  ;;  %v6649_v22 = vld [vmem:[%s9968_s3 + $0x4c4] sm:$0xf]  ;;  %v5774_v15 = vld [vmem:[%s9968_s3 + $0x4d0] sm:$0xf0] }
 0x28b   : > { %3649 = vmatpush.bf16.msrb.mxu2 %v5725_v42  ;;  %3662 = vmatpush.bf16.msrb.mxu3 %v5853_v43  ;;  %v6109_v42 = vor.u32 %v6735_v41, %v6108_v32  ;;  %v5964_v43 = vld [vmem:[%s9968_s3 + $0x640] sm:$0xf]  ;;  %v5198_v32 = vld [vmem:[%s9968_s3 + $0x50] sm:$0xf0] }
 0x28c   : > { %3687 = vmatpush.bf16.msrb.mxu1 %v6125_v28  ;;  %v5965_v6 = vor.u32 %v6699_v47, %v5964_v43  ;;  %v5217_v28 = vor.u32 %v6509_v23, %v5214_v25  ;;  %v5326_v41 = vld [vmem:[%s9968_s3 + $0x150] sm:$0xf0]  ;;  %v6501_v47 = vld [vmem:[%s9968_s3 + $0x24] sm:$0xf]  ;;  %v5649_v25 = vor.u32 %v6617_v10, %v5646_v21 }
 0x28d   : > { %3674 = vmatpush.bf16.msrb.mxu0 %v5997_v4  ;;  %v5342_v4 = vld [vmem:[%s9968_s3 + $0x170] sm:$0xf0]  ;;  %v6633_v21 = vld [vmem:[%s9968_s3 + $0x444] sm:$0xf] }
 0x28e   : > { %v5345_v30 = vor.u32 %v6541_v12, %v5342_v4  ;;  %v6581_v12 = vld [vmem:[%s9968_s3 + $0x2a4] sm:$0xf]  ;;  %v5502_v4 = vld [vmem:[%s9968_s3 + $0x2b0] sm:$0xf0] }
 0x28f   : > { %3650 = vmatpush.bf16.msrb.mxu2 %v5709_v33  ;;  %3663 = vmatpush.bf16.msrb.mxu3 %v5837_v45  ;;  %v6093_v33 = vor.u32 %v6731_v62, %v6092_v44  ;;  %v6525_v45 = vld [vmem:[%s9968_s3 + $0xe4] sm:$0xf]  ;;  %v5182_v44 = vld [vmem:[%s9968_s3 + $0x30] sm:$0xf0] }
 0x290   : > { %3688 = vmatpush.bf16.msrb.mxu1 %v6109_v42  ;;  %v5281_v16 = vor.u32 %v6525_v45, %v5278_v46  ;;  %v5201_v42 = vor.u32 %v6505_v31, %v5198_v32  ;;  %v6533_v62 = vld [vmem:[%s9968_s3 + $0x124] sm:$0xf]  ;;  %v5166_v46 = vld [vmem:[%s9968_s3 + $0x10] sm:$0xf0] }
 0x291   : > { %3675 = vmatpush.bf16.msrb.mxu0 %v5981_v38  ;;  %v6537_v38 = vld [vmem:[%s9968_s3 + $0x144] sm:$0xf]  ;;  %v5630_v32 = vld [vmem:[%s9968_s3 + $0x3b0] sm:$0xf0] }
 0x292   : > { %v5329_v43 = vor.u32 %v6537_v38, %v5326_v41  ;;  %v6613_v31 = vld [vmem:[%s9968_s3 + $0x3a4] sm:$0xf]  ;;  %v5582_v10 = vld [vmem:[%s9968_s3 + $0x350] sm:$0xf0] }
 0x293   : > { %3651 = vmatpush.bf16.msrb.mxu2 %v5693_v53  ;;  %3664 = vmatpush.bf16.msrb.mxu3 %v5821_v29  ;;  %v5262_v29 = vld [vmem:[%s9968_s3 + $0xd0] sm:$0xf0]  ;;  %v6645_v38 = vld [vmem:[%s9968_s3 + $0x4a4] sm:$0xf] }
 0x294   : > { %3689 = vmatpush.bf16.msrb.mxu1 %v6093_v33  ;;  %v5185_v33 = vor.u32 %v6501_v47, %v5182_v44  ;;  %v5886_v47 = vld [vmem:[%s9968_s3 + $0x5b0] sm:$0xf0]  ;;  %v5505_v44 = vor.u32 %v6581_v12, %v5502_v4 }
 0x295   : > { %3676 = vmatpush.bf16.msrb.mxu0 %v5965_v6  ;;  %v5310_v6 = vld [vmem:[%s9968_s3 + $0x130] sm:$0xf0] }
 0x296   : > { %v5313_v45 = vor.u32 %v6533_v62, %v5310_v6  ;;  %v5633_v62 = vor.u32 %v6613_v31, %v5630_v32  ;;  %v6577_v6 = vld [vmem:[%s9968_s3 + $0x284] sm:$0xf]  ;;  %v5438_v12 = vld [vmem:[%s9968_s3 + $0x230] sm:$0xf0] }
 0x297   : > { %3652 = vmatpush.bf16.msrb.mxu2 %v5677_v1  ;;  %3665 = vmatpush.bf16.msrb.mxu3 %v5805_v2  ;;  %v6727_v1 = vld [vmem:[%s9968_s3 + $0x72c] sm:$0xf0]  ;;  %v5265_v2 = vor.u32 %v6521_v51, %v5262_v29  ;;  %v6621_v51 = vld [vmem:[%s9968_s3 + $0x3e4] sm:$0xf]  ;;  %v2000_v29 = vrot.slane %v8233_v48, 1 }
 0x298   : > { %v6077_v34 = vor.u32 %v6727_v1, %v6076_v0  ;;  %v6653_v1 = vld [vmem:[%s9968_s3 + $0x4e4] sm:$0xf]  ;;  %v5566_v31 = vld [vmem:[%s9968_s3 + $0x330] sm:$0xf0] }
 0x299   : > { %3677 = vmatpush.bf16.msrb.mxu0 %v5949_v18  ;;  %v6629_v32 = vld [vmem:[%s9968_s3 + $0x424] sm:$0xf] }
 0x29a   : > { %3690 = vmatpush.bf16.msrb.mxu1 %v6077_v34 }
 0x29d   : > { %3678 = vmatpush.bf16.msrb.mxu0 %v5933_v40  ;;  %v6585_v40 = vld [vmem:[%s9968_s3 + $0x2c4] sm:$0xf] }
 0x29e   : > { %3691 = vmatpush.bf16.msrb.mxu1 %v6061_v14  ;;  %v5518_v14 = vld [vmem:[%s9968_s3 + $0x2d0] sm:$0xf0] }
 0x29f   : > { %v5521_v23 = vor.u32 %v6585_v40, %v5518_v14  ;;  %v5454_v40 = vld [vmem:[%s9968_s3 + $0x250] sm:$0xf0] }
 0x2c0   : > { %v6836_v7 = vpop.permute.xlu2 %6835 }
 0x2c1   : > { %v6838_v58 = vunpack.i.h.bf16 %v6836_v7  ;;  %v6837_v54 = vunpack.i.l.bf16 %v6836_v7  ;;  %v6497_v7 = vld [vmem:[%s9968_s3 + $0x4] sm:$0xf] }
 0x2c3   : > { %v2030_v53 = vsel %vm371_vm0, %v1988_v24, %v6838_v58  ;;  %v2029_v57 = vsel %vm371_vm0, %v8188_v37, %v6837_v54  ;;  %v6589_v24 = vld [vmem:[%s9968_s3 + $0x2e4] sm:$0xf]  ;;  %v5169_v58 = vor.u32 %v6497_v7, %v5166_v46  ;;  %v5534_v54 = vld [vmem:[%s9968_s3 + $0x2f0] sm:$0xf0] }
 0x2c4   : > { %v8576_v59 = vpack.c.bf16 %v2030_v53, %v2030_v53  ;;  %v8578_v11 = vpack.c.bf16 %v2029_v57, %v2029_v57  ;;  %v5662_v53 = vld [vmem:[%s9968_s3 + $0x3f0] sm:$0xf0]  ;;  %v2006_v57 = vrot.slane %v8233_v48, 6  ;;  %v5537_v39 = vor.u32 %v6589_v24, %v5534_v54 }
 0x2c5   : > { %v5665_v34 = vor.u32 %v6621_v51, %v5662_v53  ;;  %v5918_v48 = vld [vmem:[%s9968_s3 + $0x5f0] sm:$0xf0]  ;;  %v6673_v51 = vld [vmem:[%s9968_s3 + $0x584] sm:$0xf] }
 0x2c6   : > { %3601 = vmatmul.bf16.vlgmr.msra.gmra.mxu2 %v8578_v11  ;;  %3614 = vmatmul.bf16.vlgmr.msra.gmra.mxu3 %v8576_v59  ;;  %v5614_v24 = vld [vmem:[%s9968_s3 + $0x390] sm:$0xf0] }
 0x2c7   : > { %3697 = vmatpush.bf16.msra.mxu2 %v5281_v16  ;;  %3710 = vmatpush.bf16.msra.mxu3 %v5409_v8  ;;  %v1994_v8 = vrot.slane %v8188_v37, 7  ;;  %v6685_v37 = vld [vmem:[%s9968_s3 + $0x5e4] sm:$0xf]  ;;  %v5742_v54 = vld [vmem:[%s9968_s3 + $0x490] sm:$0xf0] }
 0x2c8   : > { %v5870_v53 = vld [vmem:[%s9968_s3 + $0x590] sm:$0xf0] }
 0x2cb   : > { %3698 = vmatpush.bf16.msra.mxu2 %v5265_v2  ;;  %3711 = vmatpush.bf16.msra.mxu3 %v5393_v27 }
 0x2cf   : > { %3699 = vmatpush.bf16.msra.mxu2 %v5249_v17  ;;  %3712 = vmatpush.bf16.msra.mxu3 %v5377_v20  ;;  %v5793_v17 = vor.u32 %v6653_v1, %v5790_v35  ;;  %v5921_v20 = vor.u32 %v6685_v37, %v5918_v48  ;;  %v5598_v1 = vld [vmem:[%s9968_s3 + $0x370] sm:$0xf0]  ;;  %v6669_v35 = vld [vmem:[%s9968_s3 + $0x564] sm:$0xf] }
 0x2d0   : > { %v5854_v37 = vld [vmem:[%s9968_s3 + $0x570] sm:$0xf0] }
 0x2d3   : > { %3700 = vmatpush.bf16.msra.mxu2 %v5233_v60  ;;  %3713 = vmatpush.bf16.msra.mxu3 %v5361_v55  ;;  %v6681_v60 = vld [vmem:[%s9968_s3 + $0x5c4] sm:$0xf]  ;;  %v5902_v55 = vld [vmem:[%s9968_s3 + $0x5d0] sm:$0xf0] }
 0x2d6   : > { %v6851_v41 = vpop.permute.xlu2 %6850 }
 0x2d7   : > { %3701 = vmatpush.bf16.msra.mxu2 %v5217_v28  ;;  %3714 = vmatpush.bf16.msra.mxu3 %v5345_v30  ;;  %v5777_v28 = vor.u32 %v6649_v22, %v5774_v15  ;;  %v5905_v30 = vor.u32 %v6681_v60, %v5902_v55  ;;  %v6853_v7 = vunpack.i.h.bf16 %v6851_v41  ;;  %v6852_v46 = vunpack.i.l.bf16 %v6851_v41  ;;  %v5710_v22 = vld [vmem:[%s9968_s3 + $0x450] sm:$0xf0]  ;;  %v6665_v15 = vld [vmem:[%s9968_s3 + $0x544] sm:$0xf] }
 0x2d8   : > { %v5838_v60 = vld [vmem:[%s9968_s3 + $0x550] sm:$0xf0]  ;;  %v5713_v4 = vor.u32 %v6633_v21, %v5710_v22  ;;  %v6661_v41 = vld [vmem:[%s9968_s3 + $0x524] sm:$0xf] }
 0x2db   : > { %3702 = vmatpush.bf16.msra.mxu2 %v5201_v42  ;;  %3715 = vmatpush.bf16.msra.mxu3 %v5329_v43  ;;  %v5758_v42 = vld [vmem:[%s9968_s3 + $0x4b0] sm:$0xf0]  ;;  %v6677_v43 = vld [vmem:[%s9968_s3 + $0x5a4] sm:$0xf] }
 0x2dc   : > { %v5761_v49 = vor.u32 %v6645_v38, %v5758_v42  ;;  %v5889_v50 = vor.u32 %v6677_v43, %v5886_v47  ;;  %v5694_v38 = vld [vmem:[%s9968_s3 + $0x430] sm:$0xf0]  ;;  %v6561_v43 = vld [vmem:[%s9968_s3 + $0x204] sm:$0xf] }
 0x2dd   : > { %v5822_v42 = vld [vmem:[%s9968_s3 + $0x530] sm:$0xf0] }
 0x2df   : > { %3703 = vmatpush.bf16.msra.mxu2 %v5185_v33  ;;  %3716 = vmatpush.bf16.msra.mxu3 %v5313_v45  ;;  %v5486_v33 = vld [vmem:[%s9968_s3 + $0x290] sm:$0xf0]  ;;  %v6609_v45 = vld [vmem:[%s9968_s3 + $0x384] sm:$0xf] }
 0x2e0   : > { %v6846_v16 = vpop.permute.xlu1 %6845  ;;  %v6841_v61 = vpop.permute.xlu0 %6840 }
 0x2e1   : > { %v6848_v26 = vunpack.i.h.bf16 %v6846_v16  ;;  %v6847_v56 = vunpack.i.l.bf16 %v6846_v16  ;;  %v6843_v0 = vunpack.i.h.bf16 %v6841_v61  ;;  %v6842_v18 = vunpack.i.l.bf16 %v6841_v61 }
 0x2e2   : > { %v2023_v16 = vrot.slane %v8203_v52, 7 }
 0x2e3   : > { %v2034_v2 = vsel %vm371_vm0, %v8203_v52, %v6848_v26  ;;  %v2033_v27 = vsel %vm371_vm0, %v2006_v57, %v6847_v56  ;;  %v2032_v36 = vsel %vm371_vm0, %v2000_v29, %v6843_v0  ;;  %v2031_v5 = vsel %vm371_vm0, %v1994_v8, %v6842_v18  ;;  %3704 = vmatpush.bf16.msra.mxu2 %v5169_v58  ;;  %v6641_v58 = vld [vmem:[%s9968_s3 + $0x484] sm:$0xf]  ;;  %v5470_v26 = vld [vmem:[%s9968_s3 + $0x270] sm:$0xf0] }
 0x2e4   : > { %v8710_v19 = vpack.c.bf16 %v2034_v2, %v2034_v2  ;;  %v8712_v13 = vpack.c.bf16 %v2033_v27, %v2033_v27  ;;  %v8714_v9 = vpack.c.bf16 %v2032_v36, %v2032_v36  ;;  %v8716_v3 = vpack.c.bf16 %v2031_v5, %v2031_v5  ;;  %3717 = vmatpush.bf16.msra.mxu3 %v5297_v63  ;;  %v6573_v63 = vld [vmem:[%s9968_s3 + $0x264] sm:$0xf] }
 0x2e5   : > { %v2017_v57 = vrot.slane %v8203_v52, 5  ;;  %v5489_v8 = vor.u32 %v6577_v6, %v5486_v33  ;;  %v5617_v29 = vor.u32 %v6609_v45, %v5614_v24  ;;  %v5745_v61 = vor.u32 %v6641_v58, %v5742_v54  ;;  %v6605_v18 = vld [vmem:[%s9968_s3 + $0x364] sm:$0xf]  ;;  %v5550_v33 = vld [vmem:[%s9968_s3 + $0x310] sm:$0xf0] }
 0x2e6   : > { %3627 = vmatmul.bf16.vlgmr.msra.gmra.mxu0 %v8716_v3  ;;  %3640 = vmatmul.bf16.vlgmr.msra.gmra.mxu1 %v8714_v9  ;;  %v2036_v56 = vsel %vm371_vm0, %v2023_v16, %v6853_v7  ;;  %v5873_v52 = vor.u32 %v6673_v51, %v5870_v53  ;;  %v5473_v48 = vor.u32 %v6573_v63, %v5470_v26  ;;  %v6569_v5 = vld [vmem:[%s9968_s3 + $0x244] sm:$0xf]  ;;  %v5806_v24 = vld [vmem:[%s9968_s3 + $0x510] sm:$0xf0]  ;;  %v6560_v63 = vld [vmem:[%s9968_s3 + $0x1f4] sm:$0xf0] }
 0x2e7   : > { %3653 = vmatmul.bf16.vlgmr.msrb.gmra.mxu2 %v8712_v13  ;;  %3666 = vmatmul.bf16.vlgmr.msrb.gmra.mxu3 %v8710_v19  ;;  %v2035_v0 = vsel %vm371_vm0, %v2017_v57, %v6852_v46  ;;  %v8822_v2 = vpack.c.bf16 %v2036_v56, %v2036_v56  ;;  %v5601_v36 = vor.u32 %v6605_v18, %v5598_v1  ;;  %v6593_v6 = vld [vmem:[%s9968_s3 + $0x304] sm:$0xf]  ;;  %v6046_v54 = vld [vmem:[%s9968_s3 + $0x6f0] sm:$0xf0]  ;;  %v5284_v57 = vld [vmem:[%s9968_s3 + $0xe8] sm:$0xf] }
 0x2e8   : > { %3723 = vmatpush.bf16.msra.mxu0 %v5537_v39  ;;  %3736 = vmatpush.bf16.msra.mxu1 %v5665_v34  ;;  %v6637_v39 = vld [vmem:[%s9968_s3 + $0x464] sm:$0xf]  ;;  %v5726_v34 = vld [vmem:[%s9968_s3 + $0x470] sm:$0xf0]  ;;  %v8824_v27 = vpack.c.bf16 %v2035_v0, %v2035_v0  ;;  %v5457_v55 = vor.u32 %v6569_v5, %v5454_v40  ;;  %v5697_v45 = vor.u32 %v6629_v32, %v5694_v38  ;;  %v5396_v5 = vld [vmem:[%s9968_s3 + $0x1c8] sm:$0xf] }
 0x2e9   : > { %3749 = vmatpush.bf16.msrb.mxu2 %v5793_v17  ;;  %3762 = vmatpush.bf16.msrb.mxu3 %v5921_v20  ;;  %v5729_v14 = vor.u32 %v6637_v39, %v5726_v34  ;;  %v5857_v17 = vor.u32 %v6669_v35, %v5854_v37  ;;  %v6601_v20 = vld [vmem:[%s9968_s3 + $0x344] sm:$0xf]  ;;  %v5825_v7 = vor.u32 %v6661_v41, %v5822_v42  ;;  %v6174_v53 = vld [vmem:[%s9968_s3 + $0x7f0] sm:$0xf0]  ;;  %v6556_v40 = vld [vmem:[%s9968_s3 + $0x1d4] sm:$0xf0] }
 0x2ea   : > { %v6625_v46 = vld [vmem:[%s9968_s3 + $0x404] sm:$0xf]  ;;  %v6030_v1 = vld [vmem:[%s9968_s3 + $0x6d0] sm:$0xf0]  ;;  %v5397_v22 = vor.u32 %v6556_v40, %v5396_v5 }
 0x2eb   : > { %v6717_v58 = vld [vmem:[%s9968_s3 + $0x6e4] sm:$0xf]  ;;  %v6158_v37 = vld [vmem:[%s9968_s3 + $0x7d0] sm:$0xf0] }
 0x2ec   : > { %3724 = vmatpush.bf16.msra.mxu0 %v5521_v23  ;;  %3737 = vmatpush.bf16.msra.mxu1 %v5649_v25  ;;  %v5585_v23 = vor.u32 %v6601_v20, %v5582_v10  ;;  %v6565_v25 = vld [vmem:[%s9968_s3 + $0x224] sm:$0xf]  ;;  %v6049_v0 = vor.u32 %v6717_v58, %v6046_v54  ;;  %v6014_v10 = vld [vmem:[%s9968_s3 + $0x6b0] sm:$0xf0]  ;;  %v5220_v58 = vld [vmem:[%s9968_s3 + $0x68] sm:$0xf] }
 0x2ed   : > { %3750 = vmatpush.bf16.msrb.mxu2 %v5777_v28  ;;  %3763 = vmatpush.bf16.msrb.mxu3 %v5905_v30  ;;  %v5841_v28 = vor.u32 %v6665_v15, %v5838_v60  ;;  %v6597_v30 = vld [vmem:[%s9968_s3 + $0x324] sm:$0xf]  ;;  %v5441_v47 = vor.u32 %v6565_v25, %v5438_v12  ;;  %v6142_v60 = vld [vmem:[%s9968_s3 + $0x7b0] sm:$0xf0]  ;;  %v5380_v25 = vld [vmem:[%s9968_s3 + $0x1a8] sm:$0xf] }
 0x2ee   : > { %v6749_v51 = vld [vmem:[%s9968_s3 + $0x7e4] sm:$0xf]  ;;  %v6552_v12 = vld [vmem:[%s9968_s3 + $0x1b4] sm:$0xf0]  ;;  %v6126_v42 = vld [vmem:[%s9968_s3 + $0x790] sm:$0xf0] }
 0x2ef   : > { %v6713_v18 = vld [vmem:[%s9968_s3 + $0x6c4] sm:$0xf]  ;;  %v5381_v38 = vor.u32 %v6552_v12, %v5380_v25  ;;  %v6512_v54 = vld [vmem:[%s9968_s3 + $0x74] sm:$0xf0]  ;;  %v6078_v40 = vld [vmem:[%s9968_s3 + $0x730] sm:$0xf0] }
 0x2f0   : > { %3725 = vmatpush.bf16.msra.mxu0 %v5505_v44  ;;  %3738 = vmatpush.bf16.msra.mxu1 %v5633_v62  ;;  %v5569_v44 = vor.u32 %v6597_v30, %v5566_v31  ;;  %v5422_v62 = vld [vmem:[%s9968_s3 + $0x210] sm:$0xf0]  ;;  %v6745_v35 = vld [vmem:[%s9968_s3 + $0x7c4] sm:$0xf] }
 0x2f1   : > { %3751 = vmatpush.bf16.msrb.mxu2 %v5761_v49  ;;  %3764 = vmatpush.bf16.msrb.mxu3 %v5889_v50  ;;  %v5678_v49 = vld [vmem:[%s9968_s3 + $0x410] sm:$0xf0]  ;;  %v6657_v50 = vld [vmem:[%s9968_s3 + $0x504] sm:$0xf]  ;;  %v5425_v16 = vor.u32 %v6561_v43, %v5422_v62  ;;  %v5236_v43 = vld [vmem:[%s9968_s3 + $0x88] sm:$0xf] }
 0x2f2   : > { %v5681_v26 = vor.u32 %v6625_v46, %v5678_v49  ;;  %v5809_v56 = vor.u32 %v6657_v50, %v5806_v24  ;;  %v6709_v20 = vld [vmem:[%s9968_s3 + $0x6a4] sm:$0xf]  ;;  %v5998_v31 = vld [vmem:[%s9968_s3 + $0x690] sm:$0xf0]  ;;  %v6548_v62 = vld [vmem:[%s9968_s3 + $0x194] sm:$0xf0] }
 0x2f3   : > { %v6741_v15 = vld [vmem:[%s9968_s3 + $0x7a4] sm:$0xf]  ;;  %v6110_v24 = vld [vmem:[%s9968_s3 + $0x770] sm:$0xf0] }
 0x2f4   : > { %3726 = vmatpush.bf16.msra.mxu0 %v5489_v8  ;;  %3739 = vmatpush.bf16.msra.mxu1 %v5617_v29  ;;  %v5553_v8 = vor.u32 %v6593_v6, %v5550_v33  ;;  %v6528_v29 = vld [vmem:[%s9968_s3 + $0xf4] sm:$0xf0]  ;;  %v6705_v30 = vld [vmem:[%s9968_s3 + $0x684] sm:$0xf] }
 0x2f5   : > { %3752 = vmatpush.bf16.msrb.mxu2 %v5745_v61  ;;  %3765 = vmatpush.bf16.msrb.mxu3 %v5873_v52  ;;  %v5412_v61 = vld [vmem:[%s9968_s3 + $0x1e8] sm:$0xf]  ;;  %v6177_v52 = vor.u32 %v6749_v51, %v6174_v53  ;;  %v5285_v39 = vor.u32 %v6528_v29, %v5284_v57  ;;  %v6737_v41 = vld [vmem:[%s9968_s3 + $0x784] sm:$0xf]  ;;  %v6001_v6 = vor.u32 %v6705_v30, %v5998_v31  ;;  %v6544_v53 = vld [vmem:[%s9968_s3 + $0x174] sm:$0xf0] }
 0x2f6   : > { %3679 = vmatmul.bf16.vlgmr.msrb.gmra.mxu0 %v8824_v27  ;;  %3692 = vmatmul.bf16.vlgmr.msrb.gmra.mxu1 %v8822_v2  ;;  %v5413_v34 = vor.u32 %v6560_v63, %v5412_v61  ;;  %v6129_v33 = vor.u32 %v6737_v41, %v6126_v42  ;;  %v6733_v50 = vld [vmem:[%s9968_s3 + $0x764] sm:$0xf]  ;;  %v5348_v51 = vld [vmem:[%s9968_s3 + $0x168] sm:$0xf]  ;;  %v5966_v29 = vld [vmem:[%s9968_s3 + $0x650] sm:$0xf0]  ;;  %v5221_v61 = vor.u32 %v6512_v54, %v5220_v58 }
 0x2f7   : > { %3705 = vmatmul.bf16.vlgmr.msra.gmra.mxu2 %v8578_v11  ;;  %3718 = vmatmul.bf16.vlgmr.msra.gmra.mxu3 %v8576_v59  ;;  %v5349_v63 = vor.u32 %v6544_v53, %v5348_v51  ;;  %v6725_v5 = vld [vmem:[%s9968_s3 + $0x724] sm:$0xf]  ;;  %v5300_v30 = vld [vmem:[%s9968_s3 + $0x108] sm:$0xf]  ;;  %v6532_v31 = vld [vmem:[%s9968_s3 + $0x114] sm:$0xf0] }
 0x2f8   : > { %3727 = vmatpush.bf16.msra.mxu0 %v5473_v48  ;;  %3740 = vmatpush.bf16.msra.mxu1 %v5601_v36  ;;  %v5268_v48 = vld [vmem:[%s9968_s3 + $0xc8] sm:$0xf]  ;;  %v6524_v36 = vld [vmem:[%s9968_s3 + $0xd4] sm:$0xf0] }
 0x2f9   : > { %3753 = vmatpush.bf16.msrb.mxu2 %v5729_v14  ;;  %3766 = vmatpush.bf16.msrb.mxu3 %v5857_v17  ;;  %v6033_v14 = vor.u32 %v6713_v18, %v6030_v1  ;;  %v6161_v17 = vor.u32 %v6745_v35, %v6158_v37  ;;  %v5269_v21 = vor.u32 %v6524_v36, %v5268_v48  ;;  %v5332_v18 = vld [vmem:[%s9968_s3 + $0x148] sm:$0xf]  ;;  %v6540_v1 = vld [vmem:[%s9968_s3 + $0x154] sm:$0xf0]  ;;  %v6693_v35 = vld [vmem:[%s9968_s3 + $0x624] sm:$0xf] }
 0x2fa   : > { %v5950_v37 = vld [vmem:[%s9968_s3 + $0x630] sm:$0xf0]  ;;  %v5333_v36 = vor.u32 %v6540_v1, %v5332_v18  ;;  %v5668_v41 = vld [vmem:[%s9968_s3 + $0x3e8] sm:$0xf]  ;;  %v6624_v42 = vld [vmem:[%s9968_s3 + $0x3f4] sm:$0xf0] }
 0x2fb   : > { %v5652_v51 = vld [vmem:[%s9968_s3 + $0x3c8] sm:$0xf]  ;;  %v6620_v53 = vld [vmem:[%s9968_s3 + $0x3d4] sm:$0xf0] }
 0x2fc   : > { %3728 = vmatpush.bf16.msra.mxu0 %v5457_v55  ;;  %3741 = vmatpush.bf16.msra.mxu1 %v5585_v23  ;;  %v5252_v55 = vld [vmem:[%s9968_s3 + $0xa8] sm:$0xf]  ;;  %v6520_v23 = vld [vmem:[%s9968_s3 + $0xb4] sm:$0xf0] }
 0x2fd   : > { %3754 = vmatpush.bf16.msrb.mxu2 %v5713_v4  ;;  %3767 = vmatpush.bf16.msrb.mxu3 %v5841_v28  ;;  %v6017_v4 = vor.u32 %v6709_v20, %v6014_v10  ;;  %v6145_v28 = vor.u32 %v6741_v15, %v6142_v60  ;;  %v5253_v32 = vor.u32 %v6520_v23, %v5252_v55  ;;  %v5316_v20 = vld [vmem:[%s9968_s3 + $0x128] sm:$0xf]  ;;  %v6536_v10 = vld [vmem:[%s9968_s3 + $0x134] sm:$0xf0]  ;;  %v5934_v60 = vld [vmem:[%s9968_s3 + $0x610] sm:$0xf0] }
 0x2fe   : > { %v6081_v15 = vor.u32 %v6725_v5, %v6078_v40  ;;  %v6721_v55 = vld [vmem:[%s9968_s3 + $0x704] sm:$0xf]  ;;  %v6062_v23 = vld [vmem:[%s9968_s3 + $0x710] sm:$0xf0]  ;;  %v5317_v12 = vor.u32 %v6536_v10, %v5316_v20  ;;  %v5636_v18 = vld [vmem:[%s9968_s3 + $0x3a8] sm:$0xf] }
 0x2ff   : > { %v6616_v1 = vld [vmem:[%s9968_s3 + $0x3b4] sm:$0xf0]  ;;  %v5492_v5 = vld [vmem:[%s9968_s3 + $0x288] sm:$0xf] }
 0x300   : > { %3729 = vmatpush.bf16.msra.mxu0 %v5441_v47  ;;  %3742 = vmatpush.bf16.msra.mxu1 %v5569_v44  ;;  %v6516_v47 = vld [vmem:[%s9968_s3 + $0x94] sm:$0xf0]  ;;  %v5364_v44 = vld [vmem:[%s9968_s3 + $0x188] sm:$0xf] }
 0x301   : > { %3755 = vmatpush.bf16.msrb.mxu2 %v5697_v45  ;;  %3768 = vmatpush.bf16.msrb.mxu3 %v5825_v7  ;;  %v6701_v45 = vld [vmem:[%s9968_s3 + $0x664] sm:$0xf]  ;;  %v5982_v7 = vld [vmem:[%s9968_s3 + $0x670] sm:$0xf0]  ;;  %v5237_v46 = vor.u32 %v6516_v47, %v5236_v43  ;;  %v5365_v49 = vor.u32 %v6548_v62, %v5364_v44  ;;  %v5796_v43 = vld [vmem:[%s9968_s3 + $0x4e8] sm:$0xf]  ;;  %v6065_v44 = vor.u32 %v6721_v55, %v6062_v23 }
 0x302   : > { %v5985_v57 = vor.u32 %v6701_v45, %v5982_v7  ;;  %v6656_v62 = vld [vmem:[%s9968_s3 + $0x4f4] sm:$0xf0]  ;;  %v5301_v7 = vor.u32 %v6532_v31, %v5300_v30  ;;  %v5620_v20 = vld [vmem:[%s9968_s3 + $0x388] sm:$0xf] }
 0x303   : > { %v5797_v58 = vor.u32 %v6656_v62, %v5796_v43  ;;  %v6580_v40 = vld [vmem:[%s9968_s3 + $0x294] sm:$0xf0]  ;;  %v5604_v30 = vld [vmem:[%s9968_s3 + $0x368] sm:$0xf] }
 0x304   : > { %3730 = vmatpush.bf16.msra.mxu0 %v5425_v16  ;;  %3743 = vmatpush.bf16.msra.mxu1 %v5553_v8  ;;  %v6113_v16 = vor.u32 %v6733_v50, %v6110_v24  ;;  %v6697_v8 = vld [vmem:[%s9968_s3 + $0x644] sm:$0xf]  ;;  %v5524_v50 = vld [vmem:[%s9968_s3 + $0x2c8] sm:$0xf]  ;;  %v6588_v24 = vld [vmem:[%s9968_s3 + $0x2d4] sm:$0xf0]  ;;  %v5493_v55 = vor.u32 %v6580_v40, %v5492_v5 }
 0x305   : > { %3756 = vmatpush.bf16.msrb.mxu2 %v5681_v26  ;;  %3769 = vmatpush.bf16.msrb.mxu3 %v5809_v56  ;;  %v6729_v26 = vld [vmem:[%s9968_s3 + $0x744] sm:$0xf]  ;;  %v6094_v56 = vld [vmem:[%s9968_s3 + $0x750] sm:$0xf0]  ;;  %v6612_v10 = vld [vmem:[%s9968_s3 + $0x394] sm:$0xf0] }
 0x306   : > { %v5621_v23 = vor.u32 %v6612_v10, %v5620_v20  ;;  %v6608_v31 = vld [vmem:[%s9968_s3 + $0x374] sm:$0xf0]  ;;  %v5812_v5 = vld [vmem:[%s9968_s3 + $0x508] sm:$0xf] }
 0x307   : > { %3731 = vmatmul.bf16.vlgmr.msra.gmra.mxu0 %v8716_v3  ;;  %3744 = vmatmul.bf16.vlgmr.msra.gmra.mxu1 %v8714_v9  ;;  %v6572_v62 = vld [vmem:[%s9968_s3 + $0x254] sm:$0xf0]  ;;  %v6180_v20 = vld [vmem:[%s9968_s3 + $0x7e8] sm:$0xf] }
 0x308   : > { %3775 = vmatpush.bf16.msrb.mxu0 %v6049_v0  ;;  %3788 = vmatpush.bf16.msrb.mxu1 %v6177_v52  ;;  %v5204_v0 = vld [vmem:[%s9968_s3 + $0x48] sm:$0xf]  ;;  %v6508_v52 = vld [vmem:[%s9968_s3 + $0x54] sm:$0xf0] }
 0x309   : > { %3801 = vmatpush.bf16.msra.mxu2 %v5285_v39  ;;  %3814 = vmatpush.bf16.msra.mxu3 %v5413_v34  ;;  %v5969_v39 = vor.u32 %v6697_v8, %v5966_v29  ;;  %v6097_v34 = vor.u32 %v6729_v26, %v6094_v56  ;;  %v5205_v48 = vor.u32 %v6508_v52, %v5204_v0  ;;  %v5908_v8 = vld [vmem:[%s9968_s3 + $0x5c8] sm:$0xf]  ;;  %v6684_v29 = vld [vmem:[%s9968_s3 + $0x5d4] sm:$0xf0] }
 0x30a   : > { %3757 = vmatmul.bf16.vlgmr.msrb.gmra.mxu2 %v8712_v13  ;;  %3770 = vmatmul.bf16.vlgmr.msrb.gmra.mxu3 %v8710_v19  ;;  %v5508_v26 = vld [vmem:[%s9968_s3 + $0x2a8] sm:$0xf]  ;;  %v6584_v56 = vld [vmem:[%s9968_s3 + $0x2b4] sm:$0xf0]  ;;  %v5909_v52 = vor.u32 %v6684_v29, %v5908_v8 }
 0x30b   : > { %v5572_v8 = vld [vmem:[%s9968_s3 + $0x328] sm:$0xf]  ;;  %v6600_v29 = vld [vmem:[%s9968_s3 + $0x334] sm:$0xf0] }
 0x30c   : > { %3776 = vmatpush.bf16.msrb.mxu0 %v6033_v14  ;;  %3789 = vmatpush.bf16.msrb.mxu1 %v6161_v17  ;;  %v5188_v14 = vld [vmem:[%s9968_s3 + $0x28] sm:$0xf]  ;;  %v6504_v17 = vld [vmem:[%s9968_s3 + $0x34] sm:$0xf0] }
 0x30d   : > { %3802 = vmatpush.bf16.msra.mxu2 %v5269_v21  ;;  %3815 = vmatpush.bf16.msra.mxu3 %v5397_v22  ;;  %v6689_v21 = vld [vmem:[%s9968_s3 + $0x604] sm:$0xf]  ;;  %v5953_v22 = vor.u32 %v6693_v35, %v5950_v37  ;;  %v5189_v25 = vor.u32 %v6504_v17, %v5188_v14  ;;  %v5892_v35 = vld [vmem:[%s9968_s3 + $0x5a8] sm:$0xf]  ;;  %v6680_v37 = vld [vmem:[%s9968_s3 + $0x5b4] sm:$0xf0] }
 0x30e   : > { %v5937_v47 = vor.u32 %v6689_v21, %v5934_v60  ;;  %v5893_v17 = vor.u32 %v6680_v37, %v5892_v35  ;;  %v5748_v21 = vld [vmem:[%s9968_s3 + $0x488] sm:$0xf]  ;;  %v6676_v60 = vld [vmem:[%s9968_s3 + $0x594] sm:$0xf0] }
 0x30f   : > { %v6660_v40 = vld [vmem:[%s9968_s3 + $0x514] sm:$0xf0] }
 0x310   : > { %3777 = vmatpush.bf16.msrb.mxu0 %v6017_v4  ;;  %3790 = vmatpush.bf16.msrb.mxu1 %v6145_v28  ;;  %v5172_v4 = vld [vmem:[%s9968_s3 + $0x8] sm:$0xf]  ;;  %v6500_v28 = vld [vmem:[%s9968_s3 + $0x14] sm:$0xf0] }
 0x311   : > { %3803 = vmatpush.bf16.msra.mxu2 %v5253_v32  ;;  %3816 = vmatpush.bf16.msra.mxu3 %v5381_v38  ;;  %v5540_v32 = vld [vmem:[%s9968_s3 + $0x2e8] sm:$0xf]  ;;  %v6592_v38 = vld [vmem:[%s9968_s3 + $0x2f4] sm:$0xf0]  ;;  %v5173_v45 = vor.u32 %v6500_v28, %v5172_v4 }
 0x312   : > { %v6752_v10 = vld [vmem:[%s9968_s3 + $0x7f4] sm:$0xf0] }
 0x314   : > { %3778 = vmatpush.bf16.msrb.mxu0 %v6001_v6  ;;  %3791 = vmatpush.bf16.msrb.mxu1 %v6129_v33  ;;  %v5924_v6 = vld [vmem:[%s9968_s3 + $0x5e8] sm:$0xf]  ;;  %v6688_v33 = vld [vmem:[%s9968_s3 + $0x5f4] sm:$0xf0] }
 0x315   : > { %3804 = vmatpush.bf16.msra.mxu2 %v5237_v46  ;;  %3817 = vmatpush.bf16.msra.mxu3 %v5365_v49  ;;  %v5541_v46 = vor.u32 %v6592_v38, %v5540_v32  ;;  %v5669_v49 = vor.u32 %v6624_v42, %v5668_v41  ;;  %v5925_v54 = vor.u32 %v6688_v33, %v5924_v6  ;;  %v5732_v32 = vld [vmem:[%s9968_s3 + $0x468] sm:$0xf]  ;;  %v6640_v38 = vld [vmem:[%s9968_s3 + $0x474] sm:$0xf0] }
 0x316   : > { %v5860_v41 = vld [vmem:[%s9968_s3 + $0x568] sm:$0xf]  ;;  %v6672_v42 = vld [vmem:[%s9968_s3 + $0x574] sm:$0xf0]  ;;  %v5733_v6 = vor.u32 %v6640_v38, %v5732_v32 }
 0x317   : > { %v5861_v33 = vor.u32 %v6672_v42, %v5860_v41  ;;  %v6164_v41 = vld [vmem:[%s9968_s3 + $0x7c8] sm:$0xf]  ;;  %v6748_v42 = vld [vmem:[%s9968_s3 + $0x7d4] sm:$0xf0] }
 0x318   : > { %3779 = vmatpush.bf16.msrb.mxu0 %v5985_v57  ;;  %3792 = vmatpush.bf16.msrb.mxu1 %v6113_v16  ;;  %v5780_v57 = vld [vmem:[%s9968_s3 + $0x4c8] sm:$0xf]  ;;  %v6652_v16 = vld [vmem:[%s9968_s3 + $0x4d4] sm:$0xf0] }
 0x319   : > { %3805 = vmatpush.bf16.msra.mxu2 %v5221_v61  ;;  %3818 = vmatpush.bf16.msra.mxu3 %v5349_v63  ;;  %v5525_v61 = vor.u32 %v6588_v24, %v5524_v50  ;;  %v5653_v63 = vor.u32 %v6620_v53, %v5652_v51  ;;  %v5781_v0 = vor.u32 %v6652_v16, %v5780_v57  ;;  %v5844_v50 = vld [vmem:[%s9968_s3 + $0x548] sm:$0xf]  ;;  %v6668_v24 = vld [vmem:[%s9968_s3 + $0x554] sm:$0xf0] }
 0x31a   : > { %v5444_v51 = vld [vmem:[%s9968_s3 + $0x228] sm:$0xf]  ;;  %v6568_v53 = vld [vmem:[%s9968_s3 + $0x234] sm:$0xf0]  ;;  %v5845_v16 = vor.u32 %v6668_v24, %v5844_v50 }
 0x31b   : > { %v6148_v50 = vld [vmem:[%s9968_s3 + $0x7a8] sm:$0xf]  ;;  %v6744_v24 = vld [vmem:[%s9968_s3 + $0x7b4] sm:$0xf0] }
 0x31c   : > { %3780 = vmatpush.bf16.msrb.mxu0 %v5969_v39  ;;  %3793 = vmatpush.bf16.msrb.mxu1 %v6097_v34  ;;  %v5764_v39 = vld [vmem:[%s9968_s3 + $0x4a8] sm:$0xf]  ;;  %v6648_v34 = vld [vmem:[%s9968_s3 + $0x4b4] sm:$0xf0] }
 0x31d   : > { %3806 = vmatpush.bf16.msra.mxu2 %v5205_v48  ;;  %3819 = vmatpush.bf16.msra.mxu3 %v5333_v36  ;;  %v5509_v48 = vor.u32 %v6584_v56, %v5508_v26  ;;  %v5637_v36 = vor.u32 %v6616_v1, %v5636_v18  ;;  %v5765_v14 = vor.u32 %v6648_v34, %v5764_v39  ;;  %v5828_v26 = vld [vmem:[%s9968_s3 + $0x528] sm:$0xf]  ;;  %v6664_v56 = vld [vmem:[%s9968_s3 + $0x534] sm:$0xf0] }
 0x31e   : > { %v5573_v18 = vor.u32 %v6600_v29, %v5572_v8  ;;  %v6564_v1 = vld [vmem:[%s9968_s3 + $0x214] sm:$0xf0]  ;;  %v5556_v39 = vld [vmem:[%s9968_s3 + $0x308] sm:$0xf]  ;;  %v5829_v37 = vor.u32 %v6664_v56, %v5828_v26  ;;  %v9373_v8 = vld [vmem:[%s9970_s5] sm:$0xff] }
 0x31f   : > { %v6596_v34 = vld [vmem:[%s9968_s3 + $0x314] sm:$0xf0]  ;;  %v3585_v29 = vrot.slane %v9373_v8, 2 }
 0x320   : > { %3781 = vmatpush.bf16.msrb.mxu0 %v5953_v22  ;;  %3794 = vmatpush.bf16.msrb.mxu1 %v6081_v15  ;;  %v6644_v22 = vld [vmem:[%s9968_s3 + $0x494] sm:$0xf0]  ;;  %v5876_v15 = vld [vmem:[%s9968_s3 + $0x588] sm:$0xf] }
 0x321   : > { %3807 = vmatpush.bf16.msra.mxu2 %v5189_v25  ;;  %3820 = vmatpush.bf16.msra.mxu3 %v5317_v12  ;;  %v5476_v25 = vld [vmem:[%s9968_s3 + $0x268] sm:$0xf]  ;;  %v6576_v12 = vld [vmem:[%s9968_s3 + $0x274] sm:$0xf0]  ;;  %v5749_v4 = vor.u32 %v6644_v22, %v5748_v21  ;;  %v5877_v28 = vor.u32 %v6676_v60, %v5876_v15  ;;  %v6526_v21 = vld [vmem:[%s9968_s3 + $0xec] sm:$0xf]  ;;  %v5557_v15 = vor.u32 %v6596_v34, %v5556_v39 }
 0x322   : > { %v5477_v43 = vor.u32 %v6576_v12, %v5476_v25  ;;  %v5286_v60 = vld [vmem:[%s9968_s3 + $0xf8] sm:$0xf0]  ;;  %v5813_v12 = vor.u32 %v6660_v40, %v5812_v5  ;;  %v6546_v39 = vld [vmem:[%s9968_s3 + $0x18c] sm:$0xf]  ;;  %v5988_v40 = vld [vmem:[%s9968_s3 + $0x668] sm:$0xf] }
 0x323   : > { %v5289_v32 = vor.u32 %v6526_v21, %v5286_v60  ;;  %v5366_v34 = vld [vmem:[%s9968_s3 + $0x198] sm:$0xf0]  ;;  %v6736_v21 = vld [vmem:[%s9968_s3 + $0x774] sm:$0xf0] }
 0x324   : > { %3782 = vmatpush.bf16.msrb.mxu0 %v5937_v47  ;;  %3795 = vmatpush.bf16.msrb.mxu1 %v6065_v44  ;;  %v5605_v47 = vor.u32 %v6608_v31, %v5604_v30  ;;  %v5460_v44 = vld [vmem:[%s9968_s3 + $0x248] sm:$0xf]  ;;  %v6716_v31 = vld [vmem:[%s9968_s3 + $0x6d4] sm:$0xf0]  ;;  %v5222_v60 = vld [vmem:[%s9968_s3 + $0x78] sm:$0xf0] }
 0x325   : > { %3808 = vmatpush.bf16.msra.mxu2 %v5173_v45  ;;  %3821 = vmatpush.bf16.msra.mxu3 %v5301_v7  ;;  %v5588_v45 = vld [vmem:[%s9968_s3 + $0x348] sm:$0xf]  ;;  %v6604_v7 = vld [vmem:[%s9968_s3 + $0x354] sm:$0xf0] }
 0x326   : > { %v6036_v30 = vld [vmem:[%s9968_s3 + $0x6c8] sm:$0xf] }
 0x327   : > { %3783 = vmatmul.bf16.vlgmr.msrb.gmra.mxu0 %v8824_v27  ;;  %3796 = vmatmul.bf16.vlgmr.msrb.gmra.mxu1 %v8822_v2 }
 0x328   : > { %3827 = vmatpush.bf16.msra.mxu0 %v5541_v46  ;;  %3840 = vmatpush.bf16.msra.mxu1 %v5669_v49  ;;  %v5716_v46 = vld [vmem:[%s9968_s3 + $0x448] sm:$0xf]  ;;  %v6636_v49 = vld [vmem:[%s9968_s3 + $0x454] sm:$0xf0] }
 0x329   : > { %3853 = vmatpush.bf16.msrb.mxu2 %v5797_v58  ;;  %3866 = vmatpush.bf16.msrb.mxu3 %v5925_v54  ;;  %v5461_v58 = vor.u32 %v6572_v62, %v5460_v44  ;;  %v5589_v54 = vor.u32 %v6604_v7, %v5588_v45  ;;  %v5717_v57 = vor.u32 %v6636_v49, %v5716_v46  ;;  %v6554_v44 = vld [vmem:[%s9968_s3 + $0x1cc] sm:$0xf]  ;;  %v5398_v62 = vld [vmem:[%s9968_s3 + $0x1d8] sm:$0xf0]  ;;  %v6020_v45 = vld [vmem:[%s9968_s3 + $0x6a8] sm:$0xf] }
 0x32a   : > { %3809 = vmatmul.bf16.vlgmr.msra.gmra.mxu2 %v8578_v11  ;;  %3822 = vmatmul.bf16.vlgmr.msra.gmra.mxu3 %v8576_v59  ;;  %v6712_v7 = vld [vmem:[%s9968_s3 + $0x6b4] sm:$0xf0]  ;;  %v5401_v49 = vor.u32 %v6554_v44, %v5398_v62 }
 0x32c   : > { %3828 = vmatpush.bf16.msra.mxu0 %v5525_v61  ;;  %3841 = vmatpush.bf16.msra.mxu1 %v5653_v63  ;;  %v5700_v61 = vld [vmem:[%s9968_s3 + $0x428] sm:$0xf]  ;;  %v6632_v63 = vld [vmem:[%s9968_s3 + $0x434] sm:$0xf0] }
 0x32d   : > { %3854 = vmatpush.bf16.msrb.mxu2 %v5781_v0  ;;  %3867 = vmatpush.bf16.msrb.mxu3 %v5909_v52  ;;  %v5428_v0 = vld [vmem:[%s9968_s3 + $0x208] sm:$0xf]  ;;  %v5445_v52 = vor.u32 %v6568_v53, %v5444_v51  ;;  %v5701_v35 = vor.u32 %v6632_v63, %v5700_v61  ;;  %v6550_v51 = vld [vmem:[%s9968_s3 + $0x1ac] sm:$0xf]  ;;  %v5382_v53 = vld [vmem:[%s9968_s3 + $0x1b8] sm:$0xf0] }
 0x32e   : > { %v5429_v22 = vor.u32 %v6564_v1, %v5428_v0  ;;  %v6004_v61 = vld [vmem:[%s9968_s3 + $0x688] sm:$0xf]  ;;  %v6708_v63 = vld [vmem:[%s9968_s3 + $0x694] sm:$0xf0]  ;;  %v5385_v56 = vor.u32 %v6550_v51, %v5382_v53  ;;  %v5238_v1 = vld [vmem:[%s9968_s3 + $0x98] sm:$0xf0] }
 0x32f   : > { %v6132_v0 = vld [vmem:[%s9968_s3 + $0x788] sm:$0xf]  ;;  %v6534_v51 = vld [vmem:[%s9968_s3 + $0x12c] sm:$0xf]  ;;  %v5318_v53 = vld [vmem:[%s9968_s3 + $0x138] sm:$0xf0] }
 0x330   : > { %3829 = vmatpush.bf16.msra.mxu0 %v5509_v48  ;;  %3842 = vmatpush.bf16.msra.mxu1 %v5637_v36  ;;  %v5684_v48 = vld [vmem:[%s9968_s3 + $0x408] sm:$0xf]  ;;  %v6628_v36 = vld [vmem:[%s9968_s3 + $0x414] sm:$0xf0] }
 0x331   : > { %3855 = vmatpush.bf16.msrb.mxu2 %v5765_v14  ;;  %3868 = vmatpush.bf16.msrb.mxu3 %v5893_v17  ;;  %v6052_v14 = vld [vmem:[%s9968_s3 + $0x6e8] sm:$0xf]  ;;  %v6720_v17 = vld [vmem:[%s9968_s3 + $0x6f4] sm:$0xf0]  ;;  %v5685_v25 = vor.u32 %v6628_v36, %v5684_v48  ;;  %v6005_v36 = vor.u32 %v6708_v63, %v6004_v61 }
 0x332   : > { %v6692_v61 = vld [vmem:[%s9968_s3 + $0x614] sm:$0xf0]  ;;  %v6068_v63 = vld [vmem:[%s9968_s3 + $0x708] sm:$0xf] }
 0x334   : > { %3830 = vmatpush.bf16.msra.mxu0 %v5493_v55  ;;  %3843 = vmatpush.bf16.msra.mxu1 %v5621_v23  ;;  %v6558_v55 = vld [vmem:[%s9968_s3 + $0x1ec] sm:$0xf]  ;;  %v5414_v23 = vld [vmem:[%s9968_s3 + $0x1f8] sm:$0xf0] }
 0x335   : > { %3856 = vmatpush.bf16.msrb.mxu2 %v5749_v4  ;;  %3869 = vmatpush.bf16.msrb.mxu3 %v5877_v28  ;;  %v6053_v4 = vor.u32 %v6720_v17, %v6052_v14  ;;  %v6181_v28 = vor.u32 %v6752_v10, %v6180_v20  ;;  %v5417_v38 = vor.u32 %v6558_v55, %v5414_v23  ;;  %v6704_v14 = vld [vmem:[%s9968_s3 + $0x674] sm:$0xf0]  ;;  %v6116_v10 = vld [vmem:[%s9968_s3 + $0x768] sm:$0xf]  ;;  %v6542_v55 = vld [vmem:[%s9968_s3 + $0x16c] sm:$0xf] }
 0x336   : > { %v5369_v20 = vor.u32 %v6546_v39, %v5366_v34  ;;  %v5350_v23 = vld [vmem:[%s9968_s3 + $0x178] sm:$0xf0]  ;;  %v6590_v34 = vld [vmem:[%s9968_s3 + $0x2ec] sm:$0xf] }
 0x337   : > { %v5302_v39 = vld [vmem:[%s9968_s3 + $0x118] sm:$0xf0] }
 0x338   : > { %3831 = vmatpush.bf16.msra.mxu0 %v5477_v43  ;;  %3844 = vmatpush.bf16.msra.mxu1 %v5605_v47  ;;  %v6522_v43 = vld [vmem:[%s9968_s3 + $0xcc] sm:$0xf]  ;;  %v5270_v47 = vld [vmem:[%s9968_s3 + $0xd8] sm:$0xf0] }
 0x339   : > { %3857 = vmatpush.bf16.msrb.mxu2 %v5733_v6  ;;  %3870 = vmatpush.bf16.msrb.mxu3 %v5861_v33  ;;  %v6037_v6 = vor.u32 %v6716_v31, %v6036_v30  ;;  %v6165_v33 = vor.u32 %v6748_v42, %v6164_v41  ;;  %v5273_v46 = vor.u32 %v6522_v43, %v5270_v47  ;;  %v6506_v41 = vld [vmem:[%s9968_s3 + $0x4c] sm:$0xf]  ;;  %v5206_v42 = vld [vmem:[%s9968_s3 + $0x58] sm:$0xf0] }
 0x33a   : > { %v5353_v31 = vor.u32 %v6542_v55, %v5350_v23  ;;  %v6538_v43 = vld [vmem:[%s9968_s3 + $0x14c] sm:$0xf]  ;;  %v5334_v47 = vld [vmem:[%s9968_s3 + $0x158] sm:$0xf0] }
 0x33b   : > { %v6586_v55 = vld [vmem:[%s9968_s3 + $0x2cc] sm:$0xf]  ;;  %v5526_v23 = vld [vmem:[%s9968_s3 + $0x2d8] sm:$0xf0] }
 0x33c   : > { %3832 = vmatpush.bf16.msra.mxu0 %v5461_v58  ;;  %3845 = vmatpush.bf16.msra.mxu1 %v5589_v54  ;;  %v6518_v58 = vld [vmem:[%s9968_s3 + $0xac] sm:$0xf]  ;;  %v5254_v54 = vld [vmem:[%s9968_s3 + $0xb8] sm:$0xf0] }
 0x33d   : > { %3858 = vmatpush.bf16.msrb.mxu2 %v5717_v57  ;;  %3871 = vmatpush.bf16.msrb.mxu3 %v5845_v16  ;;  %v6021_v57 = vor.u32 %v6712_v7, %v6020_v45  ;;  %v6149_v16 = vor.u32 %v6744_v24, %v6148_v50  ;;  %v5257_v26 = vor.u32 %v6518_v58, %v5254_v54  ;;  %v5956_v45 = vld [vmem:[%s9968_s3 + $0x628] sm:$0xf]  ;;  %v6696_v7 = vld [vmem:[%s9968_s3 + $0x634] sm:$0xf0]  ;;  %v6502_v58 = vld [vmem:[%s9968_s3 + $0x2c] sm:$0xf] }
 0x33e   : > { %v6084_v50 = vld [vmem:[%s9968_s3 + $0x728] sm:$0xf]  ;;  %v6728_v24 = vld [vmem:[%s9968_s3 + $0x734] sm:$0xf0]  ;;  %v5190_v54 = vld [vmem:[%s9968_s3 + $0x38] sm:$0xf0] }
 0x340   : > { %3833 = vmatpush.bf16.msra.mxu0 %v5445_v52  ;;  %3846 = vmatpush.bf16.msra.mxu1 %v5573_v18  ;;  %v6740_v52 = vld [vmem:[%s9968_s3 + $0x794] sm:$0xf0]  ;;  %v6514_v18 = vld [vmem:[%s9968_s3 + $0x8c] sm:$0xf] }
 0x341   : > { %3859 = vmatpush.bf16.msrb.mxu2 %v5701_v35  ;;  %3872 = vmatpush.bf16.msrb.mxu3 %v5829_v37  ;;  %v6133_v5 = vor.u32 %v6740_v52, %v6132_v0  ;;  %v5241_v17 = vor.u32 %v6514_v18, %v5238_v1  ;;  %v5321_v0 = vor.u32 %v6534_v51, %v5318_v53  ;;  %v6498_v52 = vld [vmem:[%s9968_s3 + $0xc] sm:$0xf]  ;;  %v5174_v18 = vld [vmem:[%s9968_s3 + $0x18] sm:$0xf0] }
 0x342   : > { %v6530_v1 = vld [vmem:[%s9968_s3 + $0x10c] sm:$0xf]  ;;  %v5494_v53 = vld [vmem:[%s9968_s3 + $0x298] sm:$0xf0] }
 0x343   : > { %v6578_v51 = vld [vmem:[%s9968_s3 + $0x28c] sm:$0xf] }
 0x344   : > { %3834 = vmatpush.bf16.msra.mxu0 %v5429_v22  ;;  %3847 = vmatpush.bf16.msra.mxu1 %v5557_v15  ;;  %v6510_v22 = vld [vmem:[%s9968_s3 + $0x6c] sm:$0xf] }
 0x345   : > { %3860 = vmatpush.bf16.msrb.mxu2 %v5685_v25  ;;  %3873 = vmatpush.bf16.msrb.mxu3 %v5813_v12  ;;  %v5989_v25 = vor.u32 %v6704_v14, %v5988_v40  ;;  %v6117_v12 = vor.u32 %v6736_v21, %v6116_v10  ;;  %v5225_v30 = vor.u32 %v6510_v22, %v5222_v60  ;;  %v5798_v14 = vld [vmem:[%s9968_s3 + $0x4f8] sm:$0xf0] }
 0x346   : > { %v5177_v10 = vor.u32 %v6498_v52, %v5174_v18  ;;  %v5305_v21 = vor.u32 %v6530_v1, %v5302_v39  ;;  %v6574_v52 = vld [vmem:[%s9968_s3 + $0x26c] sm:$0xf]  ;;  %v5478_v18 = vld [vmem:[%s9968_s3 + $0x278] sm:$0xf0] }
 0x347   : > { %3835 = vmatmul.bf16.vlgmr.msra.gmra.mxu0 %v8716_v3  ;;  %3848 = vmatmul.bf16.vlgmr.msra.gmra.mxu1 %v8714_v9 }
 0x348   : > { %3879 = vmatpush.bf16.msrb.mxu0 %v6053_v4  ;;  %3892 = vmatpush.bf16.msrb.mxu1 %v6181_v28  ;;  %v5972_v4 = vld [vmem:[%s9968_s3 + $0x648] sm:$0xf]  ;;  %v6700_v28 = vld [vmem:[%s9968_s3 + $0x654] sm:$0xf0] }
 0x349   : > { %3905 = vmatpush.bf16.msra.mxu2 %v5289_v32  ;;  %3918 = vmatpush.bf16.msra.mxu3 %v5417_v38  ;;  %v3602_v35 = vpop.f32.mrf.mxu2  ;;  %v3615_v37 = vpop.f32.mrf.mxu3  ;;  %v6100_v32 = vld [vmem:[%s9968_s3 + $0x748] sm:$0xf]  ;;  %v6732_v38 = vld [vmem:[%s9968_s3 + $0x754] sm:$0xf0] }
 0x34a   : > { %3861 = vmatmul.bf16.vlgmr.msrb.gmra.mxu2 %v8712_v13  ;;  %3874 = vmatmul.bf16.vlgmr.msrb.gmra.mxu3 %v8710_v19  ;;  %v3603_v48 = vadd.f32 %v3602_v35, %v3585_v29  ;;  %v6085_v29 = vor.u32 %v6728_v24, %v6084_v50  ;;  %v5542_v35 = vld [vmem:[%s9968_s3 + $0x2f8] sm:$0xf0] }
 0x34b   : > { %v5545_v22 = vor.u32 %v6590_v34, %v5542_v35  ;;  %v6606_v34 = vld [vmem:[%s9968_s3 + $0x36c] sm:$0xf]  ;;  %v5606_v35 = vld [vmem:[%s9968_s3 + $0x378] sm:$0xf0] }
 0x34c   : > { %3880 = vmatpush.bf16.msrb.mxu0 %v6037_v6  ;;  %3893 = vmatpush.bf16.msrb.mxu1 %v6165_v33  ;;  %v9415_v15 = vadd.f32 %v3615_v37, %v3603_v48  ;;  %v5973_v6 = vor.u32 %v6700_v28, %v5972_v4  ;;  %v6101_v33 = vor.u32 %v6732_v38, %v6100_v32  ;;  %v6622_v37 = vld [vmem:[%s9968_s3 + $0x3ec] sm:$0xf]  ;;  %v5670_v48 = vld [vmem:[%s9968_s3 + $0x3f8] sm:$0xf0] }
 0x34d   : > { %3906 = vmatpush.bf16.msra.mxu2 %v5273_v46  ;;  %3919 = vmatpush.bf16.msra.mxu3 %v5401_v49  ;;  %v5209_v46 = vor.u32 %v6506_v41, %v5206_v42  ;;  %v5337_v49 = vor.u32 %v6538_v43, %v5334_v47  ;;  %v5673_v60 = vor.u32 %v6622_v37, %v5670_v48  ;;  %v6618_v4 = vld [vmem:[%s9968_s3 + $0x3cc] sm:$0xf]  ;;  %v5654_v28 = vld [vmem:[%s9968_s3 + $0x3d8] sm:$0xf0] }
 0x34e   : > { %v6682_v32 = vld [vmem:[%s9968_s3 + $0x5cc] sm:$0xf]  ;;  %v5910_v38 = vld [vmem:[%s9968_s3 + $0x5d8] sm:$0xf0]  ;;  %v5529_v41 = vor.u32 %v6586_v55, %v5526_v23  ;;  %v5657_v42 = vor.u32 %v6618_v4, %v5654_v28 }
 0x34f   : > { %v6582_v43 = vld [vmem:[%s9968_s3 + $0x2ac] sm:$0xf]  ;;  %v5510_v47 = vld [vmem:[%s9968_s3 + $0x2b8] sm:$0xf0] }
 0x350   : > { %3881 = vmatpush.bf16.msrb.mxu0 %v6021_v57  ;;  %3894 = vmatpush.bf16.msrb.mxu1 %v6149_v16  ;;  %v5940_v57 = vld [vmem:[%s9968_s3 + $0x608] sm:$0xf]  ;;  %v5957_v16 = vor.u32 %v6696_v7, %v5956_v45  ;;  %v6646_v45 = vld [vmem:[%s9968_s3 + $0x4ac] sm:$0xf]  ;;  %v5766_v7 = vld [vmem:[%s9968_s3 + $0x4b8] sm:$0xf0] }
 0x351   : > { %3907 = vmatpush.bf16.msra.mxu2 %v5257_v26  ;;  %3920 = vmatpush.bf16.msra.mxu3 %v5385_v56  ;;  %v3604_v44 = vpop.f32.mrf.mxu2  ;;  %v3617_v62 = vpop.f32.mrf.mxu3  ;;  %v6724_v26 = vld [vmem:[%s9968_s3 + $0x714] sm:$0xf0]  ;;  %v5193_v56 = vor.u32 %v6502_v58, %v5190_v54  ;;  %v5513_v58 = vor.u32 %v6582_v43, %v5510_v47  ;;  %v6638_v37 = vld [vmem:[%s9968_s3 + $0x46c] sm:$0xf]  ;;  %v5718_v28 = vld [vmem:[%s9968_s3 + $0x458] sm:$0xf0] }
 0x352   : > { %v6069_v40 = vor.u32 %v6724_v26, %v6068_v63  ;;  %v5913_v62 = vor.u32 %v6682_v32, %v5910_v38  ;;  %v6674_v63 = vld [vmem:[%s9968_s3 + $0x58c] sm:$0xf]  ;;  %v5878_v26 = vld [vmem:[%s9968_s3 + $0x598] sm:$0xf0] }
 0x353   : > { %v5881_v39 = vor.u32 %v6674_v63, %v5878_v26  ;;  %v6634_v4 = vld [vmem:[%s9968_s3 + $0x44c] sm:$0xf]  ;;  %v5686_v26 = vld [vmem:[%s9968_s3 + $0x418] sm:$0xf0] }
 0x354   : > { %3882 = vmatpush.bf16.msrb.mxu0 %v6005_v36  ;;  %3895 = vmatpush.bf16.msrb.mxu1 %v6133_v5  ;;  %v6654_v36 = vld [vmem:[%s9968_s3 + $0x4ec] sm:$0xf]  ;;  %v5941_v5 = vor.u32 %v6692_v61, %v5940_v57  ;;  %v5750_v61 = vld [vmem:[%s9968_s3 + $0x498] sm:$0xf0]  ;;  %v5721_v43 = vor.u32 %v6634_v4, %v5718_v28  ;;  %v6759_v28 = vld [vmem:[%s9969_s4 + $0x30] sm:$0xff] }
 0x355   : > { %3908 = vmatpush.bf16.msra.mxu2 %v5241_v17  ;;  %3921 = vmatpush.bf16.msra.mxu3 %v5369_v20  ;;  %v6686_v17 = vld [vmem:[%s9968_s3 + $0x5ec] sm:$0xf]  ;;  %v5926_v20 = vld [vmem:[%s9968_s3 + $0x5f8] sm:$0xf0] }
 0x356   : > { %v6610_v57 = vld [vmem:[%s9968_s3 + $0x38c] sm:$0xf] }
 0x357   : > { %v6626_v63 = vld [vmem:[%s9968_s3 + $0x40c] sm:$0xf] }
 0x358   : > { %3883 = vmatpush.bf16.msrb.mxu0 %v5989_v25  ;;  %3896 = vmatpush.bf16.msrb.mxu1 %v6117_v12  ;;  %v5801_v25 = vor.u32 %v6654_v36, %v5798_v14  ;;  %v5929_v12 = vor.u32 %v6686_v17, %v5926_v20  ;;  %v5862_v14 = vld [vmem:[%s9968_s3 + $0x578] sm:$0xf0] }
 0x359   : > { %3909 = vmatpush.bf16.msra.mxu2 %v5225_v30  ;;  %3922 = vmatpush.bf16.msra.mxu3 %v5353_v31  ;;  %v6650_v30 = vld [vmem:[%s9968_s3 + $0x4cc] sm:$0xf]  ;;  %v5782_v31 = vld [vmem:[%s9968_s3 + $0x4d8] sm:$0xf0] }
 0x35a   : > { %v5785_v44 = vor.u32 %v6650_v30, %v5782_v31  ;;  %v6666_v30 = vld [vmem:[%s9968_s3 + $0x54c] sm:$0xf]  ;;  %v5846_v31 = vld [vmem:[%s9968_s3 + $0x558] sm:$0xf0] }
 0x35b   : > { %v5849_v47 = vor.u32 %v6666_v30, %v5846_v31  ;;  %v6710_v30 = vld [vmem:[%s9968_s3 + $0x6ac] sm:$0xf]  ;;  %v6022_v31 = vld [vmem:[%s9968_s3 + $0x6b8] sm:$0xf0] }
 0x35c   : > { %3884 = vmatpush.bf16.msrb.mxu0 %v5973_v6  ;;  %3897 = vmatpush.bf16.msrb.mxu1 %v6101_v33  ;;  %v6614_v6 = vld [vmem:[%s9968_s3 + $0x3ac] sm:$0xf]  ;;  %v5638_v33 = vld [vmem:[%s9968_s3 + $0x3b8] sm:$0xf0] }
 0x35d   : > { %3910 = vmatpush.bf16.msra.mxu2 %v5209_v46  ;;  %3923 = vmatpush.bf16.msra.mxu3 %v5337_v49  ;;  %v6678_v46 = vld [vmem:[%s9968_s3 + $0x5ac] sm:$0xf]  ;;  %v5894_v49 = vld [vmem:[%s9968_s3 + $0x5b8] sm:$0xf0]  ;;  %v5641_v54 = vor.u32 %v6614_v6, %v5638_v33 }
 0x35e   : > { %v6630_v6 = vld [vmem:[%s9968_s3 + $0x42c] sm:$0xf] }
 0x360   : > { %3885 = vmatpush.bf16.msrb.mxu0 %v5957_v16  ;;  %3898 = vmatpush.bf16.msrb.mxu1 %v6085_v29  ;;  %v5622_v16 = vld [vmem:[%s9968_s3 + $0x398] sm:$0xf0]  ;;  %v6642_v29 = vld [vmem:[%s9968_s3 + $0x48c] sm:$0xf] }
 0x361   : > { %3911 = vmatpush.bf16.msra.mxu2 %v5193_v56  ;;  %3924 = vmatpush.bf16.msra.mxu3 %v5321_v0  ;;  %v5497_v56 = vor.u32 %v6578_v51, %v5494_v53  ;;  %v5625_v0 = vor.u32 %v6610_v57, %v5622_v16  ;;  %v5753_v1 = vor.u32 %v6642_v29, %v5750_v61  ;;  %v6594_v57 = vld [vmem:[%s9968_s3 + $0x30c] sm:$0xf]  ;;  %v5558_v61 = vld [vmem:[%s9968_s3 + $0x318] sm:$0xf0] }
 0x363   : > { %v9574_v50 = vpop.f32.mrf.mxu0  ;;  %v9576_v24 = vpop.f32.mrf.mxu1 }
 0x364   : > { %3886 = vmatpush.bf16.msrb.mxu0 %v5941_v5  ;;  %3899 = vmatpush.bf16.msrb.mxu1 %v6069_v40  ;;  %v5734_v5 = vld [vmem:[%s9968_s3 + $0x478] sm:$0xf0]  ;;  %v6670_v40 = vld [vmem:[%s9968_s3 + $0x56c] sm:$0xf] }
 0x365   : > { %3912 = vmatpush.bf16.msra.mxu2 %v5177_v10  ;;  %3925 = vmatpush.bf16.msra.mxu3 %v5305_v21  ;;  %v5481_v10 = vor.u32 %v6574_v52, %v5478_v18  ;;  %v5609_v21 = vor.u32 %v6606_v34, %v5606_v35  ;;  %v5737_v55 = vor.u32 %v6638_v37, %v5734_v5  ;;  %v6718_v52 = vld [vmem:[%s9968_s3 + $0x6ec] sm:$0xf]  ;;  %v6054_v18 = vld [vmem:[%s9968_s3 + $0x6f8] sm:$0xf0] }
 0x366   : > { %v5865_v23 = vor.u32 %v6670_v40, %v5862_v14  ;;  %v5561_v35 = vor.u32 %v6594_v57, %v5558_v61  ;;  %v5689_v37 = vor.u32 %v6626_v63, %v5686_v26  ;;  %v6057_v40 = vor.u32 %v6718_v52, %v6054_v18  ;;  %v6756_v26 = vld [vmem:[%s9969_s4 + $0x18] sm:$0xff]  ;;  %v6765_v52 = vld [vmem:[%s9969_s4 + $0x60] sm:$0xff] }
 0x367   : > { %3887 = vmatmul.bf16.vlgmr.msrb.gmra.mxu0 %v8824_v27  ;;  %3900 = vmatmul.bf16.vlgmr.msrb.gmra.mxu1 %v8822_v2 }
 0x368   : > { %3931 = vmatpush.bf16.msra.mxu0 %v5545_v22  ;;  %3944 = vmatpush.bf16.msra.mxu1 %v5673_v60  ;;  %v6570_v22 = vld [vmem:[%s9968_s3 + $0x24c] sm:$0xf]  ;;  %v5462_v60 = vld [vmem:[%s9968_s3 + $0x258] sm:$0xf0] }
 0x369   : > { %3957 = vmatpush.bf16.msrb.mxu2 %v5801_v25  ;;  %3970 = vmatpush.bf16.msrb.mxu3 %v5929_v12  ;;  %v6602_v25 = vld [vmem:[%s9968_s3 + $0x34c] sm:$0xf]  ;;  %v5590_v12 = vld [vmem:[%s9968_s3 + $0x358] sm:$0xf0]  ;;  %v5465_v32 = vor.u32 %v6570_v22, %v5462_v60 }
 0x36a   : > { %3913 = vmatmul.bf16.vlgmr.msra.gmra.mxu2 %v8578_v11  ;;  %3926 = vmatmul.bf16.vlgmr.msra.gmra.mxu3 %v8576_v59  ;;  %v5769_v11 = vor.u32 %v6646_v45, %v5766_v7  ;;  %v5897_v59 = vor.u32 %v6678_v46, %v5894_v49  ;;  %v9617_v48 = vpop.f32.mrf.mxu2  ;;  %v9619_v36 = vpop.f32.mrf.mxu3  ;;  %v5593_v38 = vor.u32 %v6602_v25, %v5590_v12  ;;  %v5702_v7 = vld [vmem:[%s9968_s3 + $0x438] sm:$0xf0]  ;;  %v6662_v46 = vld [vmem:[%s9968_s3 + $0x52c] sm:$0xf] }
 0x36b   : > { %v3630_v17 = vpop.f32.mrf.mxu0  ;;  %v3643_v20 = vpop.f32.mrf.mxu1  ;;  %v5830_v49 = vld [vmem:[%s9968_s3 + $0x538] sm:$0xf0]  ;;  %v5705_v16 = vor.u32 %v6630_v6, %v5702_v7  ;;  %v6767_v6 = vld [vmem:[%s9969_s4 + $0x70] sm:$0xff] }
 0x36c   : > { %3932 = vmatpush.bf16.msra.mxu0 %v5529_v41  ;;  %3945 = vmatpush.bf16.msra.mxu1 %v5657_v42  ;;  %v6566_v41 = vld [vmem:[%s9968_s3 + $0x22c] sm:$0xf]  ;;  %v5446_v42 = vld [vmem:[%s9968_s3 + $0x238] sm:$0xf0]  ;;  %v5833_v29 = vor.u32 %v6662_v46, %v5830_v49 }
 0x36d   : > { %3958 = vmatpush.bf16.msrb.mxu2 %v5785_v44  ;;  %3971 = vmatpush.bf16.msrb.mxu3 %v5913_v62  ;;  %v6598_v44 = vld [vmem:[%s9968_s3 + $0x32c] sm:$0xf]  ;;  %v5574_v62 = vld [vmem:[%s9968_s3 + $0x338] sm:$0xf0]  ;;  %v5449_v51 = vor.u32 %v6566_v41, %v5446_v42 }
 0x36e   : > { %v5577_v53 = vor.u32 %v6598_v44, %v5574_v62  ;;  %v6760_v17 = vld [vmem:[%s9969_s4 + $0x38] sm:$0xff]  ;;  %v6706_v62 = vld [vmem:[%s9968_s3 + $0x68c] sm:$0xf] }
 0x36f   : > { %v6166_v25 = vld [vmem:[%s9968_s3 + $0x7d8] sm:$0xf0] }
 0x370   : > { %3933 = vmatpush.bf16.msra.mxu0 %v5513_v58  ;;  %3946 = vmatpush.bf16.msra.mxu1 %v5641_v54  ;;  %v6768_v41 = vld [vmem:[%s9969_s4 + $0x78] sm:$0xff] }
 0x371   : > { %3959 = vmatpush.bf16.msrb.mxu2 %v5769_v11  ;;  %3972 = vmatpush.bf16.msrb.mxu3 %v5897_v59  ;;  %v6562_v11 = vld [vmem:[%s9968_s3 + $0x20c] sm:$0xf]  ;;  %v5430_v59 = vld [vmem:[%s9968_s3 + $0x218] sm:$0xf0] }
 0x372   : > { %v3656_v33 = vpop.f32.mrf.mxu2  ;;  %v3669_v45 = vpop.f32.mrf.mxu3  ;;  %v5433_v34 = vor.u32 %v6562_v11, %v5430_v59  ;;  %v6118_v11 = vld [vmem:[%s9968_s3 + $0x778] sm:$0xf0]  ;;  %v6766_v59 = vld [vmem:[%s9969_s4 + $0x68] sm:$0xff] }
 0x373   : > { %v9678_v58 = vpop.f32.mrf.mxu0  ;;  %v9680_v54 = vpop.f32.mrf.mxu1  ;;  %v3629_v33 = vadd.f32 %v9574_v50, %v9415_v15  ;;  %v5990_v15 = vld [vmem:[%s9968_s3 + $0x678] sm:$0xf0]  ;;  %v6734_v50 = vld [vmem:[%s9968_s3 + $0x76c] sm:$0xf] }
 0x374   : > { %3934 = vmatpush.bf16.msra.mxu0 %v5497_v56  ;;  %3947 = vmatpush.bf16.msra.mxu1 %v5625_v0  ;;  %v6658_v56 = vld [vmem:[%s9968_s3 + $0x50c] sm:$0xf]  ;;  %v5814_v0 = vld [vmem:[%s9968_s3 + $0x518] sm:$0xf0]  ;;  %v6121_v63 = vor.u32 %v6734_v50, %v6118_v11 }
 0x375   : > { %3960 = vmatpush.bf16.msrb.mxu2 %v5753_v1  ;;  %3973 = vmatpush.bf16.msrb.mxu3 %v5881_v39  ;;  %v6750_v1 = vld [vmem:[%s9968_s3 + $0x7ec] sm:$0xf]  ;;  %v6182_v39 = vld [vmem:[%s9968_s3 + $0x7f8] sm:$0xf0]  ;;  %v5817_v5 = vor.u32 %v6658_v56, %v5814_v0  ;;  %v3642_v57 = vadd.f32 %v9576_v24, %v3629_v33 }
 0x376   : > { %v6185_v14 = vor.u32 %v6750_v1, %v6182_v39  ;;  %v6698_v56 = vld [vmem:[%s9968_s3 + $0x64c] sm:$0xf]  ;;  %v5974_v24 = vld [vmem:[%s9968_s3 + $0x658] sm:$0xf0] }
 0x377   : > { %v6102_v0 = vld [vmem:[%s9968_s3 + $0x758] sm:$0xf0] }
 0x378   : > { %3935 = vmatpush.bf16.msra.mxu0 %v5481_v10  ;;  %3948 = vmatpush.bf16.msra.mxu1 %v5609_v21  ;;  %v6714_v21 = vld [vmem:[%s9968_s3 + $0x6cc] sm:$0xf] }
 0x379   : > { %3961 = vmatpush.bf16.msrb.mxu2 %v5737_v55  ;;  %3974 = vmatpush.bf16.msrb.mxu3 %v5865_v23  ;;  %v6038_v55 = vld [vmem:[%s9968_s3 + $0x6d8] sm:$0xf0]  ;;  %v6746_v23 = vld [vmem:[%s9968_s3 + $0x7cc] sm:$0xf] }
 0x37a   : > { %v9721_v20 = vpop.f32.mrf.mxu2  ;;  %v9723_v10 = vpop.f32.mrf.mxu3  ;;  %v6041_v12 = vor.u32 %v6714_v21, %v6038_v55  ;;  %v6169_v4 = vor.u32 %v6746_v23, %v6166_v25  ;;  %v5958_v21 = vld [vmem:[%s9968_s3 + $0x638] sm:$0xf0] }
 0x37b   : > { %v3682_v22 = vpop.f32.mrf.mxu0  ;;  %v3695_v60 = vpop.f32.mrf.mxu1 }
 0x37c   : > { %3936 = vmatpush.bf16.msra.mxu0 %v5465_v32  ;;  %3949 = vmatpush.bf16.msra.mxu1 %v5593_v38  ;;  %v6742_v32 = vld [vmem:[%s9968_s3 + $0x7ac] sm:$0xf]  ;;  %v6150_v38 = vld [vmem:[%s9968_s3 + $0x7b8] sm:$0xf0] }
 0x37d   : > { %3962 = vmatpush.bf16.msrb.mxu2 %v5721_v43  ;;  %3975 = vmatpush.bf16.msrb.mxu3 %v5849_v47  ;;  %v6153_v42 = vor.u32 %v6742_v32, %v6150_v38  ;;  %v6758_v43 = vld [vmem:[%s9969_s4 + $0x28] sm:$0xff]  ;;  %v6086_v22 = vld [vmem:[%s9968_s3 + $0x738] sm:$0xf0] }
 0x37e   : > { %v6764_v60 = vld [vmem:[%s9969_s4 + $0x58] sm:$0xff] }
 0x380   : > { %3937 = vmatpush.bf16.msra.mxu0 %v5449_v51  ;;  %3950 = vmatpush.bf16.msra.mxu1 %v5577_v53  ;;  %v6757_v51 = vld [vmem:[%s9969_s4 + $0x20] sm:$0xff]  ;;  %v6702_v53 = vld [vmem:[%s9968_s3 + $0x66c] sm:$0xf] }
 0x381   : > { %3963 = vmatpush.bf16.msrb.mxu2 %v5705_v16  ;;  %3976 = vmatpush.bf16.msrb.mxu3 %v5833_v29  ;;  %v251_v16 = vld [vmem:[%s9970_s5 + $0x8] sm:$0xff]  ;;  %v3655_v29 = vadd.f32 %v9617_v48, %v3642_v57  ;;  %v5993_v61 = vor.u32 %v6702_v53, %v5990_v15 }
 0x382   : > { %v3708_v47 = vpop.f32.mrf.mxu2  ;;  %v3721_v44 = vpop.f32.mrf.mxu3  ;;  %v6730_v48 = vld [vmem:[%s9968_s3 + $0x74c] sm:$0xf] }
 0x383   : > { %v6753_v47 = vld [vmem:[%s9969_s4] sm:$0xff]  ;;  %v6762_v44 = vld [vmem:[%s9969_s4 + $0x48] sm:$0xff] }
 0x384   : > { %3938 = vmatpush.bf16.msra.mxu0 %v5433_v34  ;;  %3951 = vmatpush.bf16.msra.mxu1 %v5561_v35  ;;  %v9779_v45 = vpop.f32.mrf.mxu0  ;;  %v9781_v7 = vpop.f32.mrf.mxu1  ;;  %v3668_v35 = vadd.f32 %v9619_v36, %v3655_v29  ;;  %v6726_v36 = vld [vmem:[%s9968_s3 + $0x72c] sm:$0xf]  ;;  %v6773_v29 = vld [vmem:[%s9969_s4 + $0xa0] sm:$0xff] }
 0x385   : > { %3964 = vmatpush.bf16.msrb.mxu2 %v5689_v37  ;;  %3977 = vmatpush.bf16.msrb.mxu3 %v5817_v5  ;;  %v3586_v37 = vrot.slane %v251_v16, 2  ;;  %v5977_v5 = vor.u32 %v6698_v56, %v5974_v24  ;;  %v6770_v24 = vld [vmem:[%s9969_s4 + $0x88] sm:$0xff] }
 0x386   : > { %v3681_v55 = vadd.f32 %v9678_v58, %v3668_v35  ;;  %v6722_v58 = vld [vmem:[%s9968_s3 + $0x70c] sm:$0xf] }
 0x387   : > { %3939 = vmatmul.bf16.vlgmr.msra.gmra.mxu0 %v8716_v3  ;;  %3952 = vmatmul.bf16.vlgmr.msra.gmra.mxu1 %v8714_v9  ;;  %v6025_v3 = vor.u32 %v6710_v30, %v6022_v31  ;;  %v6134_v9 = vld [vmem:[%s9968_s3 + $0x798] sm:$0xf0]  ;;  %v3707_v23 = vadd.f32 %v9721_v20, %v3586_v37  ;;  %v6763_v31 = vld [vmem:[%s9969_s4 + $0x50] sm:$0xff] }
 0x388   : > { %3983 = vmatpush.bf16.msrb.mxu0 %v6057_v40  ;;  %3996 = vmatpush.bf16.msrb.mxu1 %v6185_v14  ;;  %v6105_v40 = vor.u32 %v6730_v48, %v6102_v0  ;;  %v6755_v14 = vld [vmem:[%s9969_s4 + $0x10] sm:$0xff]  ;;  %v5942_v30 = vld [vmem:[%s9968_s3 + $0x618] sm:$0xf0]  ;;  %v3694_v32 = vadd.f32 %v9680_v54, %v3681_v55 }
 0x389   : > { %4275 = vmatpush.bf16.msra.mxu2 %v6760_v17  ;;  %3978 = vmatmul.bf16.vlgmr.msrb.gmra.mxu3 %v8710_v19  ;;  %v6738_v19 = vld [vmem:[%s9968_s3 + $0x78c] sm:$0xf]  ;;  %v6070_v20 = vld [vmem:[%s9968_s3 + $0x718] sm:$0xf0]  ;;  %v252_v48 = vld [vmem:[%s9970_s5 + $0x10] sm:$0xff] }
 0x38a   : > { %3965 = vmatmul.bf16.vlgmr.msrb.gmra.mxu2 %v8712_v13  ;;  %v6006_v13 = vld [vmem:[%s9968_s3 + $0x698] sm:$0xf0]  ;;  %4288 = vmatpush.bf16.msra.mxu3 %v6768_v41  ;;  %v6137_v49 = vor.u32 %v6738_v19, %v6134_v9  ;;  %v6694_v17 = vld [vmem:[%s9968_s3 + $0x62c] sm:$0xf] }
 0x38b   : > { %v6009_v46 = vor.u32 %v6706_v62, %v6006_v13  ;;  %v5961_v25 = vor.u32 %v6694_v17, %v5958_v21  ;;  %v4009_v62 = vmax.f32 %v3694_v32, 0.0  ;;  %v6782_v32 = vld [vmem:[%s9969_s4 + $0xe8] sm:$0xff] }
 0x38c   : > { %3984 = vmatpush.bf16.msrb.mxu0 %v6041_v12  ;;  %3997 = vmatpush.bf16.msrb.mxu1 %v6169_v4  ;;  %v3734_v39 = vpop.f32.mrf.mxu0  ;;  %v3747_v34 = vpop.f32.mrf.mxu1  ;;  %v6089_v12 = vor.u32 %v6726_v36, %v6086_v22  ;;  %v6754_v4 = vld [vmem:[%s9969_s4 + $0x8] sm:$0xff] }
 0x38d   : > { %4276 = vmatpush.bf16.msra.mxu2 %v6759_v28  ;;  %v3758_v18 = vpop.f32.mrf.mxu2  ;;  %v3771_v1 = vpop.f32.mrf.mxu3  ;;  %v6690_v28 = vld [vmem:[%s9968_s3 + $0x60c] sm:$0xf]  ;;  %v4013_v13 = vpack.c.bf16 %v4009_v62, %v4009_v62  ;;  %v6769_v39 = vld [vmem:[%s9969_s4 + $0x80] sm:$0xff]  ;;  %v3587_v34 = vrot.slane %v252_v48, 2 }
 0x38e   : > { %4289 = vmatpush.bf16.msra.mxu3 %v6767_v6  ;;  %v6778_v62 = vld [vmem:[%s9969_s4 + $0xc8] sm:$0xff] }
 0x390   : > { %3985 = vmatpush.bf16.msrb.mxu0 %v6025_v3  ;;  %3998 = vmatpush.bf16.msrb.mxu1 %v6153_v42  ;;  %v3720_v3 = vadd.f32 %v9723_v10, %v3707_v23  ;;  %v5945_v42 = vor.u32 %v6690_v28, %v5942_v30  ;;  %v6761_v10 = vld [vmem:[%s9969_s4 + $0x40] sm:$0xff]  ;;  %v6784_v30 = vld [vmem:[%s9969_s4 + $0xf8] sm:$0xff] }
 0x391   : > { %4277 = vmatpush.bf16.msra.mxu2 %v6758_v43  ;;  %v6073_v43 = vor.u32 %v6722_v58, %v6070_v20 }
 0x392   : > { %4290 = vmatpush.bf16.msra.mxu3 %v6766_v59  ;;  %v3733_v54 = vadd.f32 %v9779_v45, %v3720_v3  ;;  %v6781_v3 = vld [vmem:[%s9969_s4 + $0xe0] sm:$0xff] }
 0x394   : > { %3986 = vmatpush.bf16.msrb.mxu0 %v6009_v46  ;;  %3999 = vmatpush.bf16.msrb.mxu1 %v6137_v49  ;;  %v3746_v19 = vadd.f32 %v9781_v7, %v3733_v54  ;;  %v6774_v7 = vld [vmem:[%s9969_s4 + $0xa8] sm:$0xff]  ;;  %v253_v54 = vld [vmem:[%s9970_s5 + $0x18] sm:$0xff] }
 0x395   : > { %4278 = vmatpush.bf16.msra.mxu2 %v6757_v51  ;;  %v3760_v38 = vpop.f32.mrf.mxu2  ;;  %v3773_v41 = vpop.f32.mrf.mxu3 }
 0x396   : > { %4291 = vmatpush.bf16.msra.mxu3 %v6765_v52  ;;  %v3759_v9 = vadd.f32 %v3758_v18, %v3746_v19 }
 0x398   : > { %3987 = vmatpush.bf16.msrb.mxu0 %v5993_v61  ;;  %4000 = vmatpush.bf16.msrb.mxu1 %v6121_v63  ;;  %v3772_v6 = vadd.f32 %v3771_v1, %v3759_v9  ;;  %v6772_v61 = vld [vmem:[%s9969_s4 + $0x98] sm:$0xff]  ;;  %v6771_v63 = vld [vmem:[%s9969_s4 + $0x90] sm:$0xff] }
 0x399   : > { %4279 = vmatpush.bf16.msra.mxu2 %v6756_v26 }
 0x39a   : > { %4292 = vmatpush.bf16.msra.mxu3 %v6764_v60 }
 0x39c   : > { %3988 = vmatpush.bf16.msrb.mxu0 %v5977_v5  ;;  %4001 = vmatpush.bf16.msrb.mxu1 %v6105_v40 }
 0x39d   : > { %4280 = vmatpush.bf16.msra.mxu2 %v6755_v14 }
 0x39e   : > { %4293 = vmatpush.bf16.msra.mxu3 %v6763_v31  ;;  %v6783_v31 = vld [vmem:[%s9969_s4 + $0xf0] sm:$0xff] }
 0x3a0   : > { %3989 = vmatpush.bf16.msrb.mxu0 %v5961_v25  ;;  %4002 = vmatpush.bf16.msrb.mxu1 %v6089_v12 }
 0x3a1   : > { %4281 = vmatpush.bf16.msra.mxu2 %v6754_v4 }
 0x3a2   : > { %4294 = vmatpush.bf16.msra.mxu3 %v6762_v44 }
 0x3a4   : > { %3990 = vmatpush.bf16.msrb.mxu0 %v5945_v42  ;;  %4003 = vmatpush.bf16.msrb.mxu1 %v6073_v43  ;;  %v3784_v33 = vpop.f32.mrf.mxu0  ;;  %v3797_v45 = vpop.f32.mrf.mxu1  ;;  %v6780_v42 = vld [vmem:[%s9969_s4 + $0xd8] sm:$0xff]  ;;  %v6779_v43 = vld [vmem:[%s9969_s4 + $0xd0] sm:$0xff] }
 0x3a5   : > { %4282 = vmatpush.bf16.msra.mxu2 %v6753_v47  ;;  %v3785_v46 = vadd.f32 %v3784_v33, %v3772_v6  ;;  %v3588_v6 = vrot.slane %v253_v54, 2 }
 0x3a6   : > { %4295 = vmatpush.bf16.msra.mxu3 %v6761_v10 }
 0x3a7   : > { %3991 = vmatmul.bf16.vlgmr.msrb.gmra.mxu0 %v8824_v27  ;;  %4004 = vmatmul.bf16.vlgmr.msrb.gmra.mxu1 %v8822_v2  ;;  %v3798_v49 = vadd.f32 %v3797_v45, %v3785_v46  ;;  %v6776_v27 = vld [vmem:[%s9969_s4 + $0xb8] sm:$0xff]  ;;  %v6775_v2 = vld [vmem:[%s9969_s4 + $0xb0] sm:$0xff] }
 0x3a8   : > { %4283 = vmatmul.bf16.vlgmr.msra.gmra.mxu2 %v4013_v13  ;;  %4301 = vmatpush.bf16.msra.mxu0 %v6776_v27  ;;  %v6777_v13 = vld [vmem:[%s9969_s4 + $0xc0] sm:$0xff] }
 0x3a9   : > { %v4010_v51 = vmax.f32 %v3798_v49, 0.0  ;;  %4314 = vmatpush.bf16.msra.mxu1 %v6784_v30 }
 0x3ab   : > { %v4014_v53 = vpack.c.bf16 %v4010_v51, %v4010_v51 }
 0x3ac   : > { %v3786_v11 = vpop.f32.mrf.mxu0  ;;  %v3799_v59 = vpop.f32.mrf.mxu1  ;;  %4302 = vmatpush.bf16.msra.mxu0 %v6775_v2 }
 0x3ad   : > { %v3810_v15 = vpop.f32.mrf.mxu2  ;;  %v3823_v50 = vpop.f32.mrf.mxu3  ;;  %4296 = vmatmul.bf16.vlgmr.msra.gmra.mxu3 %v4014_v53  ;;  %4315 = vmatpush.bf16.msra.mxu1 %v6783_v31 }
 0x3ae   : > { %v3811_v35 = vadd.f32 %v3810_v15, %v3587_v34 }
 0x3b0   : > { %4303 = vmatpush.bf16.msra.mxu0 %v6774_v7  ;;  %v3824_v40 = vadd.f32 %v3823_v50, %v3811_v35 }
 0x3b1   : > { %4316 = vmatpush.bf16.msra.mxu1 %v6782_v32 }
 0x3b4   : > { %4304 = vmatpush.bf16.msra.mxu0 %v6773_v29 }
 0x3b5   : > { %v3812_v57 = vpop.f32.mrf.mxu2  ;;  %v3825_v16 = vpop.f32.mrf.mxu3  ;;  %4317 = vmatpush.bf16.msra.mxu1 %v6781_v3 }
 0x3b8   : > { %4305 = vmatpush.bf16.msra.mxu0 %v6772_v61 }
 0x3b9   : > { %4318 = vmatpush.bf16.msra.mxu1 %v6780_v42 }
 0x3bc   : > { %4306 = vmatpush.bf16.msra.mxu0 %v6771_v63 }
 0x3bd   : > { %4319 = vmatpush.bf16.msra.mxu1 %v6779_v43 }
 0x3c0   : > { %4307 = vmatpush.bf16.msra.mxu0 %v6770_v24 }
 0x3c1   : > { %4320 = vmatpush.bf16.msra.mxu1 %v6778_v62 }
 0x3c4   : > { %v3836_v26 = vpop.f32.mrf.mxu0  ;;  %v3849_v56 = vpop.f32.mrf.mxu1  ;;  %4308 = vmatpush.bf16.msra.mxu0 %v6769_v39 }
 0x3c5   : > { %v3837_v14 = vadd.f32 %v3836_v26, %v3824_v40  ;;  %4321 = vmatpush.bf16.msra.mxu1 %v6777_v13 }
 0x3c7   : > { %v3850_v17 = vadd.f32 %v3849_v56, %v3837_v14  ;;  %v4273_v56 = vrot.slane %v9373_v8, 3 }
 0x3cc   : > { %v3838_v18 = vpop.f32.mrf.mxu0  ;;  %v3851_v1 = vpop.f32.mrf.mxu1 }
 0x3cd   : > { %v3862_v0 = vpop.f32.mrf.mxu2  ;;  %v3875_v52 = vpop.f32.mrf.mxu3 }
 0x3ce   : > { %v3863_v21 = vadd.f32 %v3862_v0, %v3850_v17 }
 0x3d0   : > { %v3876_v36 = vadd.f32 %v3875_v52, %v3863_v21 }
 0x3d5   : > { %v3864_v37 = vpop.f32.mrf.mxu2  ;;  %v3877_v5 = vpop.f32.mrf.mxu3 }
 0x3e4   : > { %v3888_v22 = vpop.f32.mrf.mxu0  ;;  %v3901_v60 = vpop.f32.mrf.mxu1 }
 0x3e5   : > { %v3889_v55 = vadd.f32 %v3888_v22, %v3876_v36 }
 0x3e7   : > { %v3902_v23 = vadd.f32 %v3901_v60, %v3889_v55 }
 0x3e9   : > { %v4011_v25 = vmax.f32 %v3902_v23, 0.0 }
 0x3eb   : > { %v4015_v12 = vpack.c.bf16 %v4011_v25, %v4011_v25 }
 0x3ec   : > { %v3890_v58 = vpop.f32.mrf.mxu0  ;;  %v3903_v20 = vpop.f32.mrf.mxu1 }
 0x3ed   : > { %v3914_v4 = vpop.f32.mrf.mxu2  ;;  %v3927_v28 = vpop.f32.mrf.mxu3  ;;  %4309 = vmatmul.bf16.vlgmr.msra.gmra.mxu0 %v4015_v12 }
 0x3ee   : > { %v3915_v45 = vadd.f32 %v3914_v4, %v3588_v6 }
 0x3f0   : > { %v3928_v51 = vadd.f32 %v3927_v28, %v3915_v45 }
 0x3f5   : > { %v3916_v38 = vpop.f32.mrf.mxu2  ;;  %v3929_v41 = vpop.f32.mrf.mxu3 }
 0x404   : > { %v3940_v47 = vpop.f32.mrf.mxu0  ;;  %v3953_v44 = vpop.f32.mrf.mxu1 }
 0x405   : > { %v3941_v53 = vadd.f32 %v3940_v47, %v3928_v51 }
 0x407   : > { %v3954_v15 = vadd.f32 %v3953_v44, %v3941_v53 }
 0x40c   : > { %v3979_v19 = vpop.f32.mrf.mxu3  ;;  %v3942_v9 = vpop.f32.mrf.mxu0 }
 0x40d   : > { %v3966_v10 = vpop.f32.mrf.mxu2  ;;  %v3955_v33 = vpop.f32.mrf.mxu1 }
 0x40e   : > { %v3967_v50 = vadd.f32 %v3966_v10, %v3954_v15 }
 0x410   : > { %v3980_v11 = vadd.f32 %v3979_v19, %v3967_v50 }
 0x414   : > { %v3981_v49 = vpop.f32.mrf.mxu3 }
 0x415   : > { %v3968_v46 = vpop.f32.mrf.mxu2 }
 0x424   : > { %v3992_v59 = vpop.f32.mrf.mxu0  ;;  %v4005_v27 = vpop.f32.mrf.mxu1 }
 0x425   : > { %v3993_v2 = vadd.f32 %v3992_v59, %v3980_v11 }
 0x427   : > { %v4006_v7 = vadd.f32 %v4005_v27, %v3993_v2 }
 0x429   : > { %v4012_v57 = vmax.f32 %v4006_v7, 0.0 }
 0x42b   : > { %v4016_v16 = vpack.c.bf16 %v4012_v57, %v4012_v57  ;;  %v4284_v29 = vpop.f32.mrf.mxu2 }
 0x42c   : > { %v3994_v61 = vpop.f32.mrf.mxu0  ;;  %v4007_v63 = vpop.f32.mrf.mxu1  ;;  %v4285_v24 = vadd.f32 %v4284_v29, %v4273_v56 }
 0x42d   : > { %4322 = vmatmul.bf16.vlgmr.msra.gmra.mxu1 %v4016_v16 }
 0x430   : > { %v4297_v48 = vpop.f32.mrf.mxu3 }
 0x431   : > { %v4298_v0 = vadd.f32 %v4297_v48, %v4285_v24 }
 0x433   : > { %v4286_v26 = vpop.f32.mrf.mxu2 }
 0x438   : > { %v4299_v52 = vpop.f32.mrf.mxu3 }
 0x46a   : > { %v4310_v18 = vpop.f32.mrf.mxu0 }
 0x46b   : > { %v4311_v39 = vadd.f32 %v4310_v18, %v4298_v0 }
 0x472   : > { %v4312_v1 = vpop.f32.mrf.mxu0 }
 0x4aa   : > { %v4323_v34 = vpop.f32.mrf.mxu1 }
 0x4ab   : > { %v4324_v35 = vadd.f32 %v4323_v34, %v4311_v39 }
 0x4ad   : > { %v4328_v37 = vsel %vm4327_vm1, %v4324_v35, -inf }
 0x4ae   : > { %4329 = vmax.xlane.f32.xlu0 %v4328_v37 }
 0x4b2   : > { %v4325_v5 = vpop.f32.mrf.mxu1 }
 0x521   : > { %v4330_v40 = vpop.xlane.xlu0 %4329 }
 0x522   : > { %v4331_v14 = vsub.f32 %v4324_v35, %v4330_v40 }
 0x524   : > { %v4332_v17 = vmul.f32 1.442695, %v4331_v14 }
 0x526   : > { %6854 = vpow2.f32 %v4332_v17 }
 0x52c   : > { %v6855_v8 = vpop.eup %6854 }
 0x52d   : > { %v4334_v21 = vsel %vm4327_vm1, %v6855_v8, 0.0 }
 0x52e   : > { %4335 = vadd.xlane.f32.xlu1 %v4334_v21 }
 0x5a1   : > { %v4336_v36 = vpop.xlane.xlu1 %4335 }
 0x5a2   : > { %6856 = vrcp.f32 %v4336_v36  ;;  %v4348_v23 = vand.u32 2147483648, %v4336_v36  ;;  %v4346_v12 = vand.u32 2147483647, %v4336_v36  ;;  %vm4342_vm3 = vweird.f32 %v4336_v36 }
 0x5a4   : > { %v4349_v28 = vor.u32 1.1754944e-38, %v4348_v23  ;;  %vm4347_vm5 = vcmp.eq.f32.partialorder %v4346_v12, 8.507059e+37 }
 0x5a8   : > { %v6857_v22 = vpop.eup %6856 }
 0x5a9   : > { %v4338_v60 = vmul.f32 %v6857_v22, %v4336_v36  ;;  %vm4343_vm2 = vweird.f32 %v6857_v22 }
 0x5aa   : > { %vm4344_vm4 = vmor %vm4342_vm3, %vm4343_vm2 }
 0x5ab   : > { %v4339_v55 = vsub.f32 1.0, %v4338_v60 }
 0x5ad   : > { %v4340_v25 = vmul.f32 %v6857_v22, %v4339_v55 }
 0x5af   : > { %v4341_v4 = vadd.f32 %v6857_v22, %v4340_v25 }
 0x5b1   : > { %v4345_v30 = vsel %vm4344_vm4, %v6857_v22, %v4341_v4 }
 0x5b2   : > { %v4350_v58 = vsel %vm4347_vm5, %v4349_v28, %v4345_v30 }
 0x5b3   : > { %v4351_v20 = vmul.f32 %v6855_v8, %v4350_v58 }
 0x5b5   : > { %4352 = vst [vmem:[%s243_s15] sm:$0x1] %v4351_v20 }
 0x5b6   : > { %6887 = shalt.err (!%p6884_p3)
}
 0x5b7   : > { %6794 = dma.vmem_to_hbm [thread:$0]  (%p6998_p5), %s4365_s12, 16, %s4367_s16, %s4354_s17  }
 0x5b8 PF: > { %p6800_p4 = scmp.ge.s32.totalorder %s6922_s24, 2  ;;  %s4378_s9 = sand.u32 1, %s6910_s21  }
 0x5b9   : > { %s4379_s13 = scalar_lea.sflag [#allocation5], %s4378_s9 }
 0x5ba   : > { %p6797_p7 = pnand %p6800_p4, %p7002_p6 }
 0x5bc   : > { %p6798_p8 = pneg %p6797_p7 }
 0x5be   : > { %6905 = dma.done.wait (%p6798_p8), %s4379_s13, 16  }
 0x5bf   : > { %6907 = vsyncadd (%p6798_p8), %s4379_s13, 4294967280  ;;  %p16_p9 = scmp.ge.s32.totalorder %s6985_s27, 10   ;;  %s9974_s21 = smov %s6914_s22 }
 0x5c0   : > { %s9975_s22 = smov %s6918_s23  ;;  %s9976_s23 = smov %s6996_s30 }
 0x5c1   : > { %s9977_s24 = smov %s6985_s27  ;;  %18 = sbr.rel (!%p16_p9) target bundleno = 3 (0x3), region = 79 }
 0x5c6   :  { %4384 = vsyncpa [#allocation5], 1 }
 0x5c7   :  { %4386 = vsyncpa [#allocation5 + $0x1], 1 }

</bundles_post_ra>
